<compile_context>
chip_gen: v6e
topology: v6e:2x2x1
jax: 0.10.0
libtpu: 0.0.40
codegen_flags: <defaults>
</compile_context>

<pallas_src>
import functools

import jax
import jax.numpy as jnp
import numpy as np
from jax.experimental import pallas as pl
from jax.experimental.pallas import tpu as pltpu

LANE = 128
HIDDEN = 512
# conv tower config (matches the PyTorch module): (out_channels, kernel, stride)
CONV_CFG = ((32, 8, 4), (64, 4, 2), (64, 3, 1))


def _round_up(x, m):
    return (x + m - 1) // m * m


def conv_out_hw(h, w):
    for _, k, s in CONV_CFG:
        h, w = (h - k) // s + 1, (w - k) // s + 1
    return h, w


# ----------------------------------------------------------------------------
# Fused kernel: conv1 GEMM -> conv2 -> conv3 -> fc1 -> ReLU -> fc2, one image
# per grid step.  All patch extraction / flattening is done with static,
# contiguous VMEM copies; all matmuls are plain 2-D bf16 x bf16 -> f32 dots.
# ----------------------------------------------------------------------------
def _make_fused_kernel(*, OH1, OW1, OH2, OW2, OH3, OW3):
    (C1, _KS1, _ST1), (C2, KS2, ST2), (C3, KS3, ST3) = CONV_CFG
    R2, R3 = OH2 * OW2, OH3 * OW3

    def kernel(cols1_ref, w1_ref, b1_ref, w2_ref, b2_ref, w3_ref, b3_ref,
               wf1_ref, bf1_ref, wf2_ref, bf2_ref, out_ref,
               h1_s, cols2_s, h2_s, cols3_s, flat_s):
        f32 = jnp.float32
        bf16 = jnp.bfloat16

        # ---- conv1 as a GEMM on the prebuilt im2col columns (MXU, f32 acc).
        x1 = cols1_ref[0]                                           # (R1, 64*C0) bf16
        h1 = jnp.dot(x1, w1_ref[...], preferred_element_type=f32) + b1_ref[...]
        h1 = jnp.maximum(h1, 0.0)                                   # (R1, C1) f32

        # Stage conv1 output in (H, W*C) layout so every conv2 patch chunk is
        # a contiguous lane range of width KS2*C1.
        for h in range(OH1):
            for w in range(OW1):
                h1_s[h, w * C1:(w + 1) * C1] = h1[h * OW1 + w, :]

        # ---- conv2: in-kernel im2col (contiguous copies) + one GEMM.
        for oh in range(OH2):
            for ow in range(OW2):
                r = oh * OW2 + ow
                for i in range(KS2):
                    cols2_s[r, i * KS2 * C1:(i + 1) * KS2 * C1] = (
                        h1_s[ST2 * oh + i,
                             ST2 * ow * C1:(ST2 * ow + KS2) * C1])
        c2 = cols2_s[...].astype(bf16)                              # (R2, 16*C1)
        h2 = jnp.dot(c2, w2_ref[...], preferred_element_type=f32) + b2_ref[...]
        h2 = jnp.maximum(h2, 0.0)                                   # (R2, C2) f32

        for h in range(OH2):
            for w in range(OW2):
                h2_s[h, w * C2:(w + 1) * C2] = h2[h * OW2 + w, :]

        # ---- conv3: same pattern (stride 1).
        for oh in range(OH3):
            for ow in range(OW3):
                r = oh * OW3 + ow
                for i in range(KS3):
                    cols3_s[r, i * KS3 * C2:(i + 1) * KS3 * C2] = (
                        h2_s[ST3 * oh + i,
                             ST3 * ow * C2:(ST3 * ow + KS3) * C2])
        c3 = cols3_s[...].astype(bf16)                              # (R3, 9*C2)
        h3 = jnp.dot(c3, w3_ref[...], preferred_element_type=f32) + b3_ref[...]
        h3 = jnp.maximum(h3, 0.0)                                   # (R3, C3) f32

        # ---- flatten in (h, w, c) order + fused MLP head fc1 -> ReLU -> fc2.
        for r in range(R3):
            flat_s[0, r * C3:(r + 1) * C3] = h3[r, :]
        flat = flat_s[...].astype(bf16)                             # (1, R3*C3)
        h4 = jnp.dot(flat, wf1_ref[...], preferred_element_type=f32) + bf1_ref[...]
        h4 = jnp.maximum(h4, 0.0).astype(bf16)                      # (1, HIDDEN)
        logits = jnp.dot(h4, wf2_ref[...], preferred_element_type=f32) + bf2_ref[...]
        out_ref[0] = logits                                         # (1, NPAD) f32

    return kernel


# ----------------------------------------------------------------------------
# Forward builder
# ----------------------------------------------------------------------------
def make_forward(input_shape, n_actions):
    C0, H, W = input_shape
    (C1, KS1, ST1), (C2, KS2, ST2), (C3, KS3, ST3) = CONV_CFG
    OH1, OW1 = (H - KS1) // ST1 + 1, (W - KS1) // ST1 + 1
    OH2, OW2 = (OH1 - KS2) // ST2 + 1, (OW1 - KS2) // ST2 + 1
    OH3, OW3 = (OH2 - KS3) // ST3 + 1, (OW2 - KS3) // ST3 + 1
    assert OH1 >= 1 and OH2 >= 1 and OH3 >= 1, "input too small for conv tower"
    R1, R2, R3 = OH1 * OW1, OH2 * OW2, OH3 * OW3
    K1, K2, K3 = KS1 * KS1 * C0, KS2 * KS2 * C1, KS3 * KS3 * C2
    S = R3 * C3                      # fc1 contraction size (unpadded)
    NPAD = _round_up(n_actions, LANE)

    kernel = _make_fused_kernel(OH1=OH1, OW1=OW1, OH2=OH2, OW2=OW2,
                                OH3=OH3, OW3=OW3)

    def forward(prep, x_u8):
        B = x_u8.shape[0]
        # conv1 im2col as XLA glue on the tiny uint8 frame (stride-4 windows);
        # column order (kh, kw, c) matches the prepped conv1 weight, and the
        # /255 scale is folded into that weight.
        xn = jnp.transpose(x_u8, (0, 2, 3, 1))                      # (B,H,W,C0) u8
        patches = [
            xn[:, i:i + ST1 * (OH1 - 1) + 1:ST1,
               j:j + ST1 * (OW1 - 1) + 1:ST1, :]
            for i in range(KS1) for j in range(KS1)
        ]
        cols1 = jnp.concatenate(patches, axis=-1)                   # (B,OH1,OW1,K1)
        cols1 = cols1.reshape(B, R1, K1).astype(jnp.bfloat16)

        def wspec(shape):
            return pl.BlockSpec(shape, lambda b: (0, 0))            # resident

        out = pl.pallas_call(
            kernel,
            out_shape=jax.ShapeDtypeStruct((B, 1, NPAD), jnp.float32),
            grid=(B,),
            in_specs=[
                pl.BlockSpec((1, R1, K1), lambda b: (b, 0, 0)),     # per-image cols1
                wspec((K1, C1)), wspec((1, C1)),                    # conv1 w, b
                wspec((K2, C2)), wspec((1, C2)),                    # conv2 w, b
                wspec((K3, C3)), wspec((1, C3)),                    # conv3 w, b
                wspec((S, HIDDEN)), wspec((1, HIDDEN)),             # fc1 w, b
                wspec((HIDDEN, NPAD)), wspec((1, NPAD)),            # fc2 w, b
            ],
            out_specs=pl.BlockSpec((1, 1, NPAD), lambda b: (b, 0, 0)),
            scratch_shapes=[
                pltpu.VMEM((OH1, OW1 * C1), jnp.float32),   # conv1 act, (H, W*C)
                pltpu.VMEM((R2, K2), jnp.float32),          # conv2 im2col cols
                pltpu.VMEM((OH2, OW2 * C2), jnp.float32),   # conv2 act, (H, W*C)
                pltpu.VMEM((R3, K3), jnp.float32),          # conv3 im2col cols
                pltpu.VMEM((1, S), jnp.float32),            # flattened conv3 act
            ],
            compiler_params=pltpu.CompilerParams(
                dimension_semantics=("parallel",)),
        )(cols1, prep["c1_w"], prep["c1_b"], prep["c2_w"], prep["c2_b"],
          prep["c3_w"], prep["c3_b"], prep["fc1_w"], prep["fc1_b"],
          prep["fc2_w"], prep["fc2_b"])
        return out.reshape(B, NPAD)[:, :n_actions]

    return forward


# ----------------------------------------------------------------------------
# Parameters (PyTorch layout) + one-time prep for the fused kernel
# ----------------------------------------------------------------------------
def init_params(key, input_shape, n_actions):
    """PyTorch-layout (OIHW / (out, in)) float32 parameters."""
    C0, H, W = input_shape
    oh, ow = conv_out_hw(H, W)
    size = 64 * oh * ow
    keys = jax.random.split(key, 10)

    def u(k, shape, fan_in):  # PyTorch-style uniform(-1/sqrt(fan), 1/sqrt(fan))
        bound = 1.0 / np.sqrt(fan_in)
        return jax.random.uniform(k, shape, jnp.float32, -bound, bound)

    return {
        "c1_w": u(keys[0], (32, C0, 8, 8), C0 * 8 * 8),
        "c1_b": u(keys[1], (32,), C0 * 8 * 8),
        "c2_w": u(keys[2], (64, 32, 4, 4), 32 * 4 * 4),
        "c2_b": u(keys[3], (64,), 32 * 4 * 4),
        "c3_w": u(keys[4], (64, 64, 3, 3), 64 * 3 * 3),
        "c3_b": u(keys[5], (64,), 64 * 3 * 3),
        "fc1_w": u(keys[6], (HIDDEN, size), size),
        "fc1_b": u(keys[7], (HIDDEN,), size),
        "fc2_w": u(keys[8], (n_actions, HIDDEN), HIDDEN),
        "fc2_b": u(keys[9], (n_actions,), HIDDEN),
    }


def prepare_params(params, input_shape, n_actions):
    """bf16 (K, N) weights in im2col (kh, kw, cin) row order with UNPADDED K,
    /255 folded into conv1, biases as (1, N) f32, final logits padded to 128
    lanes only."""
    C0, H, W = input_shape
    oh3, ow3 = conv_out_hw(H, W)

    def conv_w(w, scale=1.0):
        o, ci, kh, kw = w.shape
        wt = jnp.transpose(w, (2, 3, 1, 0)).reshape(kh * kw * ci, o)
        return (wt * scale).astype(jnp.bfloat16)

    # fc1: PyTorch flatten order is (c, h, w); the kernel flattens (h, w, c).
    f1 = params["fc1_w"].reshape(HIDDEN, 64, oh3, ow3)
    f1 = jnp.transpose(f1, (2, 3, 1, 0)).reshape(oh3 * ow3 * 64, HIDDEN)

    npad = _round_up(n_actions, LANE)
    f2 = jnp.pad(params["fc2_w"].T, ((0, 0), (0, npad - n_actions)))
    f2b = jnp.pad(params["fc2_b"], (0, npad - n_actions))

    return {
        "c1_w": conv_w(params["c1_w"], scale=1.0 / 255.0),
        "c1_b": params["c1_b"].reshape(1, -1).astype(jnp.float32),
        "c2_w": conv_w(params["c2_w"]),
        "c2_b": params["c2_b"].reshape(1, -1).astype(jnp.float32),
        "c3_w": conv_w(params["c3_w"]),
        "c3_b": params["c3_b"].reshape(1, -1).astype(jnp.float32),
        "fc1_w": f1.astype(jnp.bfloat16),
        "fc1_b": params["fc1_b"].reshape(1, -1).astype(jnp.float32),
        "fc2_w": f2.astype(jnp.bfloat16),
        "fc2_b": f2b.reshape(1, -1).astype(jnp.float32),
    }


# Pure-JAX f32 reference (PyTorch-layout params) for correctness checking.
def reference_forward(params, x_u8):
    x = x_u8.astype(jnp.float32) / 255.0

    def conv(h, w, b, s):
        y = jax.lax.conv_general_dilated(
            h, w, (s, s), "VALID", dimension_numbers=("NCHW", "OIHW", "NCHW"))
        return jnp.maximum(y + b[None, :, None, None], 0.0)

    h = conv(x, params["c1_w"], params["c1_b"], 4)
    h = conv(h, params["c2_w"], params["c2_b"], 2)
    h = conv(h, params["c3_w"], params["c3_b"], 1)
    flat = h.reshape(h.shape[0], -1)
    h = jnp.maximum(flat @ params["fc1_w"].T + params["fc1_b"], 0.0)
    return h @ params["fc2_w"].T + params["fc2_b"]


if __name__ == "__main__":
    key = jax.random.PRNGKey(0)
    input_shape = (4, 36, 36)   # small Atari-like frame stack (tower -> 1x1)
    n_actions = 6
    B = 2

    pkey, xkey = jax.random.split(key)
    params = init_params(pkey, input_shape, n_actions)
    prep = prepare_params(params, input_shape, n_actions)

    x = jax.random.randint(xkey, (B,) + input_shape, 0, 256,
                           dtype=jnp.int32).astype(jnp.uint8)

    fwd = jax.jit(make_forward(input_shape, n_actions))
    out = fwd(prep, x)
    jax.block_until_ready(out)
    assert out.shape == (B, n_actions), out.shape

    ref = reference_forward(params, x)
    np.testing.assert_allclose(np.asarray(out), np.asarray(ref),
                               rtol=2e-2, atol=2e-2)

    print("KERNEL_OK")
</pallas_src>

<mosaic_0001>
module attributes {stable_mosaic.version = 11 : i64} {
  func.func @kernel(%arg0: i32, %arg1: memref<1x64x256xbf16, #tpu.memory_space<vmem>>, %arg2: memref<256x32xbf16, #tpu.memory_space<vmem>>, %arg3: memref<1x32xf32, #tpu.memory_space<vmem>>, %arg4: memref<512x64xbf16, #tpu.memory_space<vmem>>, %arg5: memref<1x64xf32, #tpu.memory_space<vmem>>, %arg6: memref<576x64xbf16, #tpu.memory_space<vmem>>, %arg7: memref<1x64xf32, #tpu.memory_space<vmem>>, %arg8: memref<64x512xbf16, #tpu.memory_space<vmem>>, %arg9: memref<1x512xf32, #tpu.memory_space<vmem>>, %arg10: memref<512x128xbf16, #tpu.memory_space<vmem>>, %arg11: memref<1x128xf32, #tpu.memory_space<vmem>>, %arg12: memref<1x1x128xf32, #tpu.memory_space<vmem>>, %arg13: memref<8x256xf32, #tpu.memory_space<vmem>>, %arg14: memref<9x512xf32, #tpu.memory_space<vmem>>, %arg15: memref<3x192xf32, #tpu.memory_space<vmem>>, %arg16: memref<1x576xf32, #tpu.memory_space<vmem>>, %arg17: memref<1x64xf32, #tpu.memory_space<vmem>>) attributes {dimension_semantics = [#tpu.dimension_semantics<parallel>], iteration_bounds = array<i64: 2>, scalar_prefetch = 0 : i64, scratch_operands = 5 : i64, tpu.core_type = #tpu.core_type<tc>, window_params = [{transform_indices = @transform_0, window_bounds = array<i64: 1, 64, 256>}, {pipeline_mode = #tpu.pipeline_mode<synchronous>, transform_indices = @transform_1, window_bounds = array<i64: 256, 32>}, {pipeline_mode = #tpu.pipeline_mode<synchronous>, transform_indices = @transform_2, window_bounds = array<i64: 1, 32>}, {pipeline_mode = #tpu.pipeline_mode<synchronous>, transform_indices = @transform_3, window_bounds = array<i64: 512, 64>}, {pipeline_mode = #tpu.pipeline_mode<synchronous>, transform_indices = @transform_4, window_bounds = array<i64: 1, 64>}, {pipeline_mode = #tpu.pipeline_mode<synchronous>, transform_indices = @transform_5, window_bounds = array<i64: 576, 64>}, {pipeline_mode = #tpu.pipeline_mode<synchronous>, transform_indices = @transform_6, window_bounds = array<i64: 1, 64>}, {pipeline_mode = #tpu.pipeline_mode<synchronous>, transform_indices = @transform_7, window_bounds = array<i64: 64, 512>}, {pipeline_mode = #tpu.pipeline_mode<synchronous>, transform_indices = @transform_8, window_bounds = array<i64: 1, 512>}, {pipeline_mode = #tpu.pipeline_mode<synchronous>, transform_indices = @transform_9, window_bounds = array<i64: 512, 128>}, {pipeline_mode = #tpu.pipeline_mode<synchronous>, transform_indices = @transform_10, window_bounds = array<i64: 1, 128>}, {transform_indices = @transform_11, window_bounds = array<i64: 1, 1, 128>}]} {
    %c0 = arith.constant 0 : index
    %c0_0 = arith.constant 0 : index
    %c0_1 = arith.constant 0 : index
    %0 = vector.load %arg1[%c0, %c0_0, %c0_1] : memref<1x64x256xbf16, #tpu.memory_space<vmem>>, vector<1x64x256xbf16>
    %1 = vector.shape_cast %0 : vector<1x64x256xbf16> to vector<64x256xbf16>
    %c0_2 = arith.constant 0 : index
    %c0_3 = arith.constant 0 : index
    %2 = vector.load %arg2[%c0_2, %c0_3] : memref<256x32xbf16, #tpu.memory_space<vmem>>, vector<256x32xbf16>
    %cst = arith.constant dense<0.000000e+00> : vector<64x32xf32>
    %3 = tpu.matmul %1, %2, %cst {dimension_numbers = #tpu.dot_dimension_numbers<[1], [0], [0], [1], [0, 0, 1, 1], [], []>} : vector<64x256xbf16>, vector<256x32xbf16>, vector<64x32xf32> -> vector<64x32xf32>
    %c0_4 = arith.constant 0 : index
    %c0_5 = arith.constant 0 : index
    %4 = vector.load %arg3[%c0_4, %c0_5] : memref<1x32xf32, #tpu.memory_space<vmem>>, vector<1x32xf32>
    %5 = vector.broadcast %4 : vector<1x32xf32> to vector<64x32xf32>
    %6 = arith.addf %3, %5 : vector<64x32xf32>
    %cst_6 = arith.constant 0.000000e+00 : f32
    %7 = vector.broadcast %cst_6 : f32 to vector<64x32xf32>
    %8 = arith.maximumf %6, %7 : vector<64x32xf32>
    %9 = vector.extract_strided_slice %8 {offsets = [0, 0], sizes = [1, 32], strides = [1, 1]} : vector<64x32xf32> to vector<1x32xf32>
    %10 = vector.shape_cast %9 : vector<1x32xf32> to vector<32xf32>
    %c0_7 = arith.constant 0 : index
    %c0_8 = arith.constant 0 : index
    %11 = vector.load %arg13[%c0_7, %c0_8] : memref<8x256xf32, #tpu.memory_space<vmem>>, vector<1x32xf32>
    %12 = vector.shape_cast %11 : vector<1x32xf32> to vector<32xf32>
    %13 = vector.shape_cast %10 : vector<32xf32> to vector<1x32xf32>
    tpu.vector_store %arg13[%c0_7, %c0_8], %13 {strides = array<i32>} : memref<8x256xf32, #tpu.memory_space<vmem>>, vector<1x32xf32>,
    %14 = vector.extract_strided_slice %8 {offsets = [1, 0], sizes = [1, 32], strides = [1, 1]} : vector<64x32xf32> to vector<1x32xf32>
    %15 = vector.shape_cast %14 : vector<1x32xf32> to vector<32xf32>
    %c0_9 = arith.constant 0 : index
    %c32 = arith.constant 32 : index
    %16 = vector.load %arg13[%c0_9, %c32] : memref<8x256xf32, #tpu.memory_space<vmem>>, vector<1x32xf32>
    %17 = vector.shape_cast %16 : vector<1x32xf32> to vector<32xf32>
    %18 = vector.shape_cast %15 : vector<32xf32> to vector<1x32xf32>
    tpu.vector_store %arg13[%c0_9, %c32], %18 {strides = array<i32>} : memref<8x256xf32, #tpu.memory_space<vmem>>, vector<1x32xf32>,
    %19 = vector.extract_strided_slice %8 {offsets = [2, 0], sizes = [1, 32], strides = [1, 1]} : vector<64x32xf32> to vector<1x32xf32>
    %20 = vector.shape_cast %19 : vector<1x32xf32> to vector<32xf32>
    %c0_10 = arith.constant 0 : index
    %c64 = arith.constant 64 : index
    %21 = vector.load %arg13[%c0_10, %c64] : memref<8x256xf32, #tpu.memory_space<vmem>>, vector<1x32xf32>
    %22 = vector.shape_cast %21 : vector<1x32xf32> to vector<32xf32>
    %23 = vector.shape_cast %20 : vector<32xf32> to vector<1x32xf32>
    tpu.vector_store %arg13[%c0_10, %c64], %23 {strides = array<i32>} : memref<8x256xf32, #tpu.memory_space<vmem>>, vector<1x32xf32>,
    %24 = vector.extract_strided_slice %8 {offsets = [3, 0], sizes = [1, 32], strides = [1, 1]} : vector<64x32xf32> to vector<1x32xf32>
    %25 = vector.shape_cast %24 : vector<1x32xf32> to vector<32xf32>
    %c0_11 = arith.constant 0 : index
    %c96 = arith.constant 96 : index
    %26 = vector.load %arg13[%c0_11, %c96] : memref<8x256xf32, #tpu.memory_space<vmem>>, vector<1x32xf32>
    %27 = vector.shape_cast %26 : vector<1x32xf32> to vector<32xf32>
    %28 = vector.shape_cast %25 : vector<32xf32> to vector<1x32xf32>
    tpu.vector_store %arg13[%c0_11, %c96], %28 {strides = array<i32>} : memref<8x256xf32, #tpu.memory_space<vmem>>, vector<1x32xf32>,
    %29 = vector.extract_strided_slice %8 {offsets = [4, 0], sizes = [1, 32], strides = [1, 1]} : vector<64x32xf32> to vector<1x32xf32>
    %30 = vector.shape_cast %29 : vector<1x32xf32> to vector<32xf32>
    %c0_12 = arith.constant 0 : index
    %c128 = arith.constant 128 : index
    %31 = vector.load %arg13[%c0_12, %c128] : memref<8x256xf32, #tpu.memory_space<vmem>>, vector<1x32xf32>
    %32 = vector.shape_cast %31 : vector<1x32xf32> to vector<32xf32>
    %33 = vector.shape_cast %30 : vector<32xf32> to vector<1x32xf32>
    tpu.vector_store %arg13[%c0_12, %c128], %33 {strides = array<i32>} : memref<8x256xf32, #tpu.memory_space<vmem>>, vector<1x32xf32>,
    %34 = vector.extract_strided_slice %8 {offsets = [5, 0], sizes = [1, 32], strides = [1, 1]} : vector<64x32xf32> to vector<1x32xf32>
    %35 = vector.shape_cast %34 : vector<1x32xf32> to vector<32xf32>
    %c0_13 = arith.constant 0 : index
    %c160 = arith.constant 160 : index
    %36 = vector.load %arg13[%c0_13, %c160] : memref<8x256xf32, #tpu.memory_space<vmem>>, vector<1x32xf32>
    %37 = vector.shape_cast %36 : vector<1x32xf32> to vector<32xf32>
    %38 = vector.shape_cast %35 : vector<32xf32> to vector<1x32xf32>
    tpu.vector_store %arg13[%c0_13, %c160], %38 {strides = array<i32>} : memref<8x256xf32, #tpu.memory_space<vmem>>, vector<1x32xf32>,
    %39 = vector.extract_strided_slice %8 {offsets = [6, 0], sizes = [1, 32], strides = [1, 1]} : vector<64x32xf32> to vector<1x32xf32>
    %40 = vector.shape_cast %39 : vector<1x32xf32> to vector<32xf32>
    %c0_14 = arith.constant 0 : index
    %c192 = arith.constant 192 : index
    %41 = vector.load %arg13[%c0_14, %c192] : memref<8x256xf32, #tpu.memory_space<vmem>>, vector<1x32xf32>
    %42 = vector.shape_cast %41 : vector<1x32xf32> to vector<32xf32>
    %43 = vector.shape_cast %40 : vector<32xf32> to vector<1x32xf32>
    tpu.vector_store %arg13[%c0_14, %c192], %43 {strides = array<i32>} : memref<8x256xf32, #tpu.memory_space<vmem>>, vector<1x32xf32>,
    %44 = vector.extract_strided_slice %8 {offsets = [7, 0], sizes = [1, 32], strides = [1, 1]} : vector<64x32xf32> to vector<1x32xf32>
    %45 = vector.shape_cast %44 : vector<1x32xf32> to vector<32xf32>
    %c0_15 = arith.constant 0 : index
    %c224 = arith.constant 224 : index
    %46 = vector.load %arg13[%c0_15, %c224] : memref<8x256xf32, #tpu.memory_space<vmem>>, vector<1x32xf32>
    %47 = vector.shape_cast %46 : vector<1x32xf32> to vector<32xf32>
    %48 = vector.shape_cast %45 : vector<32xf32> to vector<1x32xf32>
    tpu.vector_store %arg13[%c0_15, %c224], %48 {strides = array<i32>} : memref<8x256xf32, #tpu.memory_space<vmem>>, vector<1x32xf32>,
    %49 = vector.extract_strided_slice %8 {offsets = [8, 0], sizes = [1, 32], strides = [1, 1]} : vector<64x32xf32> to vector<1x32xf32>
    %50 = vector.shape_cast %49 : vector<1x32xf32> to vector<32xf32>
    %c1 = arith.constant 1 : index
    %c0_16 = arith.constant 0 : index
    %51 = vector.load %arg13[%c1, %c0_16] : memref<8x256xf32, #tpu.memory_space<vmem>>, vector<1x32xf32>
    %52 = vector.shape_cast %51 : vector<1x32xf32> to vector<32xf32>
    %53 = vector.shape_cast %50 : vector<32xf32> to vector<1x32xf32>
    tpu.vector_store %arg13[%c1, %c0_16], %53 {strides = array<i32>} : memref<8x256xf32, #tpu.memory_space<vmem>>, vector<1x32xf32>,
    %54 = vector.extract_strided_slice %8 {offsets = [9, 0], sizes = [1, 32], strides = [1, 1]} : vector<64x32xf32> to vector<1x32xf32>
    %55 = vector.shape_cast %54 : vector<1x32xf32> to vector<32xf32>
    %c1_17 = arith.constant 1 : index
    %c32_18 = arith.constant 32 : index
    %56 = vector.load %arg13[%c1_17, %c32_18] : memref<8x256xf32, #tpu.memory_space<vmem>>, vector<1x32xf32>
    %57 = vector.shape_cast %56 : vector<1x32xf32> to vector<32xf32>
    %58 = vector.shape_cast %55 : vector<32xf32> to vector<1x32xf32>
    tpu.vector_store %arg13[%c1_17, %c32_18], %58 {strides = array<i32>} : memref<8x256xf32, #tpu.memory_space<vmem>>, vector<1x32xf32>,
    %59 = vector.extract_strided_slice %8 {offsets = [10, 0], sizes = [1, 32], strides = [1, 1]} : vector<64x32xf32> to vector<1x32xf32>
    %60 = vector.shape_cast %59 : vector<1x32xf32> to vector<32xf32>
    %c1_19 = arith.constant 1 : index
    %c64_20 = arith.constant 64 : index
    %61 = vector.load %arg13[%c1_19, %c64_20] : memref<8x256xf32, #tpu.memory_space<vmem>>, vector<1x32xf32>
    %62 = vector.shape_cast %61 : vector<1x32xf32> to vector<32xf32>
    %63 = vector.shape_cast %60 : vector<32xf32> to vector<1x32xf32>
    tpu.vector_store %arg13[%c1_19, %c64_20], %63 {strides = array<i32>} : memref<8x256xf32, #tpu.memory_space<vmem>>, vector<1x32xf32>,
    %64 = vector.extract_strided_slice %8 {offsets = [11, 0], sizes = [1, 32], strides = [1, 1]} : vector<64x32xf32> to vector<1x32xf32>
    %65 = vector.shape_cast %64 : vector<1x32xf32> to vector<32xf32>
    %c1_21 = arith.constant 1 : index
    %c96_22 = arith.constant 96 : index
    %66 = vector.load %arg13[%c1_21, %c96_22] : memref<8x256xf32, #tpu.memory_space<vmem>>, vector<1x32xf32>
    %67 = vector.shape_cast %66 : vector<1x32xf32> to vector<32xf32>
    %68 = vector.shape_cast %65 : vector<32xf32> to vector<1x32xf32>
    tpu.vector_store %arg13[%c1_21, %c96_22], %68 {strides = array<i32>} : memref<8x256xf32, #tpu.memory_space<vmem>>, vector<1x32xf32>,
    %69 = vector.extract_strided_slice %8 {offsets = [12, 0], sizes = [1, 32], strides = [1, 1]} : vector<64x32xf32> to vector<1x32xf32>
    %70 = vector.shape_cast %69 : vector<1x32xf32> to vector<32xf32>
    %c1_23 = arith.constant 1 : index
    %c128_24 = arith.constant 128 : index
    %71 = vector.load %arg13[%c1_23, %c128_24] : memref<8x256xf32, #tpu.memory_space<vmem>>, vector<1x32xf32>
    %72 = vector.shape_cast %71 : vector<1x32xf32> to vector<32xf32>
    %73 = vector.shape_cast %70 : vector<32xf32> to vector<1x32xf32>
    tpu.vector_store %arg13[%c1_23, %c128_24], %73 {strides = array<i32>} : memref<8x256xf32, #tpu.memory_space<vmem>>, vector<1x32xf32>,
    %74 = vector.extract_strided_slice %8 {offsets = [13, 0], sizes = [1, 32], strides = [1, 1]} : vector<64x32xf32> to vector<1x32xf32>
    %75 = vector.shape_cast %74 : vector<1x32xf32> to vector<32xf32>
    %c1_25 = arith.constant 1 : index
    %c160_26 = arith.constant 160 : index
    %76 = vector.load %arg13[%c1_25, %c160_26] : memref<8x256xf32, #tpu.memory_space<vmem>>, vector<1x32xf32>
    %77 = vector.shape_cast %76 : vector<1x32xf32> to vector<32xf32>
    %78 = vector.shape_cast %75 : vector<32xf32> to vector<1x32xf32>
    tpu.vector_store %arg13[%c1_25, %c160_26], %78 {strides = array<i32>} : memref<8x256xf32, #tpu.memory_space<vmem>>, vector<1x32xf32>,
    %79 = vector.extract_strided_slice %8 {offsets = [14, 0], sizes = [1, 32], strides = [1, 1]} : vector<64x32xf32> to vector<1x32xf32>
    %80 = vector.shape_cast %79 : vector<1x32xf32> to vector<32xf32>
    %c1_27 = arith.constant 1 : index
    %c192_28 = arith.constant 192 : index
    %81 = vector.load %arg13[%c1_27, %c192_28] : memref<8x256xf32, #tpu.memory_space<vmem>>, vector<1x32xf32>
    %82 = vector.shape_cast %81 : vector<1x32xf32> to vector<32xf32>
    %83 = vector.shape_cast %80 : vector<32xf32> to vector<1x32xf32>
    tpu.vector_store %arg13[%c1_27, %c192_28], %83 {strides = array<i32>} : memref<8x256xf32, #tpu.memory_space<vmem>>, vector<1x32xf32>,
    %84 = vector.extract_strided_slice %8 {offsets = [15, 0], sizes = [1, 32], strides = [1, 1]} : vector<64x32xf32> to vector<1x32xf32>
    %85 = vector.shape_cast %84 : vector<1x32xf32> to vector<32xf32>
    %c1_29 = arith.constant 1 : index
    %c224_30 = arith.constant 224 : index
    %86 = vector.load %arg13[%c1_29, %c224_30] : memref<8x256xf32, #tpu.memory_space<vmem>>, vector<1x32xf32>
    %87 = vector.shape_cast %86 : vector<1x32xf32> to vector<32xf32>
    %88 = vector.shape_cast %85 : vector<32xf32> to vector<1x32xf32>
    tpu.vector_store %arg13[%c1_29, %c224_30], %88 {strides = array<i32>} : memref<8x256xf32, #tpu.memory_space<vmem>>, vector<1x32xf32>,
    %89 = vector.extract_strided_slice %8 {offsets = [16, 0], sizes = [1, 32], strides = [1, 1]} : vector<64x32xf32> to vector<1x32xf32>
    %90 = vector.shape_cast %89 : vector<1x32xf32> to vector<32xf32>
    %c2 = arith.constant 2 : index
    %c0_31 = arith.constant 0 : index
    %91 = vector.load %arg13[%c2, %c0_31] : memref<8x256xf32, #tpu.memory_space<vmem>>, vector<1x32xf32>
    %92 = vector.shape_cast %91 : vector<1x32xf32> to vector<32xf32>
    %93 = vector.shape_cast %90 : vector<32xf32> to vector<1x32xf32>
    tpu.vector_store %arg13[%c2, %c0_31], %93 {strides = array<i32>} : memref<8x256xf32, #tpu.memory_space<vmem>>, vector<1x32xf32>,
    %94 = vector.extract_strided_slice %8 {offsets = [17, 0], sizes = [1, 32], strides = [1, 1]} : vector<64x32xf32> to vector<1x32xf32>
    %95 = vector.shape_cast %94 : vector<1x32xf32> to vector<32xf32>
    %c2_32 = arith.constant 2 : index
    %c32_33 = arith.constant 32 : index
    %96 = vector.load %arg13[%c2_32, %c32_33] : memref<8x256xf32, #tpu.memory_space<vmem>>, vector<1x32xf32>
    %97 = vector.shape_cast %96 : vector<1x32xf32> to vector<32xf32>
    %98 = vector.shape_cast %95 : vector<32xf32> to vector<1x32xf32>
    tpu.vector_store %arg13[%c2_32, %c32_33], %98 {strides = array<i32>} : memref<8x256xf32, #tpu.memory_space<vmem>>, vector<1x32xf32>,
    %99 = vector.extract_strided_slice %8 {offsets = [18, 0], sizes = [1, 32], strides = [1, 1]} : vector<64x32xf32> to vector<1x32xf32>
    %100 = vector.shape_cast %99 : vector<1x32xf32> to vector<32xf32>
    %c2_34 = arith.constant 2 : index
    %c64_35 = arith.constant 64 : index
    %101 = vector.load %arg13[%c2_34, %c64_35] : memref<8x256xf32, #tpu.memory_space<vmem>>, vector<1x32xf32>
    %102 = vector.shape_cast %101 : vector<1x32xf32> to vector<32xf32>
    %103 = vector.shape_cast %100 : vector<32xf32> to vector<1x32xf32>
    tpu.vector_store %arg13[%c2_34, %c64_35], %103 {strides = array<i32>} : memref<8x256xf32, #tpu.memory_space<vmem>>, vector<1x32xf32>,
    %104 = vector.extract_strided_slice %8 {offsets = [19, 0], sizes = [1, 32], strides = [1, 1]} : vector<64x32xf32> to vector<1x32xf32>
    %105 = vector.shape_cast %104 : vector<1x32xf32> to vector<32xf32>
    %c2_36 = arith.constant 2 : index
    %c96_37 = arith.constant 96 : index
    %106 = vector.load %arg13[%c2_36, %c96_37] : memref<8x256xf32, #tpu.memory_space<vmem>>, vector<1x32xf32>
    %107 = vector.shape_cast %106 : vector<1x32xf32> to vector<32xf32>
    %108 = vector.shape_cast %105 : vector<32xf32> to vector<1x32xf32>
    tpu.vector_store %arg13[%c2_36, %c96_37], %108 {strides = array<i32>} : memref<8x256xf32, #tpu.memory_space<vmem>>, vector<1x32xf32>,
    %109 = vector.extract_strided_slice %8 {offsets = [20, 0], sizes = [1, 32], strides = [1, 1]} : vector<64x32xf32> to vector<1x32xf32>
    %110 = vector.shape_cast %109 : vector<1x32xf32> to vector<32xf32>
    %c2_38 = arith.constant 2 : index
    %c128_39 = arith.constant 128 : index
    %111 = vector.load %arg13[%c2_38, %c128_39] : memref<8x256xf32, #tpu.memory_space<vmem>>, vector<1x32xf32>
    %112 = vector.shape_cast %111 : vector<1x32xf32> to vector<32xf32>
    %113 = vector.shape_cast %110 : vector<32xf32> to vector<1x32xf32>
    tpu.vector_store %arg13[%c2_38, %c128_39], %113 {strides = array<i32>} : memref<8x256xf32, #tpu.memory_space<vmem>>, vector<1x32xf32>,
    %114 = vector.extract_strided_slice %8 {offsets = [21, 0], sizes = [1, 32], strides = [1, 1]} : vector<64x32xf32> to vector<1x32xf32>
    %115 = vector.shape_cast %114 : vector<1x32xf32> to vector<32xf32>
    %c2_40 = arith.constant 2 : index
    %c160_41 = arith.constant 160 : index
    %116 = vector.load %arg13[%c2_40, %c160_41] : memref<8x256xf32, #tpu.memory_space<vmem>>, vector<1x32xf32>
    %117 = vector.shape_cast %116 : vector<1x32xf32> to vector<32xf32>
    %118 = vector.shape_cast %115 : vector<32xf32> to vector<1x32xf32>
    tpu.vector_store %arg13[%c2_40, %c160_41], %118 {strides = array<i32>} : memref<8x256xf32, #tpu.memory_space<vmem>>, vector<1x32xf32>,
    %119 = vector.extract_strided_slice %8 {offsets = [22, 0], sizes = [1, 32], strides = [1, 1]} : vector<64x32xf32> to vector<1x32xf32>
    %120 = vector.shape_cast %119 : vector<1x32xf32> to vector<32xf32>
    %c2_42 = arith.constant 2 : index
    %c192_43 = arith.constant 192 : index
    %121 = vector.load %arg13[%c2_42, %c192_43] : memref<8x256xf32, #tpu.memory_space<vmem>>, vector<1x32xf32>
    %122 = vector.shape_cast %121 : vector<1x32xf32> to vector<32xf32>
    %123 = vector.shape_cast %120 : vector<32xf32> to vector<1x32xf32>
    tpu.vector_store %arg13[%c2_42, %c192_43], %123 {strides = array<i32>} : memref<8x256xf32, #tpu.memory_space<vmem>>, vector<1x32xf32>,
    %124 = vector.extract_strided_slice %8 {offsets = [23, 0], sizes = [1, 32], strides = [1, 1]} : vector<64x32xf32> to vector<1x32xf32>
    %125 = vector.shape_cast %124 : vector<1x32xf32> to vector<32xf32>
    %c2_44 = arith.constant 2 : index
    %c224_45 = arith.constant 224 : index
    %126 = vector.load %arg13[%c2_44, %c224_45] : memref<8x256xf32, #tpu.memory_space<vmem>>, vector<1x32xf32>
    %127 = vector.shape_cast %126 : vector<1x32xf32> to vector<32xf32>
    %128 = vector.shape_cast %125 : vector<32xf32> to vector<1x32xf32>
    tpu.vector_store %arg13[%c2_44, %c224_45], %128 {strides = array<i32>} : memref<8x256xf32, #tpu.memory_space<vmem>>, vector<1x32xf32>,
    %129 = vector.extract_strided_slice %8 {offsets = [24, 0], sizes = [1, 32], strides = [1, 1]} : vector<64x32xf32> to vector<1x32xf32>
    %130 = vector.shape_cast %129 : vector<1x32xf32> to vector<32xf32>
    %c3 = arith.constant 3 : index
    %c0_46 = arith.constant 0 : index
    %131 = vector.load %arg13[%c3, %c0_46] : memref<8x256xf32, #tpu.memory_space<vmem>>, vector<1x32xf32>
    %132 = vector.shape_cast %131 : vector<1x32xf32> to vector<32xf32>
    %133 = vector.shape_cast %130 : vector<32xf32> to vector<1x32xf32>
    tpu.vector_store %arg13[%c3, %c0_46], %133 {strides = array<i32>} : memref<8x256xf32, #tpu.memory_space<vmem>>, vector<1x32xf32>,
    %134 = vector.extract_strided_slice %8 {offsets = [25, 0], sizes = [1, 32], strides = [1, 1]} : vector<64x32xf32> to vector<1x32xf32>
    %135 = vector.shape_cast %134 : vector<1x32xf32> to vector<32xf32>
    %c3_47 = arith.constant 3 : index
    %c32_48 = arith.constant 32 : index
    %136 = vector.load %arg13[%c3_47, %c32_48] : memref<8x256xf32, #tpu.memory_space<vmem>>, vector<1x32xf32>
    %137 = vector.shape_cast %136 : vector<1x32xf32> to vector<32xf32>
    %138 = vector.shape_cast %135 : vector<32xf32> to vector<1x32xf32>
    tpu.vector_store %arg13[%c3_47, %c32_48], %138 {strides = array<i32>} : memref<8x256xf32, #tpu.memory_space<vmem>>, vector<1x32xf32>,
    %139 = vector.extract_strided_slice %8 {offsets = [26, 0], sizes = [1, 32], strides = [1, 1]} : vector<64x32xf32> to vector<1x32xf32>
    %140 = vector.shape_cast %139 : vector<1x32xf32> to vector<32xf32>
    %c3_49 = arith.constant 3 : index
    %c64_50 = arith.constant 64 : index
    %141 = vector.load %arg13[%c3_49, %c64_50] : memref<8x256xf32, #tpu.memory_space<vmem>>, vector<1x32xf32>
    %142 = vector.shape_cast %141 : vector<1x32xf32> to vector<32xf32>
    %143 = vector.shape_cast %140 : vector<32xf32> to vector<1x32xf32>
    tpu.vector_store %arg13[%c3_49, %c64_50], %143 {strides = array<i32>} : memref<8x256xf32, #tpu.memory_space<vmem>>, vector<1x32xf32>,
    %144 = vector.extract_strided_slice %8 {offsets = [27, 0], sizes = [1, 32], strides = [1, 1]} : vector<64x32xf32> to vector<1x32xf32>
    %145 = vector.shape_cast %144 : vector<1x32xf32> to vector<32xf32>
    %c3_51 = arith.constant 3 : index
    %c96_52 = arith.constant 96 : index
    %146 = vector.load %arg13[%c3_51, %c96_52] : memref<8x256xf32, #tpu.memory_space<vmem>>, vector<1x32xf32>
    %147 = vector.shape_cast %146 : vector<1x32xf32> to vector<32xf32>
    %148 = vector.shape_cast %145 : vector<32xf32> to vector<1x32xf32>
    tpu.vector_store %arg13[%c3_51, %c96_52], %148 {strides = array<i32>} : memref<8x256xf32, #tpu.memory_space<vmem>>, vector<1x32xf32>,
    %149 = vector.extract_strided_slice %8 {offsets = [28, 0], sizes = [1, 32], strides = [1, 1]} : vector<64x32xf32> to vector<1x32xf32>
    %150 = vector.shape_cast %149 : vector<1x32xf32> to vector<32xf32>
    %c3_53 = arith.constant 3 : index
    %c128_54 = arith.constant 128 : index
    %151 = vector.load %arg13[%c3_53, %c128_54] : memref<8x256xf32, #tpu.memory_space<vmem>>, vector<1x32xf32>
    %152 = vector.shape_cast %151 : vector<1x32xf32> to vector<32xf32>
    %153 = vector.shape_cast %150 : vector<32xf32> to vector<1x32xf32>
    tpu.vector_store %arg13[%c3_53, %c128_54], %153 {strides = array<i32>} : memref<8x256xf32, #tpu.memory_space<vmem>>, vector<1x32xf32>,
    %154 = vector.extract_strided_slice %8 {offsets = [29, 0], sizes = [1, 32], strides = [1, 1]} : vector<64x32xf32> to vector<1x32xf32>
    %155 = vector.shape_cast %154 : vector<1x32xf32> to vector<32xf32>
    %c3_55 = arith.constant 3 : index
    %c160_56 = arith.constant 160 : index
    %156 = vector.load %arg13[%c3_55, %c160_56] : memref<8x256xf32, #tpu.memory_space<vmem>>, vector<1x32xf32>
    %157 = vector.shape_cast %156 : vector<1x32xf32> to vector<32xf32>
    %158 = vector.shape_cast %155 : vector<32xf32> to vector<1x32xf32>
    tpu.vector_store %arg13[%c3_55, %c160_56], %158 {strides = array<i32>} : memref<8x256xf32, #tpu.memory_space<vmem>>, vector<1x32xf32>,
    %159 = vector.extract_strided_slice %8 {offsets = [30, 0], sizes = [1, 32], strides = [1, 1]} : vector<64x32xf32> to vector<1x32xf32>
    %160 = vector.shape_cast %159 : vector<1x32xf32> to vector<32xf32>
    %c3_57 = arith.constant 3 : index
    %c192_58 = arith.constant 192 : index
    %161 = vector.load %arg13[%c3_57, %c192_58] : memref<8x256xf32, #tpu.memory_space<vmem>>, vector<1x32xf32>
    %162 = vector.shape_cast %161 : vector<1x32xf32> to vector<32xf32>
    %163 = vector.shape_cast %160 : vector<32xf32> to vector<1x32xf32>
    tpu.vector_store %arg13[%c3_57, %c192_58], %163 {strides = array<i32>} : memref<8x256xf32, #tpu.memory_space<vmem>>, vector<1x32xf32>,
    %164 = vector.extract_strided_slice %8 {offsets = [31, 0], sizes = [1, 32], strides = [1, 1]} : vector<64x32xf32> to vector<1x32xf32>
    %165 = vector.shape_cast %164 : vector<1x32xf32> to vector<32xf32>
    %c3_59 = arith.constant 3 : index
    %c224_60 = arith.constant 224 : index
    %166 = vector.load %arg13[%c3_59, %c224_60] : memref<8x256xf32, #tpu.memory_space<vmem>>, vector<1x32xf32>
    %167 = vector.shape_cast %166 : vector<1x32xf32> to vector<32xf32>
    %168 = vector.shape_cast %165 : vector<32xf32> to vector<1x32xf32>
    tpu.vector_store %arg13[%c3_59, %c224_60], %168 {strides = array<i32>} : memref<8x256xf32, #tpu.memory_space<vmem>>, vector<1x32xf32>,
    %169 = vector.extract_strided_slice %8 {offsets = [32, 0], sizes = [1, 32], strides = [1, 1]} : vector<64x32xf32> to vector<1x32xf32>
    %170 = vector.shape_cast %169 : vector<1x32xf32> to vector<32xf32>
    %c4 = arith.constant 4 : index
    %c0_61 = arith.constant 0 : index
    %171 = vector.load %arg13[%c4, %c0_61] : memref<8x256xf32, #tpu.memory_space<vmem>>, vector<1x32xf32>
    %172 = vector.shape_cast %171 : vector<1x32xf32> to vector<32xf32>
    %173 = vector.shape_cast %170 : vector<32xf32> to vector<1x32xf32>
    tpu.vector_store %arg13[%c4, %c0_61], %173 {strides = array<i32>} : memref<8x256xf32, #tpu.memory_space<vmem>>, vector<1x32xf32>,
    %174 = vector.extract_strided_slice %8 {offsets = [33, 0], sizes = [1, 32], strides = [1, 1]} : vector<64x32xf32> to vector<1x32xf32>
    %175 = vector.shape_cast %174 : vector<1x32xf32> to vector<32xf32>
    %c4_62 = arith.constant 4 : index
    %c32_63 = arith.constant 32 : index
    %176 = vector.load %arg13[%c4_62, %c32_63] : memref<8x256xf32, #tpu.memory_space<vmem>>, vector<1x32xf32>
    %177 = vector.shape_cast %176 : vector<1x32xf32> to vector<32xf32>
    %178 = vector.shape_cast %175 : vector<32xf32> to vector<1x32xf32>
    tpu.vector_store %arg13[%c4_62, %c32_63], %178 {strides = array<i32>} : memref<8x256xf32, #tpu.memory_space<vmem>>, vector<1x32xf32>,
    %179 = vector.extract_strided_slice %8 {offsets = [34, 0], sizes = [1, 32], strides = [1, 1]} : vector<64x32xf32> to vector<1x32xf32>
    %180 = vector.shape_cast %179 : vector<1x32xf32> to vector<32xf32>
    %c4_64 = arith.constant 4 : index
    %c64_65 = arith.constant 64 : index
    %181 = vector.load %arg13[%c4_64, %c64_65] : memref<8x256xf32, #tpu.memory_space<vmem>>, vector<1x32xf32>
    %182 = vector.shape_cast %181 : vector<1x32xf32> to vector<32xf32>
    %183 = vector.shape_cast %180 : vector<32xf32> to vector<1x32xf32>
    tpu.vector_store %arg13[%c4_64, %c64_65], %183 {strides = array<i32>} : memref<8x256xf32, #tpu.memory_space<vmem>>, vector<1x32xf32>,
    %184 = vector.extract_strided_slice %8 {offsets = [35, 0], sizes = [1, 32], strides = [1, 1]} : vector<64x32xf32> to vector<1x32xf32>
    %185 = vector.shape_cast %184 : vector<1x32xf32> to vector<32xf32>
    %c4_66 = arith.constant 4 : index
    %c96_67 = arith.constant 96 : index
    %186 = vector.load %arg13[%c4_66, %c96_67] : memref<8x256xf32, #tpu.memory_space<vmem>>, vector<1x32xf32>
    %187 = vector.shape_cast %186 : vector<1x32xf32> to vector<32xf32>
    %188 = vector.shape_cast %185 : vector<32xf32> to vector<1x32xf32>
    tpu.vector_store %arg13[%c4_66, %c96_67], %188 {strides = array<i32>} : memref<8x256xf32, #tpu.memory_space<vmem>>, vector<1x32xf32>,
    %189 = vector.extract_strided_slice %8 {offsets = [36, 0], sizes = [1, 32], strides = [1, 1]} : vector<64x32xf32> to vector<1x32xf32>
    %190 = vector.shape_cast %189 : vector<1x32xf32> to vector<32xf32>
    %c4_68 = arith.constant 4 : index
    %c128_69 = arith.constant 128 : index
    %191 = vector.load %arg13[%c4_68, %c128_69] : memref<8x256xf32, #tpu.memory_space<vmem>>, vector<1x32xf32>
    %192 = vector.shape_cast %191 : vector<1x32xf32> to vector<32xf32>
    %193 = vector.shape_cast %190 : vector<32xf32> to vector<1x32xf32>
    tpu.vector_store %arg13[%c4_68, %c128_69], %193 {strides = array<i32>} : memref<8x256xf32, #tpu.memory_space<vmem>>, vector<1x32xf32>,
    %194 = vector.extract_strided_slice %8 {offsets = [37, 0], sizes = [1, 32], strides = [1, 1]} : vector<64x32xf32> to vector<1x32xf32>
    %195 = vector.shape_cast %194 : vector<1x32xf32> to vector<32xf32>
    %c4_70 = arith.constant 4 : index
    %c160_71 = arith.constant 160 : index
    %196 = vector.load %arg13[%c4_70, %c160_71] : memref<8x256xf32, #tpu.memory_space<vmem>>, vector<1x32xf32>
    %197 = vector.shape_cast %196 : vector<1x32xf32> to vector<32xf32>
    %198 = vector.shape_cast %195 : vector<32xf32> to vector<1x32xf32>
    tpu.vector_store %arg13[%c4_70, %c160_71], %198 {strides = array<i32>} : memref<8x256xf32, #tpu.memory_space<vmem>>, vector<1x32xf32>,
    %199 = vector.extract_strided_slice %8 {offsets = [38, 0], sizes = [1, 32], strides = [1, 1]} : vector<64x32xf32> to vector<1x32xf32>
    %200 = vector.shape_cast %199 : vector<1x32xf32> to vector<32xf32>
    %c4_72 = arith.constant 4 : index
    %c192_73 = arith.constant 192 : index
    %201 = vector.load %arg13[%c4_72, %c192_73] : memref<8x256xf32, #tpu.memory_space<vmem>>, vector<1x32xf32>
    %202 = vector.shape_cast %201 : vector<1x32xf32> to vector<32xf32>
    %203 = vector.shape_cast %200 : vector<32xf32> to vector<1x32xf32>
    tpu.vector_store %arg13[%c4_72, %c192_73], %203 {strides = array<i32>} : memref<8x256xf32, #tpu.memory_space<vmem>>, vector<1x32xf32>,
    %204 = vector.extract_strided_slice %8 {offsets = [39, 0], sizes = [1, 32], strides = [1, 1]} : vector<64x32xf32> to vector<1x32xf32>
    %205 = vector.shape_cast %204 : vector<1x32xf32> to vector<32xf32>
    %c4_74 = arith.constant 4 : index
    %c224_75 = arith.constant 224 : index
    %206 = vector.load %arg13[%c4_74, %c224_75] : memref<8x256xf32, #tpu.memory_space<vmem>>, vector<1x32xf32>
    %207 = vector.shape_cast %206 : vector<1x32xf32> to vector<32xf32>
    %208 = vector.shape_cast %205 : vector<32xf32> to vector<1x32xf32>
    tpu.vector_store %arg13[%c4_74, %c224_75], %208 {strides = array<i32>} : memref<8x256xf32, #tpu.memory_space<vmem>>, vector<1x32xf32>,
    %209 = vector.extract_strided_slice %8 {offsets = [40, 0], sizes = [1, 32], strides = [1, 1]} : vector<64x32xf32> to vector<1x32xf32>
    %210 = vector.shape_cast %209 : vector<1x32xf32> to vector<32xf32>
    %c5 = arith.constant 5 : index
    %c0_76 = arith.constant 0 : index
    %211 = vector.load %arg13[%c5, %c0_76] : memref<8x256xf32, #tpu.memory_space<vmem>>, vector<1x32xf32>
    %212 = vector.shape_cast %211 : vector<1x32xf32> to vector<32xf32>
    %213 = vector.shape_cast %210 : vector<32xf32> to vector<1x32xf32>
    tpu.vector_store %arg13[%c5, %c0_76], %213 {strides = array<i32>} : memref<8x256xf32, #tpu.memory_space<vmem>>, vector<1x32xf32>,
    %214 = vector.extract_strided_slice %8 {offsets = [41, 0], sizes = [1, 32], strides = [1, 1]} : vector<64x32xf32> to vector<1x32xf32>
    %215 = vector.shape_cast %214 : vector<1x32xf32> to vector<32xf32>
    %c5_77 = arith.constant 5 : index
    %c32_78 = arith.constant 32 : index
    %216 = vector.load %arg13[%c5_77, %c32_78] : memref<8x256xf32, #tpu.memory_space<vmem>>, vector<1x32xf32>
    %217 = vector.shape_cast %216 : vector<1x32xf32> to vector<32xf32>
    %218 = vector.shape_cast %215 : vector<32xf32> to vector<1x32xf32>
    tpu.vector_store %arg13[%c5_77, %c32_78], %218 {strides = array<i32>} : memref<8x256xf32, #tpu.memory_space<vmem>>, vector<1x32xf32>,
    %219 = vector.extract_strided_slice %8 {offsets = [42, 0], sizes = [1, 32], strides = [1, 1]} : vector<64x32xf32> to vector<1x32xf32>
    %220 = vector.shape_cast %219 : vector<1x32xf32> to vector<32xf32>
    %c5_79 = arith.constant 5 : index
    %c64_80 = arith.constant 64 : index
    %221 = vector.load %arg13[%c5_79, %c64_80] : memref<8x256xf32, #tpu.memory_space<vmem>>, vector<1x32xf32>
    %222 = vector.shape_cast %221 : vector<1x32xf32> to vector<32xf32>
    %223 = vector.shape_cast %220 : vector<32xf32> to vector<1x32xf32>
    tpu.vector_store %arg13[%c5_79, %c64_80], %223 {strides = array<i32>} : memref<8x256xf32, #tpu.memory_space<vmem>>, vector<1x32xf32>,
    %224 = vector.extract_strided_slice %8 {offsets = [43, 0], sizes = [1, 32], strides = [1, 1]} : vector<64x32xf32> to vector<1x32xf32>
    %225 = vector.shape_cast %224 : vector<1x32xf32> to vector<32xf32>
    %c5_81 = arith.constant 5 : index
    %c96_82 = arith.constant 96 : index
    %226 = vector.load %arg13[%c5_81, %c96_82] : memref<8x256xf32, #tpu.memory_space<vmem>>, vector<1x32xf32>
    %227 = vector.shape_cast %226 : vector<1x32xf32> to vector<32xf32>
    %228 = vector.shape_cast %225 : vector<32xf32> to vector<1x32xf32>
    tpu.vector_store %arg13[%c5_81, %c96_82], %228 {strides = array<i32>} : memref<8x256xf32, #tpu.memory_space<vmem>>, vector<1x32xf32>,
    %229 = vector.extract_strided_slice %8 {offsets = [44, 0], sizes = [1, 32], strides = [1, 1]} : vector<64x32xf32> to vector<1x32xf32>
    %230 = vector.shape_cast %229 : vector<1x32xf32> to vector<32xf32>
    %c5_83 = arith.constant 5 : index
    %c128_84 = arith.constant 128 : index
    %231 = vector.load %arg13[%c5_83, %c128_84] : memref<8x256xf32, #tpu.memory_space<vmem>>, vector<1x32xf32>
    %232 = vector.shape_cast %231 : vector<1x32xf32> to vector<32xf32>
    %233 = vector.shape_cast %230 : vector<32xf32> to vector<1x32xf32>
    tpu.vector_store %arg13[%c5_83, %c128_84], %233 {strides = array<i32>} : memref<8x256xf32, #tpu.memory_space<vmem>>, vector<1x32xf32>,
    %234 = vector.extract_strided_slice %8 {offsets = [45, 0], sizes = [1, 32], strides = [1, 1]} : vector<64x32xf32> to vector<1x32xf32>
    %235 = vector.shape_cast %234 : vector<1x32xf32> to vector<32xf32>
    %c5_85 = arith.constant 5 : index
    %c160_86 = arith.constant 160 : index
    %236 = vector.load %arg13[%c5_85, %c160_86] : memref<8x256xf32, #tpu.memory_space<vmem>>, vector<1x32xf32>
    %237 = vector.shape_cast %236 : vector<1x32xf32> to vector<32xf32>
    %238 = vector.shape_cast %235 : vector<32xf32> to vector<1x32xf32>
    tpu.vector_store %arg13[%c5_85, %c160_86], %238 {strides = array<i32>} : memref<8x256xf32, #tpu.memory_space<vmem>>, vector<1x32xf32>,
    %239 = vector.extract_strided_slice %8 {offsets = [46, 0], sizes = [1, 32], strides = [1, 1]} : vector<64x32xf32> to vector<1x32xf32>
    %240 = vector.shape_cast %239 : vector<1x32xf32> to vector<32xf32>
    %c5_87 = arith.constant 5 : index
    %c192_88 = arith.constant 192 : index
    %241 = vector.load %arg13[%c5_87, %c192_88] : memref<8x256xf32, #tpu.memory_space<vmem>>, vector<1x32xf32>
    %242 = vector.shape_cast %241 : vector<1x32xf32> to vector<32xf32>
    %243 = vector.shape_cast %240 : vector<32xf32> to vector<1x32xf32>
    tpu.vector_store %arg13[%c5_87, %c192_88], %243 {strides = array<i32>} : memref<8x256xf32, #tpu.memory_space<vmem>>, vector<1x32xf32>,
    %244 = vector.extract_strided_slice %8 {offsets = [47, 0], sizes = [1, 32], strides = [1, 1]} : vector<64x32xf32> to vector<1x32xf32>
    %245 = vector.shape_cast %244 : vector<1x32xf32> to vector<32xf32>
    %c5_89 = arith.constant 5 : index
    %c224_90 = arith.constant 224 : index
    %246 = vector.load %arg13[%c5_89, %c224_90] : memref<8x256xf32, #tpu.memory_space<vmem>>, vector<1x32xf32>
    %247 = vector.shape_cast %246 : vector<1x32xf32> to vector<32xf32>
    %248 = vector.shape_cast %245 : vector<32xf32> to vector<1x32xf32>
    tpu.vector_store %arg13[%c5_89, %c224_90], %248 {strides = array<i32>} : memref<8x256xf32, #tpu.memory_space<vmem>>, vector<1x32xf32>,
    %249 = vector.extract_strided_slice %8 {offsets = [48, 0], sizes = [1, 32], strides = [1, 1]} : vector<64x32xf32> to vector<1x32xf32>
    %250 = vector.shape_cast %249 : vector<1x32xf32> to vector<32xf32>
    %c6 = arith.constant 6 : index
    %c0_91 = arith.constant 0 : index
    %251 = vector.load %arg13[%c6, %c0_91] : memref<8x256xf32, #tpu.memory_space<vmem>>, vector<1x32xf32>
    %252 = vector.shape_cast %251 : vector<1x32xf32> to vector<32xf32>
    %253 = vector.shape_cast %250 : vector<32xf32> to vector<1x32xf32>
    tpu.vector_store %arg13[%c6, %c0_91], %253 {strides = array<i32>} : memref<8x256xf32, #tpu.memory_space<vmem>>, vector<1x32xf32>,
    %254 = vector.extract_strided_slice %8 {offsets = [49, 0], sizes = [1, 32], strides = [1, 1]} : vector<64x32xf32> to vector<1x32xf32>
    %255 = vector.shape_cast %254 : vector<1x32xf32> to vector<32xf32>
    %c6_92 = arith.constant 6 : index
    %c32_93 = arith.constant 32 : index
    %256 = vector.load %arg13[%c6_92, %c32_93] : memref<8x256xf32, #tpu.memory_space<vmem>>, vector<1x32xf32>
    %257 = vector.shape_cast %256 : vector<1x32xf32> to vector<32xf32>
    %258 = vector.shape_cast %255 : vector<32xf32> to vector<1x32xf32>
    tpu.vector_store %arg13[%c6_92, %c32_93], %258 {strides = array<i32>} : memref<8x256xf32, #tpu.memory_space<vmem>>, vector<1x32xf32>,
    %259 = vector.extract_strided_slice %8 {offsets = [50, 0], sizes = [1, 32], strides = [1, 1]} : vector<64x32xf32> to vector<1x32xf32>
    %260 = vector.shape_cast %259 : vector<1x32xf32> to vector<32xf32>
    %c6_94 = arith.constant 6 : index
    %c64_95 = arith.constant 64 : index
    %261 = vector.load %arg13[%c6_94, %c64_95] : memref<8x256xf32, #tpu.memory_space<vmem>>, vector<1x32xf32>
    %262 = vector.shape_cast %261 : vector<1x32xf32> to vector<32xf32>
    %263 = vector.shape_cast %260 : vector<32xf32> to vector<1x32xf32>
    tpu.vector_store %arg13[%c6_94, %c64_95], %263 {strides = array<i32>} : memref<8x256xf32, #tpu.memory_space<vmem>>, vector<1x32xf32>,
    %264 = vector.extract_strided_slice %8 {offsets = [51, 0], sizes = [1, 32], strides = [1, 1]} : vector<64x32xf32> to vector<1x32xf32>
    %265 = vector.shape_cast %264 : vector<1x32xf32> to vector<32xf32>
    %c6_96 = arith.constant 6 : index
    %c96_97 = arith.constant 96 : index
    %266 = vector.load %arg13[%c6_96, %c96_97] : memref<8x256xf32, #tpu.memory_space<vmem>>, vector<1x32xf32>
    %267 = vector.shape_cast %266 : vector<1x32xf32> to vector<32xf32>
    %268 = vector.shape_cast %265 : vector<32xf32> to vector<1x32xf32>
    tpu.vector_store %arg13[%c6_96, %c96_97], %268 {strides = array<i32>} : memref<8x256xf32, #tpu.memory_space<vmem>>, vector<1x32xf32>,
    %269 = vector.extract_strided_slice %8 {offsets = [52, 0], sizes = [1, 32], strides = [1, 1]} : vector<64x32xf32> to vector<1x32xf32>
    %270 = vector.shape_cast %269 : vector<1x32xf32> to vector<32xf32>
    %c6_98 = arith.constant 6 : index
    %c128_99 = arith.constant 128 : index
    %271 = vector.load %arg13[%c6_98, %c128_99] : memref<8x256xf32, #tpu.memory_space<vmem>>, vector<1x32xf32>
    %272 = vector.shape_cast %271 : vector<1x32xf32> to vector<32xf32>
    %273 = vector.shape_cast %270 : vector<32xf32> to vector<1x32xf32>
    tpu.vector_store %arg13[%c6_98, %c128_99], %273 {strides = array<i32>} : memref<8x256xf32, #tpu.memory_space<vmem>>, vector<1x32xf32>,
    %274 = vector.extract_strided_slice %8 {offsets = [53, 0], sizes = [1, 32], strides = [1, 1]} : vector<64x32xf32> to vector<1x32xf32>
    %275 = vector.shape_cast %274 : vector<1x32xf32> to vector<32xf32>
    %c6_100 = arith.constant 6 : index
    %c160_101 = arith.constant 160 : index
    %276 = vector.load %arg13[%c6_100, %c160_101] : memref<8x256xf32, #tpu.memory_space<vmem>>, vector<1x32xf32>
    %277 = vector.shape_cast %276 : vector<1x32xf32> to vector<32xf32>
    %278 = vector.shape_cast %275 : vector<32xf32> to vector<1x32xf32>
    tpu.vector_store %arg13[%c6_100, %c160_101], %278 {strides = array<i32>} : memref<8x256xf32, #tpu.memory_space<vmem>>, vector<1x32xf32>,
    %279 = vector.extract_strided_slice %8 {offsets = [54, 0], sizes = [1, 32], strides = [1, 1]} : vector<64x32xf32> to vector<1x32xf32>
    %280 = vector.shape_cast %279 : vector<1x32xf32> to vector<32xf32>
    %c6_102 = arith.constant 6 : index
    %c192_103 = arith.constant 192 : index
    %281 = vector.load %arg13[%c6_102, %c192_103] : memref<8x256xf32, #tpu.memory_space<vmem>>, vector<1x32xf32>
    %282 = vector.shape_cast %281 : vector<1x32xf32> to vector<32xf32>
    %283 = vector.shape_cast %280 : vector<32xf32> to vector<1x32xf32>
    tpu.vector_store %arg13[%c6_102, %c192_103], %283 {strides = array<i32>} : memref<8x256xf32, #tpu.memory_space<vmem>>, vector<1x32xf32>,
    %284 = vector.extract_strided_slice %8 {offsets = [55, 0], sizes = [1, 32], strides = [1, 1]} : vector<64x32xf32> to vector<1x32xf32>
    %285 = vector.shape_cast %284 : vector<1x32xf32> to vector<32xf32>
    %c6_104 = arith.constant 6 : index
    %c224_105 = arith.constant 224 : index
    %286 = vector.load %arg13[%c6_104, %c224_105] : memref<8x256xf32, #tpu.memory_space<vmem>>, vector<1x32xf32>
    %287 = vector.shape_cast %286 : vector<1x32xf32> to vector<32xf32>
    %288 = vector.shape_cast %285 : vector<32xf32> to vector<1x32xf32>
    tpu.vector_store %arg13[%c6_104, %c224_105], %288 {strides = array<i32>} : memref<8x256xf32, #tpu.memory_space<vmem>>, vector<1x32xf32>,
    %289 = vector.extract_strided_slice %8 {offsets = [56, 0], sizes = [1, 32], strides = [1, 1]} : vector<64x32xf32> to vector<1x32xf32>
    %290 = vector.shape_cast %289 : vector<1x32xf32> to vector<32xf32>
    %c7 = arith.constant 7 : index
    %c0_106 = arith.constant 0 : index
    %291 = vector.load %arg13[%c7, %c0_106] : memref<8x256xf32, #tpu.memory_space<vmem>>, vector<1x32xf32>
    %292 = vector.shape_cast %291 : vector<1x32xf32> to vector<32xf32>
    %293 = vector.shape_cast %290 : vector<32xf32> to vector<1x32xf32>
    tpu.vector_store %arg13[%c7, %c0_106], %293 {strides = array<i32>} : memref<8x256xf32, #tpu.memory_space<vmem>>, vector<1x32xf32>,
    %294 = vector.extract_strided_slice %8 {offsets = [57, 0], sizes = [1, 32], strides = [1, 1]} : vector<64x32xf32> to vector<1x32xf32>
    %295 = vector.shape_cast %294 : vector<1x32xf32> to vector<32xf32>
    %c7_107 = arith.constant 7 : index
    %c32_108 = arith.constant 32 : index
    %296 = vector.load %arg13[%c7_107, %c32_108] : memref<8x256xf32, #tpu.memory_space<vmem>>, vector<1x32xf32>
    %297 = vector.shape_cast %296 : vector<1x32xf32> to vector<32xf32>
    %298 = vector.shape_cast %295 : vector<32xf32> to vector<1x32xf32>
    tpu.vector_store %arg13[%c7_107, %c32_108], %298 {strides = array<i32>} : memref<8x256xf32, #tpu.memory_space<vmem>>, vector<1x32xf32>,
    %299 = vector.extract_strided_slice %8 {offsets = [58, 0], sizes = [1, 32], strides = [1, 1]} : vector<64x32xf32> to vector<1x32xf32>
    %300 = vector.shape_cast %299 : vector<1x32xf32> to vector<32xf32>
    %c7_109 = arith.constant 7 : index
    %c64_110 = arith.constant 64 : index
    %301 = vector.load %arg13[%c7_109, %c64_110] : memref<8x256xf32, #tpu.memory_space<vmem>>, vector<1x32xf32>
    %302 = vector.shape_cast %301 : vector<1x32xf32> to vector<32xf32>
    %303 = vector.shape_cast %300 : vector<32xf32> to vector<1x32xf32>
    tpu.vector_store %arg13[%c7_109, %c64_110], %303 {strides = array<i32>} : memref<8x256xf32, #tpu.memory_space<vmem>>, vector<1x32xf32>,
    %304 = vector.extract_strided_slice %8 {offsets = [59, 0], sizes = [1, 32], strides = [1, 1]} : vector<64x32xf32> to vector<1x32xf32>
    %305 = vector.shape_cast %304 : vector<1x32xf32> to vector<32xf32>
    %c7_111 = arith.constant 7 : index
    %c96_112 = arith.constant 96 : index
    %306 = vector.load %arg13[%c7_111, %c96_112] : memref<8x256xf32, #tpu.memory_space<vmem>>, vector<1x32xf32>
    %307 = vector.shape_cast %306 : vector<1x32xf32> to vector<32xf32>
    %308 = vector.shape_cast %305 : vector<32xf32> to vector<1x32xf32>
    tpu.vector_store %arg13[%c7_111, %c96_112], %308 {strides = array<i32>} : memref<8x256xf32, #tpu.memory_space<vmem>>, vector<1x32xf32>,
    %309 = vector.extract_strided_slice %8 {offsets = [60, 0], sizes = [1, 32], strides = [1, 1]} : vector<64x32xf32> to vector<1x32xf32>
    %310 = vector.shape_cast %309 : vector<1x32xf32> to vector<32xf32>
    %c7_113 = arith.constant 7 : index
    %c128_114 = arith.constant 128 : index
    %311 = vector.load %arg13[%c7_113, %c128_114] : memref<8x256xf32, #tpu.memory_space<vmem>>, vector<1x32xf32>
    %312 = vector.shape_cast %311 : vector<1x32xf32> to vector<32xf32>
    %313 = vector.shape_cast %310 : vector<32xf32> to vector<1x32xf32>
    tpu.vector_store %arg13[%c7_113, %c128_114], %313 {strides = array<i32>} : memref<8x256xf32, #tpu.memory_space<vmem>>, vector<1x32xf32>,
    %314 = vector.extract_strided_slice %8 {offsets = [61, 0], sizes = [1, 32], strides = [1, 1]} : vector<64x32xf32> to vector<1x32xf32>
    %315 = vector.shape_cast %314 : vector<1x32xf32> to vector<32xf32>
    %c7_115 = arith.constant 7 : index
    %c160_116 = arith.constant 160 : index
    %316 = vector.load %arg13[%c7_115, %c160_116] : memref<8x256xf32, #tpu.memory_space<vmem>>, vector<1x32xf32>
    %317 = vector.shape_cast %316 : vector<1x32xf32> to vector<32xf32>
    %318 = vector.shape_cast %315 : vector<32xf32> to vector<1x32xf32>
    tpu.vector_store %arg13[%c7_115, %c160_116], %318 {strides = array<i32>} : memref<8x256xf32, #tpu.memory_space<vmem>>, vector<1x32xf32>,
    %319 = vector.extract_strided_slice %8 {offsets = [62, 0], sizes = [1, 32], strides = [1, 1]} : vector<64x32xf32> to vector<1x32xf32>
    %320 = vector.shape_cast %319 : vector<1x32xf32> to vector<32xf32>
    %c7_117 = arith.constant 7 : index
    %c192_118 = arith.constant 192 : index
    %321 = vector.load %arg13[%c7_117, %c192_118] : memref<8x256xf32, #tpu.memory_space<vmem>>, vector<1x32xf32>
    %322 = vector.shape_cast %321 : vector<1x32xf32> to vector<32xf32>
    %323 = vector.shape_cast %320 : vector<32xf32> to vector<1x32xf32>
    tpu.vector_store %arg13[%c7_117, %c192_118], %323 {strides = array<i32>} : memref<8x256xf32, #tpu.memory_space<vmem>>, vector<1x32xf32>,
    %324 = vector.extract_strided_slice %8 {offsets = [63, 0], sizes = [1, 32], strides = [1, 1]} : vector<64x32xf32> to vector<1x32xf32>
    %325 = vector.shape_cast %324 : vector<1x32xf32> to vector<32xf32>
    %c7_119 = arith.constant 7 : index
    %c224_120 = arith.constant 224 : index
    %326 = vector.load %arg13[%c7_119, %c224_120] : memref<8x256xf32, #tpu.memory_space<vmem>>, vector<1x32xf32>
    %327 = vector.shape_cast %326 : vector<1x32xf32> to vector<32xf32>
    %328 = vector.shape_cast %325 : vector<32xf32> to vector<1x32xf32>
    tpu.vector_store %arg13[%c7_119, %c224_120], %328 {strides = array<i32>} : memref<8x256xf32, #tpu.memory_space<vmem>>, vector<1x32xf32>,
    %c0_121 = arith.constant 0 : index
    %c0_122 = arith.constant 0 : index
    %329 = vector.load %arg13[%c0_121, %c0_122] : memref<8x256xf32, #tpu.memory_space<vmem>>, vector<1x128xf32>
    %330 = vector.shape_cast %329 : vector<1x128xf32> to vector<128xf32>
    %c0_123 = arith.constant 0 : index
    %c0_124 = arith.constant 0 : index
    %331 = vector.load %arg14[%c0_123, %c0_124] : memref<9x512xf32, #tpu.memory_space<vmem>>, vector<1x128xf32>
    %332 = vector.shape_cast %331 : vector<1x128xf32> to vector<128xf32>
    %333 = vector.shape_cast %330 : vector<128xf32> to vector<1x128xf32>
    tpu.vector_store %arg14[%c0_123, %c0_124], %333 {strides = array<i32>} : memref<9x512xf32, #tpu.memory_space<vmem>>, vector<1x128xf32>,
    %c1_125 = arith.constant 1 : index
    %c0_126 = arith.constant 0 : index
    %334 = vector.load %arg13[%c1_125, %c0_126] : memref<8x256xf32, #tpu.memory_space<vmem>>, vector<1x128xf32>
    %335 = vector.shape_cast %334 : vector<1x128xf32> to vector<128xf32>
    %c0_127 = arith.constant 0 : index
    %c128_128 = arith.constant 128 : index
    %336 = vector.load %arg14[%c0_127, %c128_128] : memref<9x512xf32, #tpu.memory_space<vmem>>, vector<1x128xf32>
    %337 = vector.shape_cast %336 : vector<1x128xf32> to vector<128xf32>
    %338 = vector.shape_cast %335 : vector<128xf32> to vector<1x128xf32>
    tpu.vector_store %arg14[%c0_127, %c128_128], %338 {strides = array<i32>} : memref<9x512xf32, #tpu.memory_space<vmem>>, vector<1x128xf32>,
    %c2_129 = arith.constant 2 : index
    %c0_130 = arith.constant 0 : index
    %339 = vector.load %arg13[%c2_129, %c0_130] : memref<8x256xf32, #tpu.memory_space<vmem>>, vector<1x128xf32>
    %340 = vector.shape_cast %339 : vector<1x128xf32> to vector<128xf32>
    %c0_131 = arith.constant 0 : index
    %c256 = arith.constant 256 : index
    %341 = vector.load %arg14[%c0_131, %c256] : memref<9x512xf32, #tpu.memory_space<vmem>>, vector<1x128xf32>
    %342 = vector.shape_cast %341 : vector<1x128xf32> to vector<128xf32>
    %343 = vector.shape_cast %340 : vector<128xf32> to vector<1x128xf32>
    tpu.vector_store %arg14[%c0_131, %c256], %343 {strides = array<i32>} : memref<9x512xf32, #tpu.memory_space<vmem>>, vector<1x128xf32>,
    %c3_132 = arith.constant 3 : index
    %c0_133 = arith.constant 0 : index
    %344 = vector.load %arg13[%c3_132, %c0_133] : memref<8x256xf32, #tpu.memory_space<vmem>>, vector<1x128xf32>
    %345 = vector.shape_cast %344 : vector<1x128xf32> to vector<128xf32>
    %c0_134 = arith.constant 0 : index
    %c384 = arith.constant 384 : index
    %346 = vector.load %arg14[%c0_134, %c384] : memref<9x512xf32, #tpu.memory_space<vmem>>, vector<1x128xf32>
    %347 = vector.shape_cast %346 : vector<1x128xf32> to vector<128xf32>
    %348 = vector.shape_cast %345 : vector<128xf32> to vector<1x128xf32>
    tpu.vector_store %arg14[%c0_134, %c384], %348 {strides = array<i32>} : memref<9x512xf32, #tpu.memory_space<vmem>>, vector<1x128xf32>,
    %c0_135 = arith.constant 0 : index
    %c64_136 = arith.constant 64 : index
    %349 = vector.load %arg13[%c0_135, %c64_136] : memref<8x256xf32, #tpu.memory_space<vmem>>, vector<1x128xf32>
    %350 = vector.shape_cast %349 : vector<1x128xf32> to vector<128xf32>
    %c1_137 = arith.constant 1 : index
    %c0_138 = arith.constant 0 : index
    %351 = vector.load %arg14[%c1_137, %c0_138] : memref<9x512xf32, #tpu.memory_space<vmem>>, vector<1x128xf32>
    %352 = vector.shape_cast %351 : vector<1x128xf32> to vector<128xf32>
    %353 = vector.shape_cast %350 : vector<128xf32> to vector<1x128xf32>
    tpu.vector_store %arg14[%c1_137, %c0_138], %353 {strides = array<i32>} : memref<9x512xf32, #tpu.memory_space<vmem>>, vector<1x128xf32>,
    %c1_139 = arith.constant 1 : index
    %c64_140 = arith.constant 64 : index
    %354 = vector.load %arg13[%c1_139, %c64_140] : memref<8x256xf32, #tpu.memory_space<vmem>>, vector<1x128xf32>
    %355 = vector.shape_cast %354 : vector<1x128xf32> to vector<128xf32>
    %c1_141 = arith.constant 1 : index
    %c128_142 = arith.constant 128 : index
    %356 = vector.load %arg14[%c1_141, %c128_142] : memref<9x512xf32, #tpu.memory_space<vmem>>, vector<1x128xf32>
    %357 = vector.shape_cast %356 : vector<1x128xf32> to vector<128xf32>
    %358 = vector.shape_cast %355 : vector<128xf32> to vector<1x128xf32>
    tpu.vector_store %arg14[%c1_141, %c128_142], %358 {strides = array<i32>} : memref<9x512xf32, #tpu.memory_space<vmem>>, vector<1x128xf32>,
    %c2_143 = arith.constant 2 : index
    %c64_144 = arith.constant 64 : index
    %359 = vector.load %arg13[%c2_143, %c64_144] : memref<8x256xf32, #tpu.memory_space<vmem>>, vector<1x128xf32>
    %360 = vector.shape_cast %359 : vector<1x128xf32> to vector<128xf32>
    %c1_145 = arith.constant 1 : index
    %c256_146 = arith.constant 256 : index
    %361 = vector.load %arg14[%c1_145, %c256_146] : memref<9x512xf32, #tpu.memory_space<vmem>>, vector<1x128xf32>
    %362 = vector.shape_cast %361 : vector<1x128xf32> to vector<128xf32>
    %363 = vector.shape_cast %360 : vector<128xf32> to vector<1x128xf32>
    tpu.vector_store %arg14[%c1_145, %c256_146], %363 {strides = array<i32>} : memref<9x512xf32, #tpu.memory_space<vmem>>, vector<1x128xf32>,
    %c3_147 = arith.constant 3 : index
    %c64_148 = arith.constant 64 : index
    %364 = vector.load %arg13[%c3_147, %c64_148] : memref<8x256xf32, #tpu.memory_space<vmem>>, vector<1x128xf32>
    %365 = vector.shape_cast %364 : vector<1x128xf32> to vector<128xf32>
    %c1_149 = arith.constant 1 : index
    %c384_150 = arith.constant 384 : index
    %366 = vector.load %arg14[%c1_149, %c384_150] : memref<9x512xf32, #tpu.memory_space<vmem>>, vector<1x128xf32>
    %367 = vector.shape_cast %366 : vector<1x128xf32> to vector<128xf32>
    %368 = vector.shape_cast %365 : vector<128xf32> to vector<1x128xf32>
    tpu.vector_store %arg14[%c1_149, %c384_150], %368 {strides = array<i32>} : memref<9x512xf32, #tpu.memory_space<vmem>>, vector<1x128xf32>,
    %c0_151 = arith.constant 0 : index
    %c128_152 = arith.constant 128 : index
    %369 = vector.load %arg13[%c0_151, %c128_152] : memref<8x256xf32, #tpu.memory_space<vmem>>, vector<1x128xf32>
    %370 = vector.shape_cast %369 : vector<1x128xf32> to vector<128xf32>
    %c2_153 = arith.constant 2 : index
    %c0_154 = arith.constant 0 : index
    %371 = vector.load %arg14[%c2_153, %c0_154] : memref<9x512xf32, #tpu.memory_space<vmem>>, vector<1x128xf32>
    %372 = vector.shape_cast %371 : vector<1x128xf32> to vector<128xf32>
    %373 = vector.shape_cast %370 : vector<128xf32> to vector<1x128xf32>
    tpu.vector_store %arg14[%c2_153, %c0_154], %373 {strides = array<i32>} : memref<9x512xf32, #tpu.memory_space<vmem>>, vector<1x128xf32>,
    %c1_155 = arith.constant 1 : index
    %c128_156 = arith.constant 128 : index
    %374 = vector.load %arg13[%c1_155, %c128_156] : memref<8x256xf32, #tpu.memory_space<vmem>>, vector<1x128xf32>
    %375 = vector.shape_cast %374 : vector<1x128xf32> to vector<128xf32>
    %c2_157 = arith.constant 2 : index
    %c128_158 = arith.constant 128 : index
    %376 = vector.load %arg14[%c2_157, %c128_158] : memref<9x512xf32, #tpu.memory_space<vmem>>, vector<1x128xf32>
    %377 = vector.shape_cast %376 : vector<1x128xf32> to vector<128xf32>
    %378 = vector.shape_cast %375 : vector<128xf32> to vector<1x128xf32>
    tpu.vector_store %arg14[%c2_157, %c128_158], %378 {strides = array<i32>} : memref<9x512xf32, #tpu.memory_space<vmem>>, vector<1x128xf32>,
    %c2_159 = arith.constant 2 : index
    %c128_160 = arith.constant 128 : index
    %379 = vector.load %arg13[%c2_159, %c128_160] : memref<8x256xf32, #tpu.memory_space<vmem>>, vector<1x128xf32>
    %380 = vector.shape_cast %379 : vector<1x128xf32> to vector<128xf32>
    %c2_161 = arith.constant 2 : index
    %c256_162 = arith.constant 256 : index
    %381 = vector.load %arg14[%c2_161, %c256_162] : memref<9x512xf32, #tpu.memory_space<vmem>>, vector<1x128xf32>
    %382 = vector.shape_cast %381 : vector<1x128xf32> to vector<128xf32>
    %383 = vector.shape_cast %380 : vector<128xf32> to vector<1x128xf32>
    tpu.vector_store %arg14[%c2_161, %c256_162], %383 {strides = array<i32>} : memref<9x512xf32, #tpu.memory_space<vmem>>, vector<1x128xf32>,
    %c3_163 = arith.constant 3 : index
    %c128_164 = arith.constant 128 : index
    %384 = vector.load %arg13[%c3_163, %c128_164] : memref<8x256xf32, #tpu.memory_space<vmem>>, vector<1x128xf32>
    %385 = vector.shape_cast %384 : vector<1x128xf32> to vector<128xf32>
    %c2_165 = arith.constant 2 : index
    %c384_166 = arith.constant 384 : index
    %386 = vector.load %arg14[%c2_165, %c384_166] : memref<9x512xf32, #tpu.memory_space<vmem>>, vector<1x128xf32>
    %387 = vector.shape_cast %386 : vector<1x128xf32> to vector<128xf32>
    %388 = vector.shape_cast %385 : vector<128xf32> to vector<1x128xf32>
    tpu.vector_store %arg14[%c2_165, %c384_166], %388 {strides = array<i32>} : memref<9x512xf32, #tpu.memory_space<vmem>>, vector<1x128xf32>,
    %c2_167 = arith.constant 2 : index
    %c0_168 = arith.constant 0 : index
    %389 = vector.load %arg13[%c2_167, %c0_168] : memref<8x256xf32, #tpu.memory_space<vmem>>, vector<1x128xf32>
    %390 = vector.shape_cast %389 : vector<1x128xf32> to vector<128xf32>
    %c3_169 = arith.constant 3 : index
    %c0_170 = arith.constant 0 : index
    %391 = vector.load %arg14[%c3_169, %c0_170] : memref<9x512xf32, #tpu.memory_space<vmem>>, vector<1x128xf32>
    %392 = vector.shape_cast %391 : vector<1x128xf32> to vector<128xf32>
    %393 = vector.shape_cast %390 : vector<128xf32> to vector<1x128xf32>
    tpu.vector_store %arg14[%c3_169, %c0_170], %393 {strides = array<i32>} : memref<9x512xf32, #tpu.memory_space<vmem>>, vector<1x128xf32>,
    %c3_171 = arith.constant 3 : index
    %c0_172 = arith.constant 0 : index
    %394 = vector.load %arg13[%c3_171, %c0_172] : memref<8x256xf32, #tpu.memory_space<vmem>>, vector<1x128xf32>
    %395 = vector.shape_cast %394 : vector<1x128xf32> to vector<128xf32>
    %c3_173 = arith.constant 3 : index
    %c128_174 = arith.constant 128 : index
    %396 = vector.load %arg14[%c3_173, %c128_174] : memref<9x512xf32, #tpu.memory_space<vmem>>, vector<1x128xf32>
    %397 = vector.shape_cast %396 : vector<1x128xf32> to vector<128xf32>
    %398 = vector.shape_cast %395 : vector<128xf32> to vector<1x128xf32>
    tpu.vector_store %arg14[%c3_173, %c128_174], %398 {strides = array<i32>} : memref<9x512xf32, #tpu.memory_space<vmem>>, vector<1x128xf32>,
    %c4_175 = arith.constant 4 : index
    %c0_176 = arith.constant 0 : index
    %399 = vector.load %arg13[%c4_175, %c0_176] : memref<8x256xf32, #tpu.memory_space<vmem>>, vector<1x128xf32>
    %400 = vector.shape_cast %399 : vector<1x128xf32> to vector<128xf32>
    %c3_177 = arith.constant 3 : index
    %c256_178 = arith.constant 256 : index
    %401 = vector.load %arg14[%c3_177, %c256_178] : memref<9x512xf32, #tpu.memory_space<vmem>>, vector<1x128xf32>
    %402 = vector.shape_cast %401 : vector<1x128xf32> to vector<128xf32>
    %403 = vector.shape_cast %400 : vector<128xf32> to vector<1x128xf32>
    tpu.vector_store %arg14[%c3_177, %c256_178], %403 {strides = array<i32>} : memref<9x512xf32, #tpu.memory_space<vmem>>, vector<1x128xf32>,
    %c5_179 = arith.constant 5 : index
    %c0_180 = arith.constant 0 : index
    %404 = vector.load %arg13[%c5_179, %c0_180] : memref<8x256xf32, #tpu.memory_space<vmem>>, vector<1x128xf32>
    %405 = vector.shape_cast %404 : vector<1x128xf32> to vector<128xf32>
    %c3_181 = arith.constant 3 : index
    %c384_182 = arith.constant 384 : index
    %406 = vector.load %arg14[%c3_181, %c384_182] : memref<9x512xf32, #tpu.memory_space<vmem>>, vector<1x128xf32>
    %407 = vector.shape_cast %406 : vector<1x128xf32> to vector<128xf32>
    %408 = vector.shape_cast %405 : vector<128xf32> to vector<1x128xf32>
    tpu.vector_store %arg14[%c3_181, %c384_182], %408 {strides = array<i32>} : memref<9x512xf32, #tpu.memory_space<vmem>>, vector<1x128xf32>,
    %c2_183 = arith.constant 2 : index
    %c64_184 = arith.constant 64 : index
    %409 = vector.load %arg13[%c2_183, %c64_184] : memref<8x256xf32, #tpu.memory_space<vmem>>, vector<1x128xf32>
    %410 = vector.shape_cast %409 : vector<1x128xf32> to vector<128xf32>
    %c4_185 = arith.constant 4 : index
    %c0_186 = arith.constant 0 : index
    %411 = vector.load %arg14[%c4_185, %c0_186] : memref<9x512xf32, #tpu.memory_space<vmem>>, vector<1x128xf32>
    %412 = vector.shape_cast %411 : vector<1x128xf32> to vector<128xf32>
    %413 = vector.shape_cast %410 : vector<128xf32> to vector<1x128xf32>
    tpu.vector_store %arg14[%c4_185, %c0_186], %413 {strides = array<i32>} : memref<9x512xf32, #tpu.memory_space<vmem>>, vector<1x128xf32>,
    %c3_187 = arith.constant 3 : index
    %c64_188 = arith.constant 64 : index
    %414 = vector.load %arg13[%c3_187, %c64_188] : memref<8x256xf32, #tpu.memory_space<vmem>>, vector<1x128xf32>
    %415 = vector.shape_cast %414 : vector<1x128xf32> to vector<128xf32>
    %c4_189 = arith.constant 4 : index
    %c128_190 = arith.constant 128 : index
    %416 = vector.load %arg14[%c4_189, %c128_190] : memref<9x512xf32, #tpu.memory_space<vmem>>, vector<1x128xf32>
    %417 = vector.shape_cast %416 : vector<1x128xf32> to vector<128xf32>
    %418 = vector.shape_cast %415 : vector<128xf32> to vector<1x128xf32>
    tpu.vector_store %arg14[%c4_189, %c128_190], %418 {strides = array<i32>} : memref<9x512xf32, #tpu.memory_space<vmem>>, vector<1x128xf32>,
    %c4_191 = arith.constant 4 : index
    %c64_192 = arith.constant 64 : index
    %419 = vector.load %arg13[%c4_191, %c64_192] : memref<8x256xf32, #tpu.memory_space<vmem>>, vector<1x128xf32>
    %420 = vector.shape_cast %419 : vector<1x128xf32> to vector<128xf32>
    %c4_193 = arith.constant 4 : index
    %c256_194 = arith.constant 256 : index
    %421 = vector.load %arg14[%c4_193, %c256_194] : memref<9x512xf32, #tpu.memory_space<vmem>>, vector<1x128xf32>
    %422 = vector.shape_cast %421 : vector<1x128xf32> to vector<128xf32>
    %423 = vector.shape_cast %420 : vector<128xf32> to vector<1x128xf32>
    tpu.vector_store %arg14[%c4_193, %c256_194], %423 {strides = array<i32>} : memref<9x512xf32, #tpu.memory_space<vmem>>, vector<1x128xf32>,
    %c5_195 = arith.constant 5 : index
    %c64_196 = arith.constant 64 : index
    %424 = vector.load %arg13[%c5_195, %c64_196] : memref<8x256xf32, #tpu.memory_space<vmem>>, vector<1x128xf32>
    %425 = vector.shape_cast %424 : vector<1x128xf32> to vector<128xf32>
    %c4_197 = arith.constant 4 : index
    %c384_198 = arith.constant 384 : index
    %426 = vector.load %arg14[%c4_197, %c384_198] : memref<9x512xf32, #tpu.memory_space<vmem>>, vector<1x128xf32>
    %427 = vector.shape_cast %426 : vector<1x128xf32> to vector<128xf32>
    %428 = vector.shape_cast %425 : vector<128xf32> to vector<1x128xf32>
    tpu.vector_store %arg14[%c4_197, %c384_198], %428 {strides = array<i32>} : memref<9x512xf32, #tpu.memory_space<vmem>>, vector<1x128xf32>,
    %c2_199 = arith.constant 2 : index
    %c128_200 = arith.constant 128 : index
    %429 = vector.load %arg13[%c2_199, %c128_200] : memref<8x256xf32, #tpu.memory_space<vmem>>, vector<1x128xf32>
    %430 = vector.shape_cast %429 : vector<1x128xf32> to vector<128xf32>
    %c5_201 = arith.constant 5 : index
    %c0_202 = arith.constant 0 : index
    %431 = vector.load %arg14[%c5_201, %c0_202] : memref<9x512xf32, #tpu.memory_space<vmem>>, vector<1x128xf32>
    %432 = vector.shape_cast %431 : vector<1x128xf32> to vector<128xf32>
    %433 = vector.shape_cast %430 : vector<128xf32> to vector<1x128xf32>
    tpu.vector_store %arg14[%c5_201, %c0_202], %433 {strides = array<i32>} : memref<9x512xf32, #tpu.memory_space<vmem>>, vector<1x128xf32>,
    %c3_203 = arith.constant 3 : index
    %c128_204 = arith.constant 128 : index
    %434 = vector.load %arg13[%c3_203, %c128_204] : memref<8x256xf32, #tpu.memory_space<vmem>>, vector<1x128xf32>
    %435 = vector.shape_cast %434 : vector<1x128xf32> to vector<128xf32>
    %c5_205 = arith.constant 5 : index
    %c128_206 = arith.constant 128 : index
    %436 = vector.load %arg14[%c5_205, %c128_206] : memref<9x512xf32, #tpu.memory_space<vmem>>, vector<1x128xf32>
    %437 = vector.shape_cast %436 : vector<1x128xf32> to vector<128xf32>
    %438 = vector.shape_cast %435 : vector<128xf32> to vector<1x128xf32>
    tpu.vector_store %arg14[%c5_205, %c128_206], %438 {strides = array<i32>} : memref<9x512xf32, #tpu.memory_space<vmem>>, vector<1x128xf32>,
    %c4_207 = arith.constant 4 : index
    %c128_208 = arith.constant 128 : index
    %439 = vector.load %arg13[%c4_207, %c128_208] : memref<8x256xf32, #tpu.memory_space<vmem>>, vector<1x128xf32>
    %440 = vector.shape_cast %439 : vector<1x128xf32> to vector<128xf32>
    %c5_209 = arith.constant 5 : index
    %c256_210 = arith.constant 256 : index
    %441 = vector.load %arg14[%c5_209, %c256_210] : memref<9x512xf32, #tpu.memory_space<vmem>>, vector<1x128xf32>
    %442 = vector.shape_cast %441 : vector<1x128xf32> to vector<128xf32>
    %443 = vector.shape_cast %440 : vector<128xf32> to vector<1x128xf32>
    tpu.vector_store %arg14[%c5_209, %c256_210], %443 {strides = array<i32>} : memref<9x512xf32, #tpu.memory_space<vmem>>, vector<1x128xf32>,
    %c5_211 = arith.constant 5 : index
    %c128_212 = arith.constant 128 : index
    %444 = vector.load %arg13[%c5_211, %c128_212] : memref<8x256xf32, #tpu.memory_space<vmem>>, vector<1x128xf32>
    %445 = vector.shape_cast %444 : vector<1x128xf32> to vector<128xf32>
    %c5_213 = arith.constant 5 : index
    %c384_214 = arith.constant 384 : index
    %446 = vector.load %arg14[%c5_213, %c384_214] : memref<9x512xf32, #tpu.memory_space<vmem>>, vector<1x128xf32>
    %447 = vector.shape_cast %446 : vector<1x128xf32> to vector<128xf32>
    %448 = vector.shape_cast %445 : vector<128xf32> to vector<1x128xf32>
    tpu.vector_store %arg14[%c5_213, %c384_214], %448 {strides = array<i32>} : memref<9x512xf32, #tpu.memory_space<vmem>>, vector<1x128xf32>,
    %c4_215 = arith.constant 4 : index
    %c0_216 = arith.constant 0 : index
    %449 = vector.load %arg13[%c4_215, %c0_216] : memref<8x256xf32, #tpu.memory_space<vmem>>, vector<1x128xf32>
    %450 = vector.shape_cast %449 : vector<1x128xf32> to vector<128xf32>
    %c6_217 = arith.constant 6 : index
    %c0_218 = arith.constant 0 : index
    %451 = vector.load %arg14[%c6_217, %c0_218] : memref<9x512xf32, #tpu.memory_space<vmem>>, vector<1x128xf32>
    %452 = vector.shape_cast %451 : vector<1x128xf32> to vector<128xf32>
    %453 = vector.shape_cast %450 : vector<128xf32> to vector<1x128xf32>
    tpu.vector_store %arg14[%c6_217, %c0_218], %453 {strides = array<i32>} : memref<9x512xf32, #tpu.memory_space<vmem>>, vector<1x128xf32>,
    %c5_219 = arith.constant 5 : index
    %c0_220 = arith.constant 0 : index
    %454 = vector.load %arg13[%c5_219, %c0_220] : memref<8x256xf32, #tpu.memory_space<vmem>>, vector<1x128xf32>
    %455 = vector.shape_cast %454 : vector<1x128xf32> to vector<128xf32>
    %c6_221 = arith.constant 6 : index
    %c128_222 = arith.constant 128 : index
    %456 = vector.load %arg14[%c6_221, %c128_222] : memref<9x512xf32, #tpu.memory_space<vmem>>, vector<1x128xf32>
    %457 = vector.shape_cast %456 : vector<1x128xf32> to vector<128xf32>
    %458 = vector.shape_cast %455 : vector<128xf32> to vector<1x128xf32>
    tpu.vector_store %arg14[%c6_221, %c128_222], %458 {strides = array<i32>} : memref<9x512xf32, #tpu.memory_space<vmem>>, vector<1x128xf32>,
    %c6_223 = arith.constant 6 : index
    %c0_224 = arith.constant 0 : index
    %459 = vector.load %arg13[%c6_223, %c0_224] : memref<8x256xf32, #tpu.memory_space<vmem>>, vector<1x128xf32>
    %460 = vector.shape_cast %459 : vector<1x128xf32> to vector<128xf32>
    %c6_225 = arith.constant 6 : index
    %c256_226 = arith.constant 256 : index
    %461 = vector.load %arg14[%c6_225, %c256_226] : memref<9x512xf32, #tpu.memory_space<vmem>>, vector<1x128xf32>
    %462 = vector.shape_cast %461 : vector<1x128xf32> to vector<128xf32>
    %463 = vector.shape_cast %460 : vector<128xf32> to vector<1x128xf32>
    tpu.vector_store %arg14[%c6_225, %c256_226], %463 {strides = array<i32>} : memref<9x512xf32, #tpu.memory_space<vmem>>, vector<1x128xf32>,
    %c7_227 = arith.constant 7 : index
    %c0_228 = arith.constant 0 : index
    %464 = vector.load %arg13[%c7_227, %c0_228] : memref<8x256xf32, #tpu.memory_space<vmem>>, vector<1x128xf32>
    %465 = vector.shape_cast %464 : vector<1x128xf32> to vector<128xf32>
    %c6_229 = arith.constant 6 : index
    %c384_230 = arith.constant 384 : index
    %466 = vector.load %arg14[%c6_229, %c384_230] : memref<9x512xf32, #tpu.memory_space<vmem>>, vector<1x128xf32>
    %467 = vector.shape_cast %466 : vector<1x128xf32> to vector<128xf32>
    %468 = vector.shape_cast %465 : vector<128xf32> to vector<1x128xf32>
    tpu.vector_store %arg14[%c6_229, %c384_230], %468 {strides = array<i32>} : memref<9x512xf32, #tpu.memory_space<vmem>>, vector<1x128xf32>,
    %c4_231 = arith.constant 4 : index
    %c64_232 = arith.constant 64 : index
    %469 = vector.load %arg13[%c4_231, %c64_232] : memref<8x256xf32, #tpu.memory_space<vmem>>, vector<1x128xf32>
    %470 = vector.shape_cast %469 : vector<1x128xf32> to vector<128xf32>
    %c7_233 = arith.constant 7 : index
    %c0_234 = arith.constant 0 : index
    %471 = vector.load %arg14[%c7_233, %c0_234] : memref<9x512xf32, #tpu.memory_space<vmem>>, vector<1x128xf32>
    %472 = vector.shape_cast %471 : vector<1x128xf32> to vector<128xf32>
    %473 = vector.shape_cast %470 : vector<128xf32> to vector<1x128xf32>
    tpu.vector_store %arg14[%c7_233, %c0_234], %473 {strides = array<i32>} : memref<9x512xf32, #tpu.memory_space<vmem>>, vector<1x128xf32>,
    %c5_235 = arith.constant 5 : index
    %c64_236 = arith.constant 64 : index
    %474 = vector.load %arg13[%c5_235, %c64_236] : memref<8x256xf32, #tpu.memory_space<vmem>>, vector<1x128xf32>
    %475 = vector.shape_cast %474 : vector<1x128xf32> to vector<128xf32>
    %c7_237 = arith.constant 7 : index
    %c128_238 = arith.constant 128 : index
    %476 = vector.load %arg14[%c7_237, %c128_238] : memref<9x512xf32, #tpu.memory_space<vmem>>, vector<1x128xf32>
    %477 = vector.shape_cast %476 : vector<1x128xf32> to vector<128xf32>
    %478 = vector.shape_cast %475 : vector<128xf32> to vector<1x128xf32>
    tpu.vector_store %arg14[%c7_237, %c128_238], %478 {strides = array<i32>} : memref<9x512xf32, #tpu.memory_space<vmem>>, vector<1x128xf32>,
    %c6_239 = arith.constant 6 : index
    %c64_240 = arith.constant 64 : index
    %479 = vector.load %arg13[%c6_239, %c64_240] : memref<8x256xf32, #tpu.memory_space<vmem>>, vector<1x128xf32>
    %480 = vector.shape_cast %479 : vector<1x128xf32> to vector<128xf32>
    %c7_241 = arith.constant 7 : index
    %c256_242 = arith.constant 256 : index
    %481 = vector.load %arg14[%c7_241, %c256_242] : memref<9x512xf32, #tpu.memory_space<vmem>>, vector<1x128xf32>
    %482 = vector.shape_cast %481 : vector<1x128xf32> to vector<128xf32>
    %483 = vector.shape_cast %480 : vector<128xf32> to vector<1x128xf32>
    tpu.vector_store %arg14[%c7_241, %c256_242], %483 {strides = array<i32>} : memref<9x512xf32, #tpu.memory_space<vmem>>, vector<1x128xf32>,
    %c7_243 = arith.constant 7 : index
    %c64_244 = arith.constant 64 : index
    %484 = vector.load %arg13[%c7_243, %c64_244] : memref<8x256xf32, #tpu.memory_space<vmem>>, vector<1x128xf32>
    %485 = vector.shape_cast %484 : vector<1x128xf32> to vector<128xf32>
    %c7_245 = arith.constant 7 : index
    %c384_246 = arith.constant 384 : index
    %486 = vector.load %arg14[%c7_245, %c384_246] : memref<9x512xf32, #tpu.memory_space<vmem>>, vector<1x128xf32>
    %487 = vector.shape_cast %486 : vector<1x128xf32> to vector<128xf32>
    %488 = vector.shape_cast %485 : vector<128xf32> to vector<1x128xf32>
    tpu.vector_store %arg14[%c7_245, %c384_246], %488 {strides = array<i32>} : memref<9x512xf32, #tpu.memory_space<vmem>>, vector<1x128xf32>,
    %c4_247 = arith.constant 4 : index
    %c128_248 = arith.constant 128 : index
    %489 = vector.load %arg13[%c4_247, %c128_248] : memref<8x256xf32, #tpu.memory_space<vmem>>, vector<1x128xf32>
    %490 = vector.shape_cast %489 : vector<1x128xf32> to vector<128xf32>
    %c8 = arith.constant 8 : index
    %c0_249 = arith.constant 0 : index
    %491 = vector.load %arg14[%c8, %c0_249] : memref<9x512xf32, #tpu.memory_space<vmem>>, vector<1x128xf32>
    %492 = vector.shape_cast %491 : vector<1x128xf32> to vector<128xf32>
    %493 = vector.shape_cast %490 : vector<128xf32> to vector<1x128xf32>
    tpu.vector_store %arg14[%c8, %c0_249], %493 {strides = array<i32>} : memref<9x512xf32, #tpu.memory_space<vmem>>, vector<1x128xf32>,
    %c5_250 = arith.constant 5 : index
    %c128_251 = arith.constant 128 : index
    %494 = vector.load %arg13[%c5_250, %c128_251] : memref<8x256xf32, #tpu.memory_space<vmem>>, vector<1x128xf32>
    %495 = vector.shape_cast %494 : vector<1x128xf32> to vector<128xf32>
    %c8_252 = arith.constant 8 : index
    %c128_253 = arith.constant 128 : index
    %496 = vector.load %arg14[%c8_252, %c128_253] : memref<9x512xf32, #tpu.memory_space<vmem>>, vector<1x128xf32>
    %497 = vector.shape_cast %496 : vector<1x128xf32> to vector<128xf32>
    %498 = vector.shape_cast %495 : vector<128xf32> to vector<1x128xf32>
    tpu.vector_store %arg14[%c8_252, %c128_253], %498 {strides = array<i32>} : memref<9x512xf32, #tpu.memory_space<vmem>>, vector<1x128xf32>,
    %c6_254 = arith.constant 6 : index
    %c128_255 = arith.constant 128 : index
    %499 = vector.load %arg13[%c6_254, %c128_255] : memref<8x256xf32, #tpu.memory_space<vmem>>, vector<1x128xf32>
    %500 = vector.shape_cast %499 : vector<1x128xf32> to vector<128xf32>
    %c8_256 = arith.constant 8 : index
    %c256_257 = arith.constant 256 : index
    %501 = vector.load %arg14[%c8_256, %c256_257] : memref<9x512xf32, #tpu.memory_space<vmem>>, vector<1x128xf32>
    %502 = vector.shape_cast %501 : vector<1x128xf32> to vector<128xf32>
    %503 = vector.shape_cast %500 : vector<128xf32> to vector<1x128xf32>
    tpu.vector_store %arg14[%c8_256, %c256_257], %503 {strides = array<i32>} : memref<9x512xf32, #tpu.memory_space<vmem>>, vector<1x128xf32>,
    %c7_258 = arith.constant 7 : index
    %c128_259 = arith.constant 128 : index
    %504 = vector.load %arg13[%c7_258, %c128_259] : memref<8x256xf32, #tpu.memory_space<vmem>>, vector<1x128xf32>
    %505 = vector.shape_cast %504 : vector<1x128xf32> to vector<128xf32>
    %c8_260 = arith.constant 8 : index
    %c384_261 = arith.constant 384 : index
    %506 = vector.load %arg14[%c8_260, %c384_261] : memref<9x512xf32, #tpu.memory_space<vmem>>, vector<1x128xf32>
    %507 = vector.shape_cast %506 : vector<1x128xf32> to vector<128xf32>
    %508 = vector.shape_cast %505 : vector<128xf32> to vector<1x128xf32>
    tpu.vector_store %arg14[%c8_260, %c384_261], %508 {strides = array<i32>} : memref<9x512xf32, #tpu.memory_space<vmem>>, vector<1x128xf32>,
    %c0_262 = arith.constant 0 : index
    %c0_263 = arith.constant 0 : index
    %509 = vector.load %arg14[%c0_262, %c0_263] : memref<9x512xf32, #tpu.memory_space<vmem>>, vector<9x512xf32>
    %510 = arith.truncf %509 : vector<9x512xf32> to vector<9x512xbf16>
    %c0_264 = arith.constant 0 : index
    %c0_265 = arith.constant 0 : index
    %511 = vector.load %arg4[%c0_264, %c0_265] : memref<512x64xbf16, #tpu.memory_space<vmem>>, vector<512x64xbf16>
    %cst_266 = arith.constant dense<0.000000e+00> : vector<9x64xf32>
    %512 = tpu.matmul %510, %511, %cst_266 {dimension_numbers = #tpu.dot_dimension_numbers<[1], [0], [0], [1], [0, 0, 1, 1], [], []>} : vector<9x512xbf16>, vector<512x64xbf16>, vector<9x64xf32> -> vector<9x64xf32>
    %c0_267 = arith.constant 0 : index
    %c0_268 = arith.constant 0 : index
    %513 = vector.load %arg5[%c0_267, %c0_268] : memref<1x64xf32, #tpu.memory_space<vmem>>, vector<1x64xf32>
    %514 = vector.broadcast %513 : vector<1x64xf32> to vector<9x64xf32>
    %515 = arith.addf %512, %514 : vector<9x64xf32>
    %cst_269 = arith.constant 0.000000e+00 : f32
    %516 = vector.broadcast %cst_269 : f32 to vector<9x64xf32>
    %517 = arith.maximumf %515, %516 : vector<9x64xf32>
    %518 = vector.extract_strided_slice %517 {offsets = [0, 0], sizes = [1, 64], strides = [1, 1]} : vector<9x64xf32> to vector<1x64xf32>
    %519 = vector.shape_cast %518 : vector<1x64xf32> to vector<64xf32>
    %c0_270 = arith.constant 0 : index
    %c0_271 = arith.constant 0 : index
    %520 = vector.load %arg15[%c0_270, %c0_271] : memref<3x192xf32, #tpu.memory_space<vmem>>, vector<1x64xf32>
    %521 = vector.shape_cast %520 : vector<1x64xf32> to vector<64xf32>
    %522 = vector.shape_cast %519 : vector<64xf32> to vector<1x64xf32>
    tpu.vector_store %arg15[%c0_270, %c0_271], %522 {strides = array<i32>} : memref<3x192xf32, #tpu.memory_space<vmem>>, vector<1x64xf32>,
    %523 = vector.extract_strided_slice %517 {offsets = [1, 0], sizes = [1, 64], strides = [1, 1]} : vector<9x64xf32> to vector<1x64xf32>
    %524 = vector.shape_cast %523 : vector<1x64xf32> to vector<64xf32>
    %c0_272 = arith.constant 0 : index
    %c64_273 = arith.constant 64 : index
    %525 = vector.load %arg15[%c0_272, %c64_273] : memref<3x192xf32, #tpu.memory_space<vmem>>, vector<1x64xf32>
    %526 = vector.shape_cast %525 : vector<1x64xf32> to vector<64xf32>
    %527 = vector.shape_cast %524 : vector<64xf32> to vector<1x64xf32>
    tpu.vector_store %arg15[%c0_272, %c64_273], %527 {strides = array<i32>} : memref<3x192xf32, #tpu.memory_space<vmem>>, vector<1x64xf32>,
    %528 = vector.extract_strided_slice %517 {offsets = [2, 0], sizes = [1, 64], strides = [1, 1]} : vector<9x64xf32> to vector<1x64xf32>
    %529 = vector.shape_cast %528 : vector<1x64xf32> to vector<64xf32>
    %c0_274 = arith.constant 0 : index
    %c128_275 = arith.constant 128 : index
    %530 = vector.load %arg15[%c0_274, %c128_275] : memref<3x192xf32, #tpu.memory_space<vmem>>, vector<1x64xf32>
    %531 = vector.shape_cast %530 : vector<1x64xf32> to vector<64xf32>
    %532 = vector.shape_cast %529 : vector<64xf32> to vector<1x64xf32>
    tpu.vector_store %arg15[%c0_274, %c128_275], %532 {strides = array<i32>} : memref<3x192xf32, #tpu.memory_space<vmem>>, vector<1x64xf32>,
    %533 = vector.extract_strided_slice %517 {offsets = [3, 0], sizes = [1, 64], strides = [1, 1]} : vector<9x64xf32> to vector<1x64xf32>
    %534 = vector.shape_cast %533 : vector<1x64xf32> to vector<64xf32>
    %c1_276 = arith.constant 1 : index
    %c0_277 = arith.constant 0 : index
    %535 = vector.load %arg15[%c1_276, %c0_277] : memref<3x192xf32, #tpu.memory_space<vmem>>, vector<1x64xf32>
    %536 = vector.shape_cast %535 : vector<1x64xf32> to vector<64xf32>
    %537 = vector.shape_cast %534 : vector<64xf32> to vector<1x64xf32>
    tpu.vector_store %arg15[%c1_276, %c0_277], %537 {strides = array<i32>} : memref<3x192xf32, #tpu.memory_space<vmem>>, vector<1x64xf32>,
    %538 = vector.extract_strided_slice %517 {offsets = [4, 0], sizes = [1, 64], strides = [1, 1]} : vector<9x64xf32> to vector<1x64xf32>
    %539 = vector.shape_cast %538 : vector<1x64xf32> to vector<64xf32>
    %c1_278 = arith.constant 1 : index
    %c64_279 = arith.constant 64 : index
    %540 = vector.load %arg15[%c1_278, %c64_279] : memref<3x192xf32, #tpu.memory_space<vmem>>, vector<1x64xf32>
    %541 = vector.shape_cast %540 : vector<1x64xf32> to vector<64xf32>
    %542 = vector.shape_cast %539 : vector<64xf32> to vector<1x64xf32>
    tpu.vector_store %arg15[%c1_278, %c64_279], %542 {strides = array<i32>} : memref<3x192xf32, #tpu.memory_space<vmem>>, vector<1x64xf32>,
    %543 = vector.extract_strided_slice %517 {offsets = [5, 0], sizes = [1, 64], strides = [1, 1]} : vector<9x64xf32> to vector<1x64xf32>
    %544 = vector.shape_cast %543 : vector<1x64xf32> to vector<64xf32>
    %c1_280 = arith.constant 1 : index
    %c128_281 = arith.constant 128 : index
    %545 = vector.load %arg15[%c1_280, %c128_281] : memref<3x192xf32, #tpu.memory_space<vmem>>, vector<1x64xf32>
    %546 = vector.shape_cast %545 : vector<1x64xf32> to vector<64xf32>
    %547 = vector.shape_cast %544 : vector<64xf32> to vector<1x64xf32>
    tpu.vector_store %arg15[%c1_280, %c128_281], %547 {strides = array<i32>} : memref<3x192xf32, #tpu.memory_space<vmem>>, vector<1x64xf32>,
    %548 = vector.extract_strided_slice %517 {offsets = [6, 0], sizes = [1, 64], strides = [1, 1]} : vector<9x64xf32> to vector<1x64xf32>
    %549 = vector.shape_cast %548 : vector<1x64xf32> to vector<64xf32>
    %c2_282 = arith.constant 2 : index
    %c0_283 = arith.constant 0 : index
    %550 = vector.load %arg15[%c2_282, %c0_283] : memref<3x192xf32, #tpu.memory_space<vmem>>, vector<1x64xf32>
    %551 = vector.shape_cast %550 : vector<1x64xf32> to vector<64xf32>
    %552 = vector.shape_cast %549 : vector<64xf32> to vector<1x64xf32>
    tpu.vector_store %arg15[%c2_282, %c0_283], %552 {strides = array<i32>} : memref<3x192xf32, #tpu.memory_space<vmem>>, vector<1x64xf32>,
    %553 = vector.extract_strided_slice %517 {offsets = [7, 0], sizes = [1, 64], strides = [1, 1]} : vector<9x64xf32> to vector<1x64xf32>
    %554 = vector.shape_cast %553 : vector<1x64xf32> to vector<64xf32>
    %c2_284 = arith.constant 2 : index
    %c64_285 = arith.constant 64 : index
    %555 = vector.load %arg15[%c2_284, %c64_285] : memref<3x192xf32, #tpu.memory_space<vmem>>, vector<1x64xf32>
    %556 = vector.shape_cast %555 : vector<1x64xf32> to vector<64xf32>
    %557 = vector.shape_cast %554 : vector<64xf32> to vector<1x64xf32>
    tpu.vector_store %arg15[%c2_284, %c64_285], %557 {strides = array<i32>} : memref<3x192xf32, #tpu.memory_space<vmem>>, vector<1x64xf32>,
    %558 = vector.extract_strided_slice %517 {offsets = [8, 0], sizes = [1, 64], strides = [1, 1]} : vector<9x64xf32> to vector<1x64xf32>
    %559 = vector.shape_cast %558 : vector<1x64xf32> to vector<64xf32>
    %c2_286 = arith.constant 2 : index
    %c128_287 = arith.constant 128 : index
    %560 = vector.load %arg15[%c2_286, %c128_287] : memref<3x192xf32, #tpu.memory_space<vmem>>, vector<1x64xf32>
    %561 = vector.shape_cast %560 : vector<1x64xf32> to vector<64xf32>
    %562 = vector.shape_cast %559 : vector<64xf32> to vector<1x64xf32>
    tpu.vector_store %arg15[%c2_286, %c128_287], %562 {strides = array<i32>} : memref<3x192xf32, #tpu.memory_space<vmem>>, vector<1x64xf32>,
    %c0_288 = arith.constant 0 : index
    %c0_289 = arith.constant 0 : index
    %563 = vector.load %arg15[%c0_288, %c0_289] : memref<3x192xf32, #tpu.memory_space<vmem>>, vector<1x192xf32>
    %564 = vector.shape_cast %563 : vector<1x192xf32> to vector<192xf32>
    %c0_290 = arith.constant 0 : index
    %c0_291 = arith.constant 0 : index
    %565 = vector.load %arg16[%c0_290, %c0_291] : memref<1x576xf32, #tpu.memory_space<vmem>>, vector<1x192xf32>
    %566 = vector.shape_cast %565 : vector<1x192xf32> to vector<192xf32>
    %567 = vector.shape_cast %564 : vector<192xf32> to vector<1x192xf32>
    tpu.vector_store %arg16[%c0_290, %c0_291], %567 {strides = array<i32>} : memref<1x576xf32, #tpu.memory_space<vmem>>, vector<1x192xf32>,
    %c1_292 = arith.constant 1 : index
    %c0_293 = arith.constant 0 : index
    %568 = vector.load %arg15[%c1_292, %c0_293] : memref<3x192xf32, #tpu.memory_space<vmem>>, vector<1x192xf32>
    %569 = vector.shape_cast %568 : vector<1x192xf32> to vector<192xf32>
    %c0_294 = arith.constant 0 : index
    %c192_295 = arith.constant 192 : index
    %570 = vector.load %arg16[%c0_294, %c192_295] : memref<1x576xf32, #tpu.memory_space<vmem>>, vector<1x192xf32>
    %571 = vector.shape_cast %570 : vector<1x192xf32> to vector<192xf32>
    %572 = vector.shape_cast %569 : vector<192xf32> to vector<1x192xf32>
    tpu.vector_store %arg16[%c0_294, %c192_295], %572 {strides = array<i32>} : memref<1x576xf32, #tpu.memory_space<vmem>>, vector<1x192xf32>,
    %c2_296 = arith.constant 2 : index
    %c0_297 = arith.constant 0 : index
    %573 = vector.load %arg15[%c2_296, %c0_297] : memref<3x192xf32, #tpu.memory_space<vmem>>, vector<1x192xf32>
    %574 = vector.shape_cast %573 : vector<1x192xf32> to vector<192xf32>
    %c0_298 = arith.constant 0 : index
    %c384_299 = arith.constant 384 : index
    %575 = vector.load %arg16[%c0_298, %c384_299] : memref<1x576xf32, #tpu.memory_space<vmem>>, vector<1x192xf32>
    %576 = vector.shape_cast %575 : vector<1x192xf32> to vector<192xf32>
    %577 = vector.shape_cast %574 : vector<192xf32> to vector<1x192xf32>
    tpu.vector_store %arg16[%c0_298, %c384_299], %577 {strides = array<i32>} : memref<1x576xf32, #tpu.memory_space<vmem>>, vector<1x192xf32>,
    %c0_300 = arith.constant 0 : index
    %c0_301 = arith.constant 0 : index
    %578 = vector.load %arg16[%c0_300, %c0_301] : memref<1x576xf32, #tpu.memory_space<vmem>>, vector<1x576xf32>
    %579 = arith.truncf %578 : vector<1x576xf32> to vector<1x576xbf16>
    %c0_302 = arith.constant 0 : index
    %c0_303 = arith.constant 0 : index
    %580 = vector.load %arg6[%c0_302, %c0_303] : memref<576x64xbf16, #tpu.memory_space<vmem>>, vector<576x64xbf16>
    %cst_304 = arith.constant dense<0.000000e+00> : vector<1x64xf32>
    %581 = tpu.matmul %579, %580, %cst_304 {dimension_numbers = #tpu.dot_dimension_numbers<[1], [0], [0], [1], [0, 0, 1, 1], [], []>} : vector<1x576xbf16>, vector<576x64xbf16>, vector<1x64xf32> -> vector<1x64xf32>
    %c0_305 = arith.constant 0 : index
    %c0_306 = arith.constant 0 : index
    %582 = vector.load %arg7[%c0_305, %c0_306] : memref<1x64xf32, #tpu.memory_space<vmem>>, vector<1x64xf32>
    %583 = arith.addf %581, %582 : vector<1x64xf32>
    %cst_307 = arith.constant 0.000000e+00 : f32
    %584 = vector.broadcast %cst_307 : f32 to vector<1x64xf32>
    %585 = arith.maximumf %583, %584 : vector<1x64xf32>
    %586 = vector.shape_cast %585 : vector<1x64xf32> to vector<64xf32>
    %c0_308 = arith.constant 0 : index
    %c0_309 = arith.constant 0 : index
    %587 = vector.load %arg17[%c0_308, %c0_309] : memref<1x64xf32, #tpu.memory_space<vmem>>, vector<1x64xf32>
    %588 = vector.shape_cast %587 : vector<1x64xf32> to vector<64xf32>
    %589 = vector.shape_cast %586 : vector<64xf32> to vector<1x64xf32>
    tpu.vector_store %arg17[%c0_308, %c0_309], %589 {strides = array<i32>} : memref<1x64xf32, #tpu.memory_space<vmem>>, vector<1x64xf32>,
    %c0_310 = arith.constant 0 : index
    %c0_311 = arith.constant 0 : index
    %590 = vector.load %arg17[%c0_310, %c0_311] : memref<1x64xf32, #tpu.memory_space<vmem>>, vector<1x64xf32>
    %591 = arith.truncf %590 : vector<1x64xf32> to vector<1x64xbf16>
    %c0_312 = arith.constant 0 : index
    %c0_313 = arith.constant 0 : index
    %592 = vector.load %arg8[%c0_312, %c0_313] : memref<64x512xbf16, #tpu.memory_space<vmem>>, vector<64x512xbf16>
    %cst_314 = arith.constant dense<0.000000e+00> : vector<1x512xf32>
    %593 = tpu.matmul %591, %592, %cst_314 {dimension_numbers = #tpu.dot_dimension_numbers<[1], [0], [0], [1], [0, 0, 1, 1], [], []>} : vector<1x64xbf16>, vector<64x512xbf16>, vector<1x512xf32> -> vector<1x512xf32>
    %c0_315 = arith.constant 0 : index
    %c0_316 = arith.constant 0 : index
    %594 = vector.load %arg9[%c0_315, %c0_316] : memref<1x512xf32, #tpu.memory_space<vmem>>, vector<1x512xf32>
    %595 = arith.addf %593, %594 : vector<1x512xf32>
    %cst_317 = arith.constant 0.000000e+00 : f32
    %596 = vector.broadcast %cst_317 : f32 to vector<1x512xf32>
    %597 = arith.maximumf %595, %596 : vector<1x512xf32>
    %598 = arith.truncf %597 : vector<1x512xf32> to vector<1x512xbf16>
    %c0_318 = arith.constant 0 : index
    %c0_319 = arith.constant 0 : index
    %599 = vector.load %arg10[%c0_318, %c0_319] : memref<512x128xbf16, #tpu.memory_space<vmem>>, vector<512x128xbf16>
    %cst_320 = arith.constant dense<0.000000e+00> : vector<1x128xf32>
    %600 = tpu.matmul %598, %599, %cst_320 {dimension_numbers = #tpu.dot_dimension_numbers<[1], [0], [0], [1], [0, 0, 1, 1], [], []>} : vector<1x512xbf16>, vector<512x128xbf16>, vector<1x128xf32> -> vector<1x128xf32>
    %c0_321 = arith.constant 0 : index
    %c0_322 = arith.constant 0 : index
    %601 = vector.load %arg11[%c0_321, %c0_322] : memref<1x128xf32, #tpu.memory_space<vmem>>, vector<1x128xf32>
    %602 = arith.addf %600, %601 : vector<1x128xf32>
    %c0_323 = arith.constant 0 : index
    %c0_324 = arith.constant 0 : index
    %c0_325 = arith.constant 0 : index
    %603 = vector.load %arg12[%c0_323, %c0_324, %c0_325] : memref<1x1x128xf32, #tpu.memory_space<vmem>>, vector<1x1x128xf32>
    %604 = vector.shape_cast %603 : vector<1x1x128xf32> to vector<1x128xf32>
    %605 = vector.shape_cast %602 : vector<1x128xf32> to vector<1x1x128xf32>
    tpu.vector_store %arg12[%c0_323, %c0_324, %c0_325], %605 {strides = array<i32>} : memref<1x1x128xf32, #tpu.memory_space<vmem>>, vector<1x1x128xf32>,
    return
  }
  func.func @transform_0(%arg0: i32) -> (i32, i32, i32) {
    %c0_i32 = arith.constant 0 : i32
    %c0_i32_0 = arith.constant 0 : i32
    %c0_i32_1 = arith.constant 0 : i32
    return %arg0, %c0_i32, %c0_i32_0 : i32, i32, i32
  }
  func.func @transform_1(%arg0: i32) -> (i32, i32) {
    %c0_i32 = arith.constant 0 : i32
    %c0_i32_0 = arith.constant 0 : i32
    %c0_i32_1 = arith.constant 0 : i32
    return %c0_i32, %c0_i32_0 : i32, i32
  }
  func.func @transform_2(%arg0: i32) -> (i32, i32) {
    %c0_i32 = arith.constant 0 : i32
    %c0_i32_0 = arith.constant 0 : i32
    %c0_i32_1 = arith.constant 0 : i32
    return %c0_i32, %c0_i32_0 : i32, i32
  }
  func.func @transform_3(%arg0: i32) -> (i32, i32) {
    %c0_i32 = arith.constant 0 : i32
    %c0_i32_0 = arith.constant 0 : i32
    %c0_i32_1 = arith.constant 0 : i32
    return %c0_i32, %c0_i32_0 : i32, i32
  }
  func.func @transform_4(%arg0: i32) -> (i32, i32) {
    %c0_i32 = arith.constant 0 : i32
    %c0_i32_0 = arith.constant 0 : i32
    %c0_i32_1 = arith.constant 0 : i32
    return %c0_i32, %c0_i32_0 : i32, i32
  }
  func.func @transform_5(%arg0: i32) -> (i32, i32) {
    %c0_i32 = arith.constant 0 : i32
    %c0_i32_0 = arith.constant 0 : i32
    %c0_i32_1 = arith.constant 0 : i32
    return %c0_i32, %c0_i32_0 : i32, i32
  }
  func.func @transform_6(%arg0: i32) -> (i32, i32) {
    %c0_i32 = arith.constant 0 : i32
    %c0_i32_0 = arith.constant 0 : i32
    %c0_i32_1 = arith.constant 0 : i32
    return %c0_i32, %c0_i32_0 : i32, i32
  }
  func.func @transform_7(%arg0: i32) -> (i32, i32) {
    %c0_i32 = arith.constant 0 : i32
    %c0_i32_0 = arith.constant 0 : i32
    %c0_i32_1 = arith.constant 0 : i32
    return %c0_i32, %c0_i32_0 : i32, i32
  }
  func.func @transform_8(%arg0: i32) -> (i32, i32) {
    %c0_i32 = arith.constant 0 : i32
    %c0_i32_0 = arith.constant 0 : i32
    %c0_i32_1 = arith.constant 0 : i32
    return %c0_i32, %c0_i32_0 : i32, i32
  }
  func.func @transform_9(%arg0: i32) -> (i32, i32) {
    %c0_i32 = arith.constant 0 : i32
    %c0_i32_0 = arith.constant 0 : i32
    %c0_i32_1 = arith.constant 0 : i32
    return %c0_i32, %c0_i32_0 : i32, i32
  }
  func.func @transform_10(%arg0: i32) -> (i32, i32) {
    %c0_i32 = arith.constant 0 : i32
    %c0_i32_0 = arith.constant 0 : i32
    %c0_i32_1 = arith.constant 0 : i32
    return %c0_i32, %c0_i32_0 : i32, i32
  }
  func.func @transform_11(%arg0: i32) -> (i32, i32, i32) {
    %c0_i32 = arith.constant 0 : i32
    %c0_i32_0 = arith.constant 0 : i32
    %c0_i32_1 = arith.constant 0 : i32
    return %arg0, %c0_i32, %c0_i32_0 : i32, i32, i32
  }
}

</mosaic_0001>

<bundles_post_ra>
// kernel: forward.1
= control target key start
LH: loop header
LB: loop body
LE: loop exit
PB: predicated region body
PF: predicated region fallthrough
CT: control target
= control target key end

     0   :  { %s4042_s0 = inlined_call_operand.vmem [shape: bf16[2,64,256], index: 0, kind: input, shape index: {}]   ;;  %s4043_s1 = inlined_call_operand.vmem [shape: bf16[256,32], index: 1, kind: input, shape index: {}]   ;;  %s4044_s2 = inlined_call_operand.vmem [shape: f32[1,32], index: 2, kind: input, shape index: {}]   ;;  %s4045_s3 = inlined_call_operand.vmem [shape: bf16[512,64], index: 3, kind: input, shape index: {}]   ;;  %s4046_s4 = inlined_call_operand.vmem [shape: f32[1,64], index: 4, kind: input, shape index: {}]   ;;  %s4047_s5 = inlined_call_operand.vmem [shape: bf16[576,64], index: 5, kind: input, shape index: {}]   ;;  %s4048_s6 = inlined_call_operand.vmem [shape: f32[1,64], index: 6, kind: input, shape index: {}]   ;;  %s4049_s7 = inlined_call_operand.vmem [shape: bf16[64,512], index: 7, kind: input, shape index: {}]   ;;  %s4050_s8 = inlined_call_operand.vmem [shape: f32[1,512], index: 8, kind: input, shape index: {}]   ;;  %s4051_s9 = inlined_call_operand.vmem [shape: bf16[512,128], index: 9, kind: input, shape index: {}]   ;;  %s4052_s10 = inlined_call_operand.vmem [shape: f32[1,128], index: 10, kind: input, shape index: {}]   ;;  %s4053_s11 = inlined_call_operand.hbm [shape: f32[2,1,128], index: 11, kind: output, shape index: {}]  }
   0x1   :  { %4054 = sst [smem:[#allocation11_spill]] %s4042_s0 }
   0x2   :  { %16 = vsyncpa [#allocation8], 0 }
   0x3   :  { %18 = vsyncpa [#allocation8 + $0x1], 0  ;;  %s3265_s17 = smov 0   ;;  %s3267_s18 = smov 0  }
   0x4   :  { %s3269_s19 = smov 0   ;;  %s3271_s20 = smov 0  }
   0x5 LB: > { %s3286_s21 = sadd.s32 4294967295, %s3196_s20   ;;  %s2589_s22 = sadd.s32 4294967294, %s3196_s20   ;;  %s3196_s20 = sphi %s3271_s20, %s4063_s20   ;;  %s3192_s19 = sphi %s3269_s19, %s4062_s19   ;;  %s3188_s18 = sphi %s3267_s18, %s4061_s18   ;;  %s3184_s17 = sphi %s3265_s17, %s4060_s17  }
   0x6   : > { %s3290_s23 = sadd.s32 1, %s3196_s20   ;;  %s267_s24 = sadd.s32 1, %s3192_s19 }
   0x7   : > { %s264_s25 = ssub.s32 %s3196_s20, %s3290_s23  ;;  %p277_p0 = scmp.ne.s32.totalorder %s3192_s19, %s3188_s18 }
   0x8   : > { %p265_p1 = scmp.eq.s32.totalorder %s264_s25, 0  ;;  %p278_p2 = scmp.eq.s32.totalorder %s3286_s21, 1 }
   0x9   : > { %p283_p3 = scmp.ne.s32.totalorder %s3188_s18, %s3184_s17  ;;  %p284_p4 = scmp.eq.s32.totalorder %s2589_s22, 1 }
   0xa   : > { %s3301_s26 = scalar_select %p265_p1, %s3192_s19, %s267_s24  }
   0xb   : > { %p3303_p5 = por %p278_p2, %p277_p0  ;;  %p3307_p6 = por %p284_p4, %p283_p3 }
   0xc   : > { %4055 = sst [smem:[#allocation10_spill]] %s3301_s26  ;;  %p2592_p7 = scmp.ge.s32.totalorder %s3196_s20, 1 }
   0xd   : > { %p340_p8 = scmp.lt.s32.totalorder %s3196_s20, 3 }
   0xf   : > { %p341_p9 = pnand %p2592_p7, %p340_p8 }
  0x10   : > { %p379_p10 = scmp.lt.s32.totalorder (!%p341_p9), %s3286_s21, 1  ;;  %s4058_s0 = sld [smem:[#allocation11_spill]] (!%p341_p9) }
  0x11   : > { %344 = sbr.rel (%p341_p9) target bundleno = 1695 (0x69f), region = 64  ;;  %s3199_s26 = smov (!%p341_p9), 64  }
  0x12   : > { %s2746_s25 = sshll.u32 (!%p341_p9), %s3286_s21, 4 }
  0x16   : > { %v2984_v0 = vld [vmem:[%s4043_s1 + $0x78] sm:$0xff]   ;;  %v2986_v2 = vld [vmem:[%s4043_s1 + $0x70] sm:$0xff]   ;;  %v2988_v4 = vld [vmem:[%s4043_s1 + $0x68] sm:$0xff]   ;;  %s380_s12 = scalar_select %p379_p10, %s3286_s21, 1  ;;  %vm641_vm0 = vcmask 253952   ;;  %vm648_vm1 = vcmask 516352  }
  0x17   : > { %v2985_v1 = vld [vmem:[%s4043_s1 + $0x38] sm:$0xff]   ;;  %2750 = vmatprep.subr.bf16.mxu0 %v2984_v0  ;;  %v2987_v3 = vld [vmem:[%s4043_s1 + $0x30] sm:$0xff]   ;;  %v2989_v5 = vld [vmem:[%s4043_s1 + $0x28] sm:$0xff]   ;;  %vm654_vm2 = vcmask 778752   ;;  %vm660_vm3 = vcmask 1041152   ;;  %vm941_vm4 = vcmask 523264  }
  0x18   : > { %2751 = vmatpush3.bf16.msra.mxu0 %v2985_v1  ;;  %v2990_v6 = vld [vmem:[%s4043_s1 + $0x60] sm:$0xff]   ;;  %s2749_s22 = sshll.u32 %s380_s12, 6  ;;  %v2992_v8 = vld [vmem:[%s4043_s1 + $0x58] sm:$0xff]   ;;  %v2994_v10 = vld [vmem:[%s4043_s1 + $0x50] sm:$0xff]   ;;  %vm1465_vm5 = vcmask 516096   ;;  %vm1473_vm6 = vcmask 1040896   ;;  %s2532_s12 = scalar_lea.hbm %s4053_s11, %s2746_s25 }
  0x19   : > { %2752 = vmatprep.subr.bf16.mxu0 %v2986_v2  ;;  %v2991_v7 = vld [vmem:[%s4043_s1 + $0x20] sm:$0xff]   ;;  %s3345_s30 = scalar_lea.vmem %s4058_s0, %s2749_s22  ;;  %v2993_v9 = vld [vmem:[%s4043_s1 + $0x18] sm:$0xff]   ;;  %v2995_v12 = vld [vmem:[%s4043_s1 + $0x10] sm:$0xff]   ;;  %s3200_s22 = smov 96   ;;  %vm3202_vm11 = vmmov 0  }
  0x1a   : > { %v3002_v11 = vld [vmem:[%s3345_s30 + $0x4] ss:$8 sps:$4 sm:$0xff]   ;;  %v3000_v17 = vld [vmem:[%s3345_s30] ss:$8 sps:$4 sm:$0xff]   ;;  %v3003_v18 = vld [vmem:[%s3345_s30 + $0x14] ss:$8 sps:$4 sm:$0xff]  }
  0x1b   : > { %600 = vmatprep.mubr.bf16.mxu0 %v3002_v11  ;;  %v2996_v13 = vld [vmem:[%s4043_s1 + $0x48] sm:$0xff]   ;;  %v2998_v15 = vld [vmem:[%s4043_s1 + $0x40] sm:$0xff]   ;;  %v3005_v19 = vld [vmem:[%s3345_s30 + $0x10] ss:$8 sps:$4 sm:$0xff]   ;;  %s3204_s21 = smov [#allocation7]  }
  0x1c   : > { %2753 = vmatpush3.bf16.msra.mxu0 %v2987_v3  ;;  %v2997_v14 = vld [vmem:[%s4043_s1 + $0x8] sm:$0xff]   ;;  %v2999_v16 = vld [vmem:[%s4043_s1] sm:$0xff]   ;;  %v3009_v22 = vld [vmem:[%s3345_s30 + $0x34] ss:$8 sps:$4 sm:$0xff]  }
  0x1d   : > { %2754 = vmatprep.subr.bf16.mxu0 %v2988_v4  ;;  %v3006_v20 = vld [vmem:[%s3345_s30 + $0x24] ss:$8 sps:$4 sm:$0xff]   ;;  %v3008_v21 = vld [vmem:[%s3345_s30 + $0x20] ss:$8 sps:$4 sm:$0xff]   ;;  %v3011_v23 = vld [vmem:[%s3345_s30 + $0x30] ss:$8 sps:$4 sm:$0xff]  }
  0x1e   : > { %v3379_v25 = vld [vmem:[%s4044_s2] ss:$0 sm:$0xff]  ;;  %s3198_s30 = smov 32  }
  0x20   : > { %2755 = vmatpush3.bf16.msra.mxu0 %v2989_v5 }
  0x21   : > { %2756 = vmatprep.subr.bf16.mxu0 %v2990_v6 }
  0x24   : > { %2757 = vmatpush3.bf16.msra.mxu0 %v2991_v7 }
  0x25   : > { %2758 = vmatprep.subr.bf16.mxu0 %v2992_v8 }
  0x28   : > { %2759 = vmatpush3.bf16.msra.mxu0 %v2993_v9 }
  0x29   : > { %2760 = vmatprep.subr.bf16.mxu0 %v2994_v10 }
  0x2c   : > { %2761 = vmatpush3.bf16.msra.mxu0 %v2995_v12 }
  0x2d   : > { %2762 = vmatprep.subr.bf16.mxu0 %v2996_v13 }
  0x30   : > { %2763 = vmatpush3.bf16.msra.mxu0 %v2997_v14 }
  0x31   : > { %2764 = vmatprep.subr.bf16.mxu0 %v2998_v15 }
  0x34   : > { %2765 = vmatpush3.bf16.msra.mxu0 %v2999_v16 }
  0x37   : > { %601 = vmatmul.mubr.bf16.vlgmr.msra.gmra.mxu0 %v3000_v17 }
  0x38   : > { %608 = vmatprep.mubr.bf16.mxu0 %v3003_v18 }
  0x3f   : > { %609 = vmatmul.mubr.bf16.gmra.mxu0 %v3005_v19 }
  0x40   : > { %616 = vmatprep.mubr.bf16.mxu0 %v3006_v20 }
  0x47   : > { %617 = vmatmul.mubr.bf16.gmra.mxu0 %v3008_v21 }
  0x48   : > { %624 = vmatprep.mubr.bf16.mxu0 %v3009_v22 }
  0x4f   : > { %625 = vmatmul.mubr.bf16.gmra.mxu0 %v3011_v23 }
  0xf7   : > { %v2766_v24 = vpop.f32.mrf.mxu0 }
  0xf9   : > { %v2767_v26 = vpop.f32.mrf.mxu0 }
  0xfa   : > { %v2768_v27 = vadd.f32 %v2767_v26, %v2766_v24 }
  0xfb   : > { %v2769_v28 = vpop.f32.mrf.mxu0 }
  0xfc   : > { %v603_v29 = vadd.f32 %v2768_v27, %v3379_v25 }
  0xfd   : > { %v2770_v30 = vpop.f32.mrf.mxu0 }
  0xfe   : > { %v633_v31 = vmax.f32 %v603_v29, 0.0  ;;  %v2771_v32 = vadd.f32 %v2770_v30, %v2769_v28 }
  0xff   : > { %v2772_v33 = vpop.f32.mrf.mxu0 }
 0x100   : > { %v606_v34 = vadd.f32 %v2771_v32, %v3379_v25  ;;  %v665_v35 = vrot.slane %v633_v31, 5  ;;  %v644_v36 = vrot.slane %v633_v31, 1  ;;  %642 = vst.msk [vmem:[#allocation2] sm:$0x1] %vm641_vm0, %v633_v31  ;;  %v662_v38 = vrot.slane %v633_v31, 4 }
 0x101   : > { %v2773_v37 = vpop.f32.mrf.mxu0  ;;  %v670_v42 = vrot.slane %v633_v31, 6  ;;  %v650_v43 = vrot.slane %v633_v31, 2  ;;  %v675_v50 = vrot.slane %v633_v31, 7  ;;  %v656_v51 = vrot.slane %v633_v31, 3 }
 0x102   : > { %v3384_v39 = vmax.f32 %v606_v34, 0.0  ;;  %666 = vrot.lane.b32.xlu1 %v665_v35, %s3198_s30  ;;  %645 = vrot.lane.b32.xlu0 %v644_v36, %s3198_s30  ;;  %v2774_v40 = vadd.f32 %v2773_v37, %v2772_v33  ;;  %664 = vst.msk [vmem:[#allocation2 + $0x8] sm:$0x1] %vm641_vm0, %v662_v38 }
 0x103   : > { %v2775_v41 = vpop.f32.mrf.mxu0 }
 0x104   : > { %v611_v44 = vadd.f32 %v2774_v40, %v3379_v25  ;;  %680 = vst.msk [vmem:[#allocation2 + $0x1] sm:$0x1] %vm641_vm0, %v3384_v39  ;;  %v697_v46 = vrot.slane %v3384_v39, 4  ;;  %v705_v58 = vrot.slane %v3384_v39, 6  ;;  %v682_v59 = vrot.slane %v3384_v39, 1 }
 0x105   : > { %v2776_v45 = vpop.f32.mrf.mxu0  ;;  %v710_v2 = vrot.slane %v3384_v39, 7  ;;  %v700_v3 = vrot.slane %v3384_v39, 5  ;;  %v687_v11 = vrot.slane %v3384_v39, 2  ;;  %v692_v18 = vrot.slane %v3384_v39, 3 }
 0x106   : > { %671 = vrot.lane.b32.xlu1 %v670_v42, %s3199_s26  ;;  %651 = vrot.lane.b32.xlu0 %v650_v43, %s3199_s26  ;;  %v3395_v47 = vmax.f32 %v611_v44, 0.0  ;;  %v2777_v48 = vadd.f32 %v2776_v45, %v2775_v41  ;;  %699 = vst.msk [vmem:[#allocation2 + $0x9] sm:$0x1] %vm641_vm0, %v697_v46 }
 0x107   : > { %v2778_v49 = vpop.f32.mrf.mxu0 }
 0x108   : > { %v614_v52 = vadd.f32 %v2777_v48, %v3379_v25  ;;  %715 = vst.msk [vmem:[#allocation2 + $0x2] sm:$0x1] %vm641_vm0, %v3395_v47  ;;  %v732_v54 = vrot.slane %v3395_v47, 4  ;;  %v735_v10 = vrot.slane %v3395_v47, 5  ;;  %v740_v17 = vrot.slane %v3395_v47, 6 }
 0x109   : > { %v2779_v53 = vpop.f32.mrf.mxu0  ;;  %v745_v22 = vrot.slane %v3395_v47, 7  ;;  %v717_v23 = vrot.slane %v3395_v47, 1  ;;  %v722_v26 = vrot.slane %v3395_v47, 2  ;;  %v727_v28 = vrot.slane %v3395_v47, 3 }
 0x10a   : > { %676 = vrot.lane.b32.xlu1 %v675_v50, %s3200_s22  ;;  %657 = vrot.lane.b32.xlu0 %v656_v51, %s3200_s22  ;;  %v3404_v55 = vmax.f32 %v614_v52, 0.0  ;;  %v2780_v56 = vadd.f32 %v2779_v53, %v2778_v49  ;;  %734 = vst.msk [vmem:[#allocation2 + $0xa] sm:$0x1] %vm641_vm0, %v732_v54 }
 0x10b   : > { %v2781_v57 = vpop.f32.mrf.mxu0 }
 0x10c   : > { %v619_v60 = vadd.f32 %v2780_v56, %v3379_v25  ;;  %750 = vst.msk [vmem:[#allocation2 + $0x3] sm:$0x1] %vm641_vm0, %v3404_v55  ;;  %v767_v62 = vrot.slane %v3404_v55, 4  ;;  %v770_v27 = vrot.slane %v3404_v55, 5  ;;  %v775_v29 = vrot.slane %v3404_v55, 6 }
 0x10d   : > { %v2782_v61 = vpop.f32.mrf.mxu0  ;;  %v757_v30 = vrot.slane %v3404_v55, 2  ;;  %v780_v31 = vrot.slane %v3404_v55, 7  ;;  %v762_v32 = vrot.slane %v3404_v55, 3 }
 0x10e   : > { %706 = vrot.lane.b32.xlu1 %v705_v58, %s3199_s26  ;;  %683 = vrot.lane.b32.xlu0 %v682_v59, %s3198_s30  ;;  %v3415_v63 = vmax.f32 %v619_v60, 0.0  ;;  %v2783_v0 = vadd.f32 %v2782_v61, %v2781_v57  ;;  %769 = vst.msk [vmem:[#allocation2 + $0xb] sm:$0x1] %vm641_vm0, %v767_v62 }
 0x10f   : > { %v2784_v1 = vpop.f32.mrf.mxu0 }
 0x110   : > { %v622_v4 = vadd.f32 %v2783_v0, %v3379_v25  ;;  %785 = vst.msk [vmem:[#allocation2 + $0x4] sm:$0x1] %vm641_vm0, %v3415_v63  ;;  %v802_v6 = vrot.slane %v3415_v63, 4  ;;  %v805_v33 = vrot.slane %v3415_v63, 5  ;;  %v787_v34 = vrot.slane %v3415_v63, 1 }
 0x111   : > { %v2785_v5 = vpop.f32.mrf.mxu0  ;;  %v810_v35 = vrot.slane %v3415_v63, 6  ;;  %v792_v36 = vrot.slane %v3415_v63, 2  ;;  %v815_v37 = vrot.slane %v3415_v63, 7  ;;  %v797_v38 = vrot.slane %v3415_v63, 3 }
 0x112   : > { %711 = vrot.lane.b32.xlu1 %v710_v2, %s3200_s22  ;;  %701 = vrot.lane.b32.xlu0 %v700_v3, %s3198_s30  ;;  %v3426_v7 = vmax.f32 %v622_v4, 0.0  ;;  %v2786_v8 = vadd.f32 %v2785_v5, %v2784_v1  ;;  %804 = vst.msk [vmem:[#allocation2 + $0xc] sm:$0x1] %vm641_vm0, %v802_v6 }
 0x113   : > { %v2787_v9 = vpop.f32.mrf.mxu0 }
 0x114   : > { %v627_v12 = vadd.f32 %v2786_v8, %v3379_v25  ;;  %820 = vst.msk [vmem:[#allocation2 + $0x5] sm:$0x1] %vm641_vm0, %v3426_v7  ;;  %v837_v14 = vrot.slane %v3426_v7, 4  ;;  %v840_v39 = vrot.slane %v3426_v7, 5  ;;  %v822_v40 = vrot.slane %v3426_v7, 1 }
 0x115   : > { %v2788_v13 = vpop.f32.mrf.mxu0  ;;  %v845_v41 = vrot.slane %v3426_v7, 6  ;;  %v827_v42 = vrot.slane %v3426_v7, 2  ;;  %v850_v43 = vrot.slane %v3426_v7, 7  ;;  %v832_v44 = vrot.slane %v3426_v7, 3 }
 0x116   : > { %736 = vrot.lane.b32.xlu1 %v735_v10, %s3198_s30  ;;  %688 = vrot.lane.b32.xlu0 %v687_v11, %s3199_s26  ;;  %v3437_v15 = vmax.f32 %v627_v12, 0.0  ;;  %v2789_v16 = vadd.f32 %v2788_v13, %v2787_v9  ;;  %839 = vst.msk [vmem:[#allocation2 + $0xd] sm:$0x1] %vm641_vm0, %v837_v14 }
 0x118   : > { %v630_v19 = vadd.f32 %v2789_v16, %v3379_v25  ;;  %855 = vst.msk [vmem:[#allocation2 + $0x6] sm:$0x1] %vm641_vm0, %v3437_v15  ;;  %v872_v20 = vrot.slane %v3437_v15, 4  ;;  %v752_v25 = vrot.slane %v3404_v55, 1  ;;  %v875_v45 = vrot.slane %v3437_v15, 5 }
 0x119   : > { %v857_v46 = vrot.slane %v3437_v15, 1  ;;  %v880_v47 = vrot.slane %v3437_v15, 6  ;;  %v862_v48 = vrot.slane %v3437_v15, 2  ;;  %v885_v55 = vrot.slane %v3437_v15, 7 }
 0x11a   : > { %741 = vrot.lane.b32.xlu1 %v740_v17, %s3199_s26  ;;  %693 = vrot.lane.b32.xlu0 %v692_v18, %s3200_s22  ;;  %v3448_v21 = vmax.f32 %v630_v19, 0.0  ;;  %874 = vst.msk [vmem:[#allocation2 + $0xe] sm:$0x1] %vm641_vm0, %v872_v20  ;;  %v867_v56 = vrot.slane %v3437_v15, 3  ;;  %v3012_v20 = vld [vmem:[%s4045_s3 + $0x78] sm:$0xff]  }
 0x11b   : > { %2790 = vmatprep.subr.bf16.mxu1 %v3012_v20  ;;  %v3043_v20 = vld [vmem:[%s4045_s3 + $0x80] sm:$0xff]  }
 0x11c   : > { %890 = vst.msk [vmem:[#allocation2 + $0x7] sm:$0x1] %vm641_vm0, %v3448_v21  ;;  %v907_v24 = vrot.slane %v3448_v21, 4  ;;  %v910_v49 = vrot.slane %v3448_v21, 5  ;;  %v892_v50 = vrot.slane %v3448_v21, 1  ;;  %v915_v51 = vrot.slane %v3448_v21, 6 }
 0x11d   : > { %v897_v52 = vrot.slane %v3448_v21, 2  ;;  %v920_v53 = vrot.slane %v3448_v21, 7  ;;  %v902_v54 = vrot.slane %v3448_v21, 3 }
 0x11e   : > { %746 = vrot.lane.b32.xlu1 %v745_v22, %s3200_s22  ;;  %718 = vrot.lane.b32.xlu0 %v717_v23, %s3198_s30  ;;  %909 = vst.msk [vmem:[#allocation2 + $0xf] sm:$0x1] %vm641_vm0, %v907_v24  ;;  %v3013_v24 = vld [vmem:[%s4045_s3 + $0x38] sm:$0xff]  }
 0x11f   : > { %2791 = vmatpush3.bf16.msra.mxu1 %v3013_v24 }
 0x122   : > { %753 = vrot.lane.b32.xlu1 %v752_v25, %s3198_s30  ;;  %723 = vrot.lane.b32.xlu0 %v722_v26, %s3199_s26  ;;  %v3014_v25 = vld [vmem:[%s4045_s3 + $0x70] sm:$0xff]  }
 0x123   : > { %v3015_v26 = vld [vmem:[%s4045_s3 + $0x30] sm:$0xff]   ;;  %2792 = vmatprep.subr.bf16.mxu1 %v3014_v25 }
 0x124   : > { %2793 = vmatpush3.bf16.msra.mxu1 %v3015_v26 }
 0x126   : > { %771 = vrot.lane.b32.xlu1 %v770_v27, %s3198_s30  ;;  %728 = vrot.lane.b32.xlu0 %v727_v28, %s3200_s22 }
 0x12a   : > { %776 = vrot.lane.b32.xlu1 %v775_v29, %s3199_s26  ;;  %758 = vrot.lane.b32.xlu0 %v757_v30, %s3199_s26  ;;  %v3016_v29 = vld [vmem:[%s4045_s3 + $0x68] sm:$0xff]  }
 0x12b   : > { %2794 = vmatprep.subr.bf16.mxu1 %v3016_v29 }
 0x12e   : > { %781 = vrot.lane.b32.xlu1 %v780_v31, %s3200_s22  ;;  %763 = vrot.lane.b32.xlu0 %v762_v32, %s3200_s22 }
 0x132   : > { %806 = vrot.lane.b32.xlu1 %v805_v33, %s3198_s30  ;;  %788 = vrot.lane.b32.xlu0 %v787_v34, %s3198_s30  ;;  %v3017_v34 = vld [vmem:[%s4045_s3 + $0x28] sm:$0xff]  }
 0x133   : > { %2795 = vmatpush3.bf16.msra.mxu1 %v3017_v34 }
 0x136   : > { %811 = vrot.lane.b32.xlu1 %v810_v35, %s3199_s26  ;;  %793 = vrot.lane.b32.xlu0 %v792_v36, %s3199_s26  ;;  %v3018_v35 = vld [vmem:[%s4045_s3 + $0x60] sm:$0xff]  }
 0x137   : > { %2796 = vmatprep.subr.bf16.mxu1 %v3018_v35 }
 0x13a   : > { %816 = vrot.lane.b32.xlu1 %v815_v37, %s3200_s22  ;;  %798 = vrot.lane.b32.xlu0 %v797_v38, %s3200_s22  ;;  %v3019_v38 = vld [vmem:[%s4045_s3 + $0x20] sm:$0xff]  }
 0x13b   : > { %2797 = vmatpush3.bf16.msra.mxu1 %v3019_v38 }
 0x13e   : > { %841 = vrot.lane.b32.xlu1 %v840_v39, %s3198_s30  ;;  %823 = vrot.lane.b32.xlu0 %v822_v40, %s3198_s30  ;;  %v3020_v39 = vld [vmem:[%s4045_s3 + $0x58] sm:$0xff]  }
 0x13f   : > { %v3021_v40 = vld [vmem:[%s4045_s3 + $0x18] sm:$0xff]   ;;  %2798 = vmatprep.subr.bf16.mxu1 %v3020_v39 }
 0x140   : > { %2799 = vmatpush3.bf16.msra.mxu1 %v3021_v40 }
 0x142   : > { %846 = vrot.lane.b32.xlu1 %v845_v41, %s3199_s26  ;;  %828 = vrot.lane.b32.xlu0 %v827_v42, %s3199_s26 }
 0x146   : > { %851 = vrot.lane.b32.xlu1 %v850_v43, %s3200_s22  ;;  %833 = vrot.lane.b32.xlu0 %v832_v44, %s3200_s22  ;;  %v3022_v43 = vld [vmem:[%s4045_s3 + $0x50] sm:$0xff]  }
 0x147   : > { %2800 = vmatprep.subr.bf16.mxu1 %v3022_v43 }
 0x14a   : > { %876 = vrot.lane.b32.xlu1 %v875_v45, %s3198_s30  ;;  %858 = vrot.lane.b32.xlu0 %v857_v46, %s3198_s30 }
 0x14e   : > { %881 = vrot.lane.b32.xlu1 %v880_v47, %s3199_s26  ;;  %863 = vrot.lane.b32.xlu0 %v862_v48, %s3199_s26  ;;  %v3023_v48 = vld [vmem:[%s4045_s3 + $0x10] sm:$0xff]  }
 0x14f   : > { %2801 = vmatpush3.bf16.msra.mxu1 %v3023_v48 }
 0x152   : > { %911 = vrot.lane.b32.xlu1 %v910_v49, %s3198_s30  ;;  %893 = vrot.lane.b32.xlu0 %v892_v50, %s3198_s30  ;;  %v3024_v49 = vld [vmem:[%s4045_s3 + $0xf8] sm:$0xff]   ;;  %s377_s30 = sand.u32 1, %s3188_s18  }
 0x153   : > { %v3025_v50 = vld [vmem:[%s4045_s3 + $0xb8] sm:$0xff]   ;;  %2812 = vmatprep.subr.bf16.mxu0 %v3024_v49  ;;  %s378_s29 = scalar_lea.vmem [#allocation7], %s377_s30  ;;  %s2522_s16 = scalar_lea.sflag [#allocation8], %s377_s30 }
 0x154   : > { %2813 = vmatpush3.bf16.msra.mxu0 %v3025_v50  ;;  %s2534_s13 = sshll.u32 %s378_s29, 4  ;;  %s2535_s13 = int_to_ptr.vmem [resolvable:$true] %s2534_s13 }
 0x155   : > { %s3136_s24 = scalar_lea.vmem %s2535_s13, 16 }
 0x156   : > { %916 = vrot.lane.b32.xlu1 %v915_v51, %s3199_s26  ;;  %898 = vrot.lane.b32.xlu0 %v897_v52, %s3199_s26  ;;  %v3026_v51 = vld [vmem:[%s4045_s3 + $0x48] sm:$0xff]   ;;  %p3137_p11 = scmp.ne.s32.totalorder %s2535_s13, %s3136_s24 }
 0x157   : > { %2802 = vmatprep.subr.bf16.mxu1 %v3026_v51 }
 0x158   : > { %p3138_p12 = pnand %p3137_p11, %p3303_p5 }
 0x15a   : > { %921 = vrot.lane.b32.xlu1 %v920_v53, %s3200_s22  ;;  %903 = vrot.lane.b32.xlu0 %v902_v54, %s3200_s22  ;;  %v3027_v54 = vld [vmem:[%s4045_s3 + $0x8] sm:$0xff]   ;;  %p3139_p13 = pneg %p3138_p12 }
 0x15b   : > { %2803 = vmatpush3.bf16.msra.mxu1 %v3027_v54 }
 0x15e   : > { %886 = vrot.lane.b32.xlu1 %v885_v55, %s3200_s22  ;;  %868 = vrot.lane.b32.xlu0 %v867_v56, %s3200_s22  ;;  %v3028_v55 = vld [vmem:[%s4045_s3 + $0xf0] sm:$0xff]   ;;  %s3140_s22 = sshll.u32 %s3204_s21, 4  ;;  %s3141_s22 = int_to_ptr.vmem [resolvable:$false] %s3140_s22 }
 0x15f   : > { %v3029_v56 = vld [vmem:[%s4045_s3 + $0xb0] sm:$0xff]   ;;  %2814 = vmatprep.subr.bf16.mxu0 %v3028_v55  ;;  %p3143_p0 = scmp.lt.s32.totalorder %s2535_s13, %s3141_s22 }
 0x160   : > { %2815 = vmatpush3.bf16.msra.mxu0 %v3029_v56 }
 0x174   : > { %v667_v57 = vpop.permute.xlu1 %666  ;;  %v646_v58 = vpop.permute.xlu0 %645 }
 0x175   : > { %669 = vst.msk [vmem:[#allocation2 + $0x8] sm:$0x1] %vm648_vm1, %v667_v57  ;;  %649 = vst.msk [vmem:[#allocation2] sm:$0x1] %vm648_vm1, %v646_v58  ;;  %v3030_v57 = vld [vmem:[%s4045_s3 + $0x40] sm:$0xff]   ;;  %v3032_v58 = vld [vmem:[%s4045_s3 + $0xe8] sm:$0xff]  }
 0x176   : > { %2804 = vmatprep.subr.bf16.mxu1 %v3030_v57  ;;  %2816 = vmatprep.subr.bf16.mxu0 %v3032_v58 }
 0x178   : > { %v672_v59 = vpop.permute.xlu1 %671  ;;  %v652_v60 = vpop.permute.xlu0 %651 }
 0x179   : > { %674 = vst.msk [vmem:[#allocation2 + $0x8] sm:$0x1] %vm654_vm2, %v672_v59  ;;  %655 = vst.msk [vmem:[#allocation2] sm:$0x1] %vm654_vm2, %v652_v60  ;;  %v3031_v59 = vld [vmem:[%s4045_s3] sm:$0xff]  }
 0x17a   : > { %2805 = vmatpush3.bf16.msra.mxu1 %v3031_v59 }
 0x17c   : > { %v677_v61 = vpop.permute.xlu1 %676  ;;  %v658_v62 = vpop.permute.xlu0 %657 }
 0x17d   : > { %679 = vst.msk [vmem:[#allocation2 + $0x8] sm:$0x1] %vm660_vm3, %v677_v61  ;;  %661 = vst.msk [vmem:[#allocation2] sm:$0x1] %vm660_vm3, %v658_v62  ;;  %v3033_v62 = vld [vmem:[%s4045_s3 + $0xa8] sm:$0xff]  }
 0x17e   : > { %2817 = vmatpush3.bf16.msra.mxu0 %v3033_v62 }
 0x180   : > { %v707_v63 = vpop.permute.xlu1 %706  ;;  %v684_v0 = vpop.permute.xlu0 %683 }
 0x181   : > { %686 = vst.msk [vmem:[#allocation2 + $0x1] sm:$0x1] %vm648_vm1, %v684_v0 }
 0x184   : > { %v978_v1 = vld [vmem:[#allocation2 + $0x8] ss:$0 sm:$0xff]  ;;  %v925_v2 = vld [vmem:[#allocation2] ss:$0 sm:$0xff]  ;;  %v712_v3 = vpop.permute.xlu1 %711  ;;  %v702_v4 = vpop.permute.xlu0 %701 }
 0x185   : > { %979 = vst [vmem:[#allocation3 + $0x2] sm:$0x1] %v978_v1  ;;  %926 = vst [vmem:[#allocation3] sm:$0x1] %v925_v2  ;;  %939 = vrot.lane.b32.xlu1 %v978_v1, %s3199_s26  ;;  %937 = vrot.lane.b32.xlu0 %v925_v2, %s3199_s26 }
 0x186   : > { %704 = vst.msk [vmem:[#allocation2 + $0x9] sm:$0x1] %vm648_vm1, %v702_v4  ;;  %v3035_v4 = vld [vmem:[%s4045_s3 + $0xa0] sm:$0xff]  }
 0x187   : > { %709 = vst.msk [vmem:[#allocation2 + $0x9] sm:$0x1] %vm654_vm2, %v707_v63 }
 0x188   : > { %714 = vst.msk [vmem:[#allocation2 + $0x9] sm:$0x1] %vm660_vm3, %v712_v3  ;;  %v737_v5 = vpop.permute.xlu1 %736  ;;  %v689_v6 = vpop.permute.xlu0 %688  ;;  %v3034_v3 = vld [vmem:[%s4045_s3 + $0xe0] sm:$0xff]  }
 0x189   : > { %739 = vst.msk [vmem:[#allocation2 + $0xa] sm:$0x1] %vm648_vm1, %v737_v5  ;;  %2818 = vmatprep.subr.bf16.mxu0 %v3034_v3  ;;  %v3036_v5 = vld [vmem:[%s4045_s3 + $0xd8] sm:$0xff]  }
 0x18a   : > { %691 = vst.msk [vmem:[#allocation2 + $0x1] sm:$0x1] %vm654_vm2, %v689_v6  ;;  %2819 = vmatpush3.bf16.msra.mxu0 %v3035_v4 }
 0x18b   : > { %2820 = vmatprep.subr.bf16.mxu0 %v3036_v5 }
 0x18c   : > { %v742_v7 = vpop.permute.xlu1 %741  ;;  %v694_v8 = vpop.permute.xlu0 %693 }
 0x18d   : > { %744 = vst.msk [vmem:[#allocation2 + $0xa] sm:$0x1] %vm654_vm2, %v742_v7 }
 0x18e   : > { %696 = vst.msk [vmem:[#allocation2 + $0x1] sm:$0x1] %vm660_vm3, %v694_v8  ;;  %v3037_v8 = vld [vmem:[%s4045_s3 + $0x98] sm:$0xff]  }
 0x18f   : > { %v946_v9 = vld [vmem:[#allocation2 + $0x9] ss:$0 sm:$0xff]  ;;  %2821 = vmatpush3.bf16.msra.mxu0 %v3037_v8 }
 0x190   : > { %951 = vrot.lane.b32.xlu1 %v946_v9, %s3199_s26  ;;  %981 = vst [vmem:[#allocation3 + $0xa] sm:$0x1] %v946_v9  ;;  %v747_v10 = vpop.permute.xlu1 %746  ;;  %v719_v11 = vpop.permute.xlu0 %718 }
 0x191   : > { %749 = vst.msk [vmem:[#allocation2 + $0xa] sm:$0x1] %vm660_vm3, %v747_v10 }
 0x192   : > { %721 = vst.msk [vmem:[#allocation2 + $0x2] sm:$0x1] %vm648_vm1, %v719_v11  ;;  %v3038_v11 = vld [vmem:[%s4045_s3 + $0xd0] sm:$0xff]  }
 0x193   : > { %2822 = vmatprep.subr.bf16.mxu0 %v3038_v11 }
 0x194   : > { %v754_v12 = vpop.permute.xlu1 %753  ;;  %v724_v13 = vpop.permute.xlu0 %723 }
 0x195   : > { %v945_v14 = vld [vmem:[#allocation2 + $0x1] ss:$0 sm:$0xff]  ;;  %756 = vst.msk [vmem:[#allocation2 + $0x3] sm:$0x1] %vm648_vm1, %v754_v12  ;;  %v3039_v12 = vld [vmem:[%s4045_s3 + $0x90] sm:$0xff]  }
 0x196   : > { %726 = vst.msk [vmem:[#allocation2 + $0x2] sm:$0x1] %vm654_vm2, %v724_v13  ;;  %949 = vrot.lane.b32.xlu0 %v945_v14, %s3199_s26  ;;  %928 = vst [vmem:[#allocation3 + $0x8] sm:$0x1] %v945_v14  ;;  %2823 = vmatpush3.bf16.msra.mxu0 %v3039_v12 }
 0x198   : > { %v982_v15 = vld [vmem:[#allocation2 + $0xa] ss:$0 sm:$0xff]  ;;  %v772_v16 = vpop.permute.xlu1 %771  ;;  %v729_v17 = vpop.permute.xlu0 %728 }
 0x199   : > { %983 = vst [vmem:[#allocation3 + $0x12] sm:$0x1] %v982_v15  ;;  %1039 = vst [vmem:[#allocation3 + $0x5] sm:$0x1] %v982_v15  ;;  %1000 = vrot.lane.b32.xlu1 %v982_v15, %s3199_s26 }
 0x19a   : > { %774 = vst.msk [vmem:[#allocation2 + $0xb] sm:$0x1] %vm648_vm1, %v772_v16  ;;  %v3041_v16 = vld [vmem:[%s4045_s3 + $0x88] sm:$0xff]  }
 0x19b   : > { %731 = vst.msk [vmem:[#allocation2 + $0x2] sm:$0x1] %vm660_vm3, %v729_v17  ;;  %v3042_v17 = vld [vmem:[%s4045_s3 + $0xc0] sm:$0xff]  }
 0x19c   : > { %v777_v18 = vpop.permute.xlu1 %776  ;;  %v759_v19 = vpop.permute.xlu0 %758 }
 0x19d   : > { %779 = vst.msk [vmem:[#allocation2 + $0xb] sm:$0x1] %vm654_vm2, %v777_v18  ;;  %761 = vst.msk [vmem:[#allocation2 + $0x3] sm:$0x1] %vm654_vm2, %v759_v19  ;;  %962 = vrot.lane.b32.xlu1 %v982_v15, %s3199_s26  ;;  %v3040_v15 = vld [vmem:[%s4045_s3 + $0xc8] sm:$0xff]  }
 0x19e   : > { %2824 = vmatprep.subr.bf16.mxu0 %v3040_v15 }
 0x19f   : > { %2825 = vmatpush3.bf16.msra.mxu0 %v3041_v16 }
 0x1a0   : > { %v782_v22 = vpop.permute.xlu1 %781  ;;  %v764_v23 = vpop.permute.xlu0 %763  ;;  %2826 = vmatprep.subr.bf16.mxu0 %v3042_v17 }
 0x1a1   : > { %784 = vst.msk [vmem:[#allocation2 + $0xb] sm:$0x1] %vm660_vm3, %v782_v22  ;;  %766 = vst.msk [vmem:[#allocation2 + $0x3] sm:$0x1] %vm660_vm3, %v764_v23 }
 0x1a2   : > { %v929_v21 = vld [vmem:[#allocation2 + $0x2] ss:$0 sm:$0xff] }
 0x1a3   : > { %930 = vst [vmem:[#allocation3 + $0x10] sm:$0x1] %v929_v21  ;;  %987 = vst [vmem:[#allocation3 + $0x3] sm:$0x1] %v929_v21  ;;  %998 = vrot.lane.b32.xlu0 %v929_v21, %s3199_s26  ;;  %2827 = vmatpush3.bf16.msra.mxu0 %v3043_v20 }
 0x1a4   : > { %v807_v27 = vpop.permute.xlu1 %806  ;;  %v789_v28 = vpop.permute.xlu0 %788 }
 0x1a5   : > { %809 = vst.msk [vmem:[#allocation2 + $0xc] sm:$0x1] %vm648_vm1, %v807_v27  ;;  %791 = vst.msk [vmem:[#allocation2 + $0x4] sm:$0x1] %vm648_vm1, %v789_v28 }
 0x1a7   : > { %960 = vrot.lane.b32.xlu0 %v929_v21, %s3199_s26 }
 0x1a8   : > { %v984_v30 = vld [vmem:[#allocation2 + $0xb] ss:$0 sm:$0xff]  ;;  %v931_v31 = vld [vmem:[#allocation2 + $0x3] ss:$0 sm:$0xff]  ;;  %v812_v32 = vpop.permute.xlu1 %811  ;;  %v794_v33 = vpop.permute.xlu0 %793 }
 0x1a9   : > { %985 = vst [vmem:[#allocation3 + $0x1a] sm:$0x1] %v984_v30  ;;  %932 = vst [vmem:[#allocation3 + $0x18] sm:$0x1] %v931_v31  ;;  %1011 = vrot.lane.b32.xlu1 %v984_v30, %s3199_s26 }
 0x1aa   : > { %814 = vst.msk [vmem:[#allocation2 + $0xc] sm:$0x1] %vm654_vm2, %v812_v32  ;;  %796 = vst.msk [vmem:[#allocation2 + $0x4] sm:$0x1] %vm654_vm2, %v794_v33 }
 0x1ab   : > { %1009 = vrot.lane.b32.xlu0 %v931_v31, %s3199_s26  ;;  %989 = vst [vmem:[#allocation3 + $0xb] sm:$0x1] %v931_v31  ;;  %1041 = vst [vmem:[#allocation3 + $0xd] sm:$0x1] %v984_v30 }
 0x1ac   : > { %v817_v36 = vpop.permute.xlu1 %816  ;;  %v799_v37 = vpop.permute.xlu0 %798 }
 0x1ad   : > { %819 = vst.msk [vmem:[#allocation2 + $0xc] sm:$0x1] %vm660_vm3, %v817_v36  ;;  %801 = vst.msk [vmem:[#allocation2 + $0x4] sm:$0x1] %vm660_vm3, %v799_v37  ;;  %973 = vrot.lane.b32.xlu1 %v984_v30, %s3199_s26 }
 0x1af   : > { %971 = vrot.lane.b32.xlu0 %v931_v31, %s3199_s26 }
 0x1b0   : > { %v842_v41 = vpop.permute.xlu1 %841  ;;  %v824_v42 = vpop.permute.xlu0 %823 }
 0x1b1   : > { %844 = vst.msk [vmem:[#allocation2 + $0xd] sm:$0x1] %vm648_vm1, %v842_v41  ;;  %826 = vst.msk [vmem:[#allocation2 + $0x5] sm:$0x1] %vm648_vm1, %v824_v42 }
 0x1b4   : > { %v1042_v44 = vld [vmem:[#allocation2 + $0xc] ss:$0 sm:$0xff]  ;;  %v990_v45 = vld [vmem:[#allocation2 + $0x4] ss:$0 sm:$0xff]  ;;  %v847_v46 = vpop.permute.xlu1 %846  ;;  %v829_v47 = vpop.permute.xlu0 %828 }
 0x1b5   : > { %1043 = vst [vmem:[#allocation3 + $0x15] sm:$0x1] %v1042_v44  ;;  %1099 = vst [vmem:[#allocation3 + $0x20] sm:$0x1] %v1042_v44  ;;  %1060 = vrot.lane.b32.xlu1 %v1042_v44, %s3199_s26  ;;  %1058 = vrot.lane.b32.xlu0 %v990_v45, %s3199_s26 }
 0x1b6   : > { %991 = vst [vmem:[#allocation3 + $0x13] sm:$0x1] %v990_v45  ;;  %1047 = vst [vmem:[#allocation3 + $0x6] sm:$0x1] %v990_v45 }
 0x1b7   : > { %849 = vst.msk [vmem:[#allocation2 + $0xd] sm:$0x1] %vm654_vm2, %v847_v46  ;;  %831 = vst.msk [vmem:[#allocation2 + $0x5] sm:$0x1] %vm654_vm2, %v829_v47 }
 0x1b8   : > { %v852_v52 = vpop.permute.xlu1 %851  ;;  %v834_v53 = vpop.permute.xlu0 %833 }
 0x1b9   : > { %854 = vst.msk [vmem:[#allocation2 + $0xd] sm:$0x1] %vm660_vm3, %v852_v52  ;;  %836 = vst.msk [vmem:[#allocation2 + $0x5] sm:$0x1] %vm660_vm3, %v834_v53  ;;  %1022 = vrot.lane.b32.xlu1 %v1042_v44, %s3199_s26  ;;  %1020 = vrot.lane.b32.xlu0 %v990_v45, %s3199_s26 }
 0x1bc   : > { %v877_v60 = vpop.permute.xlu1 %876  ;;  %v859_v61 = vpop.permute.xlu0 %858  ;;  %v1110_v59 = vld [vmem:[#allocation3 + $0x20] sm:$0x1] }
 0x1bd   : > { %879 = vst.msk [vmem:[#allocation2 + $0xe] sm:$0x1] %vm648_vm1, %v877_v60  ;;  %861 = vst.msk [vmem:[#allocation2 + $0x6] sm:$0x1] %vm648_vm1, %v859_v61 }
 0x1c0   : > { %v1044_v63 = vld [vmem:[#allocation2 + $0xd] ss:$0 sm:$0xff]  ;;  %v992_v0 = vld [vmem:[#allocation2 + $0x5] ss:$0 sm:$0xff]  ;;  %v882_v1 = vpop.permute.xlu1 %881  ;;  %v864_v2 = vpop.permute.xlu0 %863 }
 0x1c1   : > { %1045 = vst [vmem:[#allocation3 + $0x1d] sm:$0x1] %v1044_v63  ;;  %993 = vst [vmem:[#allocation3 + $0x1b] sm:$0x1] %v992_v0  ;;  %1071 = vrot.lane.b32.xlu1 %v1044_v63, %s3199_s26  ;;  %1069 = vrot.lane.b32.xlu0 %v992_v0, %s3199_s26 }
 0x1c2   : > { %884 = vst.msk [vmem:[#allocation2 + $0xe] sm:$0x1] %vm654_vm2, %v882_v1  ;;  %866 = vst.msk [vmem:[#allocation2 + $0x6] sm:$0x1] %vm654_vm2, %v864_v2 }
 0x1c3   : > { %1049 = vst [vmem:[#allocation3 + $0xe] sm:$0x1] %v992_v0  ;;  %1101 = vst [vmem:[#allocation3 + $0x28] sm:$0x1] %v1044_v63 }
 0x1c4   : > { %v912_v6 = vpop.permute.xlu1 %911  ;;  %v894_v7 = vpop.permute.xlu0 %893 }
 0x1c5   : > { %914 = vst.msk [vmem:[#allocation2 + $0xf] sm:$0x1] %vm648_vm1, %v912_v6  ;;  %896 = vst.msk [vmem:[#allocation2 + $0x7] sm:$0x1] %vm648_vm1, %v894_v7  ;;  %1033 = vrot.lane.b32.xlu1 %v1044_v63, %s3199_s26  ;;  %1031 = vrot.lane.b32.xlu0 %v992_v0, %s3199_s26 }
 0x1c8   : > { %v917_v9 = vpop.permute.xlu1 %916  ;;  %v899_v10 = vpop.permute.xlu0 %898 }
 0x1c9   : > { %919 = vst.msk [vmem:[#allocation2 + $0xf] sm:$0x1] %vm654_vm2, %v917_v9  ;;  %901 = vst.msk [vmem:[#allocation2 + $0x7] sm:$0x1] %vm654_vm2, %v899_v10 }
 0x1ca   : > { %v1111_v57 = vld [vmem:[#allocation3 + $0x28] sm:$0x1] }
 0x1cc   : > { %v922_v13 = vpop.permute.xlu1 %921  ;;  %v904_v14 = vpop.permute.xlu0 %903 }
 0x1cd   : > { %924 = vst.msk [vmem:[#allocation2 + $0xf] sm:$0x1] %vm660_vm3, %v922_v13  ;;  %906 = vst.msk [vmem:[#allocation2 + $0x7] sm:$0x1] %vm660_vm3, %v904_v14  ;;  %v2620_v13 = vld [vmem:[%s4046_s4] ss:$0 sm:$0xff] }
 0x1d0   : > { %v887_v18 = vpop.permute.xlu1 %886  ;;  %v869_v19 = vpop.permute.xlu0 %868 }
 0x1d1   : > { %889 = vst.msk [vmem:[#allocation2 + $0xe] sm:$0x1] %vm660_vm3, %v887_v18  ;;  %871 = vst.msk [vmem:[#allocation2 + $0x6] sm:$0x1] %vm660_vm3, %v869_v19 }
 0x1d4   : > { %v1104_v21 = vld [vmem:[#allocation2 + $0xf] ss:$0 sm:$0xff]  ;;  %v1052_v22 = vld [vmem:[#allocation2 + $0x7] ss:$0 sm:$0xff] }
 0x1d5   : > { %1105 = vst [vmem:[#allocation3 + $0x38] sm:$0x1] %v1104_v21  ;;  %1053 = vst [vmem:[#allocation3 + $0x1e] sm:$0x1] %v1052_v22  ;;  %1093 = vrot.lane.b32.xlu1 %v1104_v21, %s3199_s26  ;;  %1091 = vrot.lane.b32.xlu0 %v1052_v22, %s3199_s26 }
 0x1d8   : > { %v1102_v23 = vld [vmem:[#allocation2 + $0xe] ss:$0 sm:$0xff]  ;;  %v1050_v24 = vld [vmem:[#allocation2 + $0x6] ss:$0 sm:$0xff] }
 0x1d9   : > { %1103 = vst [vmem:[#allocation3 + $0x30] sm:$0x1] %v1102_v23  ;;  %1051 = vst [vmem:[#allocation3 + $0x16] sm:$0x1] %v1050_v24  ;;  %1082 = vrot.lane.b32.xlu1 %v1102_v23, %s3199_s26  ;;  %1080 = vrot.lane.b32.xlu0 %v1050_v24, %s3199_s26  ;;  %v3044_v23 = vld [vmem:[%s4047_s5 + $0x78] sm:$0xff]  }
 0x1da   : > { %v3045_v24 = vld [vmem:[%s4047_s5 + $0x38] sm:$0xff]   ;;  %2834 = vmatprep.subr.bf16.mxu1 %v3044_v23 }
 0x1dc   : > { %v1113_v4 = vld [vmem:[#allocation3 + $0x38] sm:$0x1] }
 0x1e0   : > { %v1112_v7 = vld [vmem:[#allocation3 + $0x30] sm:$0x1] }
 0x1f7   : > { %v940_v25 = vpop.permute.xlu1 %939  ;;  %v938_v26 = vpop.permute.xlu0 %937 }
 0x1f8   : > { %v942_v27 = vsel %vm941_vm4, %v938_v26, %v940_v25  ;;  %v3046_v25 = vld [vmem:[%s4047_s5 + $0xf8] sm:$0xff]  }
 0x1f9   : > { %944 = vst [vmem:[#allocation3 + $0x1] sm:$0x1] %v942_v27  ;;  %2856 = vmatprep.subr.bf16.mxu0 %v3046_v25 }
 0x202   : > { %v952_v28 = vpop.permute.xlu1 %951 }
 0x208   : > { %v950_v29 = vpop.permute.xlu0 %949 }
 0x209   : > { %v953_v30 = vsel %vm941_vm4, %v950_v29, %v952_v28  ;;  %v3047_v29 = vld [vmem:[%s4047_s5 + $0xb8] sm:$0xff]  }
 0x20a   : > { %955 = vst [vmem:[#allocation3 + $0x9] sm:$0x1] %v953_v30  ;;  %v3048_v30 = vld [vmem:[%s4047_s5 + $0x70] sm:$0xff]  }
 0x20b   : > { %v1001_v31 = vpop.permute.xlu1 %1000 }
 0x20f   : > { %v963_v34 = vpop.permute.xlu1 %962 }
 0x215   : > { %v999_v32 = vpop.permute.xlu0 %998 }
 0x216   : > { %v1002_v33 = vsel %vm941_vm4, %v999_v32, %v1001_v31  ;;  %v3050_v31 = vld [vmem:[%s4047_s5 + $0xf0] sm:$0xff]  }
 0x217   : > { %1004 = vst [vmem:[#allocation3 + $0x4] sm:$0x1] %v1002_v33 }
 0x219   : > { %v961_v35 = vpop.permute.xlu0 %960 }
 0x21a   : > { %v964_v36 = vsel %vm941_vm4, %v961_v35, %v963_v34 }
 0x21b   : > { %966 = vst [vmem:[#allocation3 + $0x11] sm:$0x1] %v964_v36  ;;  %v1012_v37 = vpop.permute.xlu1 %1011  ;;  %v3049_v36 = vld [vmem:[%s4047_s5 + $0x30] sm:$0xff]  }
 0x21d   : > { %v1010_v38 = vpop.permute.xlu0 %1009 }
 0x21e   : > { %v1013_v39 = vsel %vm941_vm4, %v1010_v38, %v1012_v37  ;;  %v3051_v37 = vld [vmem:[%s4047_s5 + $0xb0] sm:$0xff]  }
 0x21f   : > { %1015 = vst [vmem:[#allocation3 + $0xc] sm:$0x1] %v1013_v39  ;;  %v974_v40 = vpop.permute.xlu1 %973  ;;  %v3052_v39 = vld [vmem:[%s4047_s5 + $0x68] sm:$0xff]  }
 0x221   : > { %v972_v41 = vpop.permute.xlu0 %971 }
 0x222   : > { %v975_v42 = vsel %vm941_vm4, %v972_v41, %v974_v40  ;;  %v3054_v40 = vld [vmem:[%s4047_s5 + $0xe8] sm:$0xff]  }
 0x223   : > { %977 = vst [vmem:[#allocation3 + $0x19] sm:$0x1] %v975_v42 }
 0x227   : > { %v1061_v43 = vpop.permute.xlu1 %1060  ;;  %v1059_v44 = vpop.permute.xlu0 %1058 }
 0x228   : > { %v1062_v45 = vsel %vm941_vm4, %v1059_v44, %v1061_v43 }
 0x229   : > { %1064 = vst [vmem:[#allocation3 + $0x7] sm:$0x1] %v1062_v45  ;;  %v3053_v45 = vld [vmem:[%s4047_s5 + $0x28] sm:$0xff]  }
 0x22b   : > { %v1023_v46 = vpop.permute.xlu1 %1022  ;;  %v1021_v47 = vpop.permute.xlu0 %1020 }
 0x22c   : > { %v1024_v48 = vsel %vm941_vm4, %v1021_v47, %v1023_v46  ;;  %v3055_v46 = vld [vmem:[%s4047_s5 + $0xa8] sm:$0xff]   ;;  %v3056_v47 = vld [vmem:[%s4047_s5 + $0x60] sm:$0xff]  }
 0x22d   : > { %1026 = vst [vmem:[#allocation3 + $0x14] sm:$0x1] %v1024_v48  ;;  %v3058_v48 = vld [vmem:[%s4047_s5 + $0xe0] sm:$0xff]  }
 0x230   : > { %v1106_v55 = vld [vmem:[#allocation3] sm:$0xff] }
 0x231   : > { %v1114_v60 = vpack.c.bf16 %v1110_v59, %v1106_v55  ;;  %v3064_v55 = vld [vmem:[%s4047_s5 + $0x50] sm:$0xff]  }
 0x233   : > { %v1072_v49 = vpop.permute.xlu1 %1071  ;;  %v1070_v50 = vpop.permute.xlu0 %1069 }
 0x234   : > { %v1073_v51 = vsel %vm941_vm4, %v1070_v50, %v1072_v49  ;;  %v3057_v49 = vld [vmem:[%s4047_s5 + $0x20] sm:$0xff]  }
 0x235   : > { %1075 = vst [vmem:[#allocation3 + $0xf] sm:$0x1] %v1073_v51  ;;  %v3059_v50 = vld [vmem:[%s4047_s5 + $0xa0] sm:$0xff]   ;;  %v3060_v51 = vld [vmem:[%s4047_s5 + $0x58] sm:$0xff]  }
 0x237   : > { %v1034_v52 = vpop.permute.xlu1 %1033  ;;  %v1032_v53 = vpop.permute.xlu0 %1031 }
 0x238   : > { %v1035_v54 = vsel %vm941_vm4, %v1032_v53, %v1034_v52  ;;  %v3061_v52 = vld [vmem:[%s4047_s5 + $0x18] sm:$0xff]  }
 0x239   : > { %1037 = vst [vmem:[#allocation3 + $0x1c] sm:$0x1] %v1035_v54  ;;  %v3062_v53 = vld [vmem:[%s4047_s5 + $0xd8] sm:$0xff]  }
 0x23a   : > { %v3063_v54 = vld [vmem:[%s4047_s5 + $0x98] sm:$0xff]  }
 0x23c   : > { %v1107_v56 = vld [vmem:[#allocation3 + $0x8] sm:$0xff] }
 0x23d   : > { %v1115_v58 = vpack.c.bf16 %v1111_v57, %v1107_v56  ;;  %v3065_v56 = vld [vmem:[%s4047_s5 + $0x10] sm:$0xff]  }
 0x23e   : > { %v3066_v57 = vld [vmem:[%s4047_s5 + $0xd0] sm:$0xff]  }
 0x23f   : > { %1413 = vmatprep.mubr.bf16.mxu1 %v1115_v58  ;;  %v3067_v58 = vld [vmem:[%s4047_s5 + $0x90] sm:$0xff]  }
 0x240   : > { %1414 = vmatmul.mubr.bf16.vlgmr.msra.gmra.mxu1 %v1114_v60 }
 0x241   : > { %2835 = vmatpush3.bf16.msra.mxu1 %v3045_v24 }
 0x242   : > { %2836 = vmatprep.subr.bf16.mxu1 %v3048_v30  ;;  %v3078_v30 = vld [vmem:[%s4047_s5 + $0x108] sm:$0xff]  }
 0x245   : > { %2837 = vmatpush3.bf16.msra.mxu1 %v3049_v36  ;;  %v3082_v36 = vld [vmem:[%s4049_s7 + $0x64] ss:$16 sps:$4 sm:$0xff]  }
 0x246   : > { %2838 = vmatprep.subr.bf16.mxu1 %v3052_v39  ;;  %v3088_v39 = vld [vmem:[%s4049_s7 + $0x44] ss:$16 sps:$4 sm:$0xff]  }
 0x247   : > { %v1094_v61 = vpop.permute.xlu1 %1093  ;;  %v1092_v62 = vpop.permute.xlu0 %1091 }
 0x248   : > { %v1095_v63 = vsel %vm941_vm4, %v1092_v62, %v1094_v61  ;;  %v3068_v61 = vld [vmem:[%s4047_s5 + $0x48] sm:$0xff]  }
 0x249   : > { %1097 = vst [vmem:[#allocation3 + $0x1f] sm:$0x1] %v1095_v63  ;;  %2839 = vmatpush3.bf16.msra.mxu1 %v3053_v45  ;;  %v3070_v62 = vld [vmem:[%s4047_s5 + $0xc8] sm:$0xff]   ;;  %v3092_v45 = vld [vmem:[%s4049_s7 + $0x20] ss:$16 sps:$4 sm:$0xff]  }
 0x24a   : > { %2840 = vmatprep.subr.bf16.mxu1 %v3056_v47  ;;  %v3069_v63 = vld [vmem:[%s4047_s5 + $0x8] sm:$0xff]   ;;  %v3100_v47 = vld [vmem:[%s4049_s7 + $0x4] ss:$16 sps:$4 sm:$0xff]  }
 0x24b   : > { %v1083_v0 = vpop.permute.xlu1 %1082  ;;  %v1081_v1 = vpop.permute.xlu0 %1080 }
 0x24c   : > { %v1084_v2 = vsel %vm941_vm4, %v1081_v1, %v1083_v0  ;;  %v1504_v0 = vlaneseq  ;;  %v3071_v1 = vld [vmem:[%s4047_s5 + $0x88] sm:$0xff]  }
 0x24d   : > { %1086 = vst [vmem:[#allocation3 + $0x17] sm:$0x1] %v1084_v2  ;;  %2841 = vmatpush3.bf16.msra.mxu1 %v3057_v49  ;;  %v3072_v2 = vld [vmem:[%s4047_s5 + $0x40] sm:$0xff]  }
 0x24e   : > { %2842 = vmatprep.subr.bf16.mxu1 %v3060_v51  ;;  %vm1506_vm7 = vcmp.lt.s32.totalorder %v1504_v0, 192  ;;  %vm1517_vm8 = vcmp.ge.s32.totalorder %v1504_v0, 64  ;;  %vm1518_vm9 = vcmp.lt.s32.totalorder %v1504_v0, 256  ;;  %v3098_v49 = vld [vmem:[%s4049_s7] ss:$16 sps:$4 sm:$0xff]   ;;  %v3203_v51 = vmov 0  }
 0x24f   : > { %vm1519_vm10 = vmand %vm1517_vm8, %vm1518_vm9 }
 0x250   : > { %v1109_v3 = vld [vmem:[#allocation3 + $0x18] sm:$0xff] }
 0x251   : > { %v1117_v5 = vpack.c.bf16 %v1113_v4, %v1109_v3  ;;  %2843 = vmatpush3.bf16.msra.mxu1 %v3061_v52  ;;  %v3074_v3 = vld [vmem:[%s4047_s5 + $0xc0] sm:$0xff]   ;;  %v3104_v52 = vld [vmem:[%s4051_s9 + $0x78] sm:$0xff]  }
 0x252   : > { %2844 = vmatprep.subr.bf16.mxu1 %v3064_v55 }
 0x253   : > { %1454 = vmatprep.mubr.bf16.mxu0 %v1117_v5  ;;  %v3073_v5 = vld [vmem:[%s4047_s5] sm:$0xff]  }
 0x254   : > { %v1108_v6 = vld [vmem:[#allocation3 + $0x10] sm:$0xff] }
 0x255   : > { %v1116_v8 = vpack.c.bf16 %v1112_v7, %v1108_v6  ;;  %2845 = vmatpush3.bf16.msra.mxu1 %v3065_v56  ;;  %v3075_v6 = vld [vmem:[%s4047_s5 + $0x80] sm:$0xff]  }
 0x256   : > { %2846 = vmatprep.subr.bf16.mxu1 %v3068_v61 }
 0x257   : > { %1455 = vmatmul.mubr.bf16.vlgmr.msra.gmra.mxu0 %v1116_v8 }
 0x258   : > { %2857 = vmatpush3.bf16.msra.mxu0 %v3047_v29  ;;  %v3077_v29 = vld [vmem:[%s4047_s5 + $0x110] sm:$0xff]  }
 0x259   : > { %2858 = vmatprep.subr.bf16.mxu0 %v3050_v31  ;;  %2847 = vmatpush3.bf16.msra.mxu1 %v3069_v63  ;;  %v1628_v63 = vld [vmem:[%s4048_s6] sm:$0x1] }
 0x25a   : > { %2848 = vmatprep.subr.bf16.mxu1 %v3072_v2 }
 0x25c   : > { %2859 = vmatpush3.bf16.msra.mxu0 %v3051_v37  ;;  %v3083_v37 = vld [vmem:[%s4049_s7 + $0x68] ss:$16 sps:$4 sm:$0xff]  }
 0x25d   : > { %2860 = vmatprep.subr.bf16.mxu0 %v3054_v40  ;;  %2849 = vmatpush3.bf16.msra.mxu1 %v3073_v5  ;;  %v3091_v40 = vld [vmem:[%s4049_s7 + $0x4c] ss:$16 sps:$4 sm:$0xff]  }
 0x260   : > { %2861 = vmatpush3.bf16.msra.mxu0 %v3055_v46  ;;  %v3095_v46 = vld [vmem:[%s4049_s7 + $0x28] ss:$16 sps:$4 sm:$0xff]  }
 0x261   : > { %2862 = vmatprep.subr.bf16.mxu0 %v3058_v48  ;;  %v3103_v48 = vld [vmem:[%s4049_s7 + $0xc] ss:$16 sps:$4 sm:$0xff]  }
 0x264   : > { %2863 = vmatpush3.bf16.msra.mxu0 %v3059_v50  ;;  %v3101_v50 = vld [vmem:[%s4049_s7 + $0x8] ss:$16 sps:$4 sm:$0xff]  }
 0x265   : > { %2864 = vmatprep.subr.bf16.mxu0 %v3062_v53  ;;  %v3105_v53 = vld [vmem:[%s4051_s9 + $0xf8] sm:$0xff]  }
 0x268   : > { %2865 = vmatpush3.bf16.msra.mxu0 %v3063_v54 }
 0x269   : > { %2866 = vmatprep.subr.bf16.mxu0 %v3066_v57 }
 0x26c   : > { %2867 = vmatpush3.bf16.msra.mxu0 %v3067_v58 }
 0x26d   : > { %2868 = vmatprep.subr.bf16.mxu0 %v3070_v62 }
 0x270   : > { %2869 = vmatpush3.bf16.msra.mxu0 %v3071_v1 }
 0x271   : > { %2870 = vmatprep.subr.bf16.mxu0 %v3074_v3 }
 0x274   : > { %2871 = vmatpush3.bf16.msra.mxu0 %v3075_v6 }
 0x300   : > { %v2806_v9 = vpop.f32.mrf.mxu1 }
 0x302   : > { %v2807_v10 = vpop.f32.mrf.mxu1 }
 0x303   : > { %v2808_v12 = vadd.f32 %v2807_v10, %v2806_v9  ;;  %v3201_v10 = vmov 0.0  }
 0x304   : > { %v2809_v11 = vpop.f32.mrf.mxu1  ;;  %2927 = vmatprep.subr.bf16.mxu1 %v3201_v10 }
 0x305   : > { %v1416_v17 = vadd.f32 %v2808_v12, %v2620_v13 }
 0x306   : > { %v2810_v14 = vpop.f32.mrf.mxu1 }
 0x307   : > { %v2811_v18 = vadd.f32 %v2810_v14, %v2809_v11  ;;  %v3816_v14 = vshrl.u32 %v1504_v0, 7 }
 0x309   : > { %v1419_v26 = vadd.f32 %v2811_v18, %v2620_v13  ;;  %v1536_v18 = vsub.s32 2, %v3816_v14  ;;  %v1544_v31 = vsub.s32 4, %v3816_v14 }
 0x317   : > { %v2828_v15 = vpop.f32.mrf.mxu0 }
 0x319   : > { %v2829_v16 = vpop.f32.mrf.mxu0 }
 0x31a   : > { %v2830_v19 = vadd.f32 %v2829_v16, %v2828_v15  ;;  %v1532_v15 = vsub.s32 1, %v3816_v14  ;;  %v1540_v16 = vsub.s32 3, %v3816_v14 }
 0x31b   : > { %v2831_v20 = vpop.f32.mrf.mxu0 }
 0x31c   : > { %v1457_v21 = vadd.f32 %v2830_v19, %v1416_v17  ;;  %v1528_v17 = vsub.s32 0, %v3816_v14 }
 0x31d   : > { %v2832_v22 = vpop.f32.mrf.mxu0 }
 0x31e   : > { %v1463_v27 = vmax.f32 %v1457_v21, 0.0  ;;  %v2833_v28 = vadd.f32 %v2832_v22, %v2831_v20 }
 0x320   : > { %v2654_v32 = vrot.slane %v1463_v27, 10  ;;  %v1460_v33 = vadd.f32 %v2833_v28, %v1419_v26  ;;  %1466 = vst.msk [vmem:[#allocation4] sm:$0x1] %vm1465_vm5, %v1463_v27  ;;  %v1483_v34 = vcombine.high %v1463_v27, %v1463_v27  ;;  %v2653_v35 = vrot.slane %v1463_v27, 9  ;;  %v3076_v28 = vld [vmem:[%s4047_s5 + $0x118] sm:$0xff]  }
 0x321   : > { %v2655_v38 = vrot.slane %v1463_v27, 11 }
 0x322   : > { %v1464_v41 = vmax.f32 %v1460_v33, 0.0  ;;  %1478 = vst.msk [vmem:[#allocation4 + $0x4] sm:$0x1] %vm1465_vm5, %v2654_v32  ;;  %1484 = vrot.lane.b32.xlu0 %v1483_v34, %s3199_s26  ;;  %v2656_v42 = vrot.slane %v1483_v34, 9  ;;  %1470 = vrot.lane.b32.xlu1 %v2653_v35, %s3199_s26  ;;  %v2657_v43 = vrot.slane %v1483_v34, 10  ;;  %v2658_v44 = vrot.slane %v1483_v34, 11 }
 0x323   : > { %1482 = vst.msk [vmem:[#allocation4 + $0x1] sm:$0x1] %vm1465_vm5, %v2655_v38  ;;  %v3079_v32 = vld [vmem:[%s4047_s5 + $0x100] sm:$0xff]   ;;  %v3085_v38 = vld [vmem:[%s4049_s7 + $0x6c] ss:$16 sps:$4 sm:$0xff]  }
 0x324   : > { %1502 = vst.msk [vmem:[#allocation4 + $0x6] sm:$0x1] %vm1465_vm5, %v1464_v41  ;;  %1491 = vst.msk [vmem:[#allocation4 + $0x5] sm:$0x1] %vm1465_vm5, %v2656_v42  ;;  %v3080_v35 = vld [vmem:[%s4049_s7 + $0x60] ss:$16 sps:$4 sm:$0xff]   ;;  %2142 = vmatprep.subr.bf16.mxu0 %v3085_v38 }
 0x325   : > { %1495 = vst.msk [vmem:[#allocation4 + $0x2] sm:$0x1] %vm1465_vm5, %v2657_v43  ;;  %v3086_v41 = vld [vmem:[%s4049_s7 + $0x40] ss:$16 sps:$4 sm:$0xff]   ;;  %v3089_v42 = vld [vmem:[%s4049_s7 + $0x48] ss:$16 sps:$4 sm:$0xff]  }
 0x326   : > { %1498 = vrot.lane.b32.xlu0 %v2658_v44, %s3199_s26  ;;  %v3094_v43 = vld [vmem:[%s4049_s7 + $0x24] ss:$16 sps:$4 sm:$0xff]   ;;  %v3097_v44 = vld [vmem:[%s4049_s7 + $0x2c] ss:$16 sps:$4 sm:$0xff]  }
 0x327   : > { %v3128_v38 = vld [vmem:[%s4051_s9 + $0x48] sm:$0xff]  }
 0x394   : > { %v1485_v59 = vpop.permute.xlu0 %1484  ;;  %v1471_v60 = vpop.permute.xlu1 %1470 }
 0x395   : > { %1487 = vst.msk [vmem:[#allocation4 + $0x1] sm:$0x1] %vm1473_vm6, %v1485_v59  ;;  %1474 = vst.msk [vmem:[#allocation4] sm:$0x1] %vm1473_vm6, %v1471_v60 }
 0x398   : > { %v1499_v4 = vpop.permute.xlu0 %1498 }
 0x399   : > { %1501 = vst.msk [vmem:[#allocation4 + $0x2] sm:$0x1] %vm1473_vm6, %v1499_v4 }
 0x39c   : > { %v1510_v7 = vld [vmem:[#allocation4 + $0x1] ss:$4 sm:$0x3]  ;;  %v1503_v8 = vld [vmem:[#allocation4] ss:$4 sm:$0x3] }
 0x39d   : > { %1512 = vrot.lane.b32.xlu1 %v1510_v7, %s3199_s26  ;;  %1508 = vst.msk [vmem:[#allocation5] sm:$0x3] %vm1506_vm7, %v1503_v8  ;;  %s3142_s26 = scalar_lea.vmem %s3141_s22, 32 }
 0x39e   : > { %p3144_p1 = scmp.lt.s32.totalorder %s3142_s26, %s3136_s24 }
 0x3a0   : > { %v1522_v9 = vld [vmem:[#allocation4 + $0x2] ss:$4 sm:$0x3]  ;;  %p3145_p2 = por %p3144_p1, %p3143_p0 }
 0x3a1   : > { %1523 = vst.msk [vmem:[#allocation5 + $0x3] sm:$0x3] %vm1506_vm7, %v1522_v9 }
 0x3a2   : > { %p3146_p3 = pnand %p3145_p2, %p3139_p13 }
 0x40f   : > { %v1513_v11 = vpop.permute.xlu1 %1512 }
 0x410   : > { %v1514_v12 = vrot.slane %v1513_v11, 7 }
 0x412   : > { %v1515_v13 = vsel %vm941_vm4, %v1514_v12, %v1513_v11  ;;  %v3107_v11 = vld [vmem:[%s4051_s9 + $0xb8] sm:$0xff]  }
 0x413   : > { %1520 = vst.msk [vmem:[#allocation5 + $0x1] sm:$0x3] %vm1519_vm10, %v1515_v13  ;;  %v3108_v13 = vld [vmem:[%s4051_s9 + $0x70] sm:$0xff]  }
 0x41a   : > { %v1524_v19 = vld [vmem:[#allocation5] sm:$0x1f] }
 0x41b   : > { %v1533_v20 = vrot.slane %v1524_v19, %v1532_v15  ;;  %v1541_v21 = vrot.slane %v1524_v19, %v1540_v16  ;;  %v1529_v22 = vrot.slane %v1524_v19, %v1528_v17  ;;  %v1537_v23 = vrot.slane %v1524_v19, %v1536_v18 }
 0x41c   : > { %v1545_v33 = vrot.slane %v1524_v19, %v1544_v31  ;;  %v3109_v19 = vld [vmem:[%s4051_s9 + $0xf0] sm:$0xff]   ;;  %v3121_v31 = vld [vmem:[%s4051_s9 + $0xd8] sm:$0xff]  }
 0x41d   : > { %v1552_v24 = vpack.c.bf16 %v1533_v20, %v1533_v20  ;;  %v1554_v25 = vpack.c.bf16 %v1541_v21, %v1541_v21  ;;  %v1551_v26 = vpack.c.bf16 %v1529_v22, %v1529_v22  ;;  %v1553_v27 = vpack.c.bf16 %v1537_v23, %v1537_v23  ;;  %v3110_v20 = vld [vmem:[%s4051_s9 + $0x30] sm:$0xff]   ;;  %v3112_v22 = vld [vmem:[%s4051_s9 + $0x68] sm:$0xff]  }
 0x41e   : > { %v1555_v34 = vpack.c.bf16 %v1545_v33, %v1545_v33  ;;  %v3111_v21 = vld [vmem:[%s4051_s9 + $0xb0] sm:$0xff]   ;;  %v3113_v23 = vld [vmem:[%s4051_s9 + $0xe8] sm:$0xff]   ;;  %v3123_v33 = vld [vmem:[%s4051_s9 + $0x98] sm:$0xff]  }
 0x41f   : > { %1880 = vmatprep.mubr.bf16.mxu1 %v1552_v24  ;;  %1920 = vmatprep.mubr.bf16.mxu0 %v1554_v25  ;;  %v3114_v24 = vld [vmem:[%s4051_s9 + $0x28] sm:$0xff]  }
 0x420   : > { %1881 = vmatmul.mubr.bf16.vlgmr.msra.gmra.mxu1 %v1551_v26  ;;  %1921 = vmatmul.mubr.bf16.vlgmr.msra.gmra.mxu0 %v1553_v27  ;;  %v3115_v25 = vld [vmem:[%s4051_s9 + $0xa8] sm:$0xff]   ;;  %v3116_v26 = vld [vmem:[%s4051_s9 + $0x60] sm:$0xff]  }
 0x421   : > { %2928 = vmatpush3.bf16.msra.mxu1 %v3076_v28  ;;  %2935 = vmatprep.mubr.msk.bf16.mxu1 %vm3202_vm11, %v3201_v10  ;;  %v3117_v27 = vld [vmem:[%s4051_s9 + $0xe0] sm:$0xff]  }
 0x422   : > { %2929 = vmatprep.subr.bf16.mxu1 %v3201_v10  ;;  %2143 = vmatpush1.bf16.msra.mxu0 %v3083_v37  ;;  %v3118_v28 = vld [vmem:[%s4051_s9 + $0x20] sm:$0xff]   ;;  %v3127_v37 = vld [vmem:[%s4051_s9 + $0x90] sm:$0xff]  }
 0x423   : > { %2144 = vmatprep.subr.bf16.mxu0 %v3091_v40  ;;  %2166 = vmatprep.mubr.bf16.mxu0 %v3203_v51  ;;  %v3130_v40 = vld [vmem:[%s4051_s9 + $0x8] sm:$0xff]  }
 0x425   : > { %2930 = vmatpush3.bf16.msra.mxu1 %v3077_v29  ;;  %v3119_v29 = vld [vmem:[%s4051_s9 + $0xa0] sm:$0xff]  }
 0x426   : > { %2931 = vmatprep.subr.bf16.mxu1 %v3201_v10  ;;  %2145 = vmatpush1.bf16.msra.mxu0 %v3089_v42  ;;  %v3132_v42 = vld [vmem:[%s4051_s9 + $0x40] sm:$0xff]  }
 0x427   : > { %2146 = vmatprep.subr.bf16.mxu0 %v3097_v44  ;;  %v3134_v44 = vld [vmem:[%s4051_s9] sm:$0xff]  }
 0x429   : > { %2932 = vmatpush3.bf16.msra.mxu1 %v3078_v30  ;;  %v3120_v30 = vld [vmem:[%s4051_s9 + $0x58] sm:$0xff]  }
 0x42a   : > { %2933 = vmatprep.subr.bf16.mxu1 %v3201_v10  ;;  %2147 = vmatpush1.bf16.msra.mxu0 %v3095_v46  ;;  %v3106_v10 = vld [vmem:[%s4051_s9 + $0x38] sm:$0xff]   ;;  %v1988_v46 = vld [vmem:[%s4050_s8] sm:$0xf] }
 0x42b   : > { %2148 = vmatprep.subr.bf16.mxu0 %v3103_v48  ;;  %v2081_v48 = vrot.slane %v1988_v46, %v1536_v18 }
 0x42d   : > { %2934 = vmatpush3.bf16.msra.mxu1 %v3079_v32  ;;  %v3122_v32 = vld [vmem:[%s4051_s9 + $0x18] sm:$0xff]  }
 0x42e   : > { %2101 = vmatprep.subr.bf16.mxu1 %v3082_v36  ;;  %2149 = vmatpush1.bf16.msra.mxu0 %v3101_v50  ;;  %v3126_v36 = vld [vmem:[%s4051_s9 + $0x10] sm:$0xff]   ;;  %v2085_v50 = vrot.slane %v1988_v46, %v1540_v16 }
 0x42f   : > { %2905 = vmatprep.subr.bf16.mxu0 %v3105_v53 }
 0x430   : > { %2936 = vmatmul.mubr.msk.bf16.vlgmr.msra.gmra.mxu1 %vm941_vm4, %v1555_v34  ;;  %v3124_v34 = vld [vmem:[%s4051_s9 + $0x50] sm:$0xff]  }
 0x431   : > { %2102 = vmatpush1.bf16.msra.mxu1 %v3080_v35  ;;  %2125 = vmatprep.mubr.bf16.mxu1 %v3203_v51  ;;  %v3125_v35 = vld [vmem:[%s4051_s9 + $0xd0] sm:$0xff]  }
 0x432   : > { %2103 = vmatprep.subr.bf16.mxu1 %v3088_v39  ;;  %v3129_v39 = vld [vmem:[%s4051_s9 + $0xc8] sm:$0xff]  }
 0x435   : > { %2104 = vmatpush1.bf16.msra.mxu1 %v3086_v41  ;;  %v3131_v41 = vld [vmem:[%s4051_s9 + $0x88] sm:$0xff]  }
 0x436   : > { %2105 = vmatprep.subr.bf16.mxu1 %v3094_v43  ;;  %v3133_v43 = vld [vmem:[%s4051_s9 + $0xc0] sm:$0xff]  }
 0x439   : > { %2106 = vmatpush1.bf16.msra.mxu1 %v3092_v45  ;;  %v3135_v45 = vld [vmem:[%s4051_s9 + $0x80] sm:$0xff]  }
 0x43a   : > { %2107 = vmatprep.subr.bf16.mxu1 %v3100_v47  ;;  %v2073_v47 = vrot.slane %v1988_v46, %v1528_v17 }
 0x43d   : > { %2108 = vmatpush1.bf16.msra.mxu1 %v3098_v49  ;;  %v2077_v49 = vrot.slane %v1988_v46, %v1532_v15 }
 0x43e   : > { %2883 = vmatprep.subr.bf16.mxu1 %v3104_v52 }
 0x4e0   : > { %v2850_v54 = vpop.f32.mrf.mxu1  ;;  %v2872_v55 = vpop.f32.mrf.mxu0 }
 0x4e2   : > { %v2851_v56 = vpop.f32.mrf.mxu1  ;;  %v2873_v57 = vpop.f32.mrf.mxu0 }
 0x4e3   : > { %v2852_v62 = vadd.f32 %v2851_v56, %v2850_v54  ;;  %v2874_v1 = vadd.f32 %v2873_v57, %v2872_v55 }
 0x4e4   : > { %v2853_v58 = vpop.f32.mrf.mxu1  ;;  %v2875_v59 = vpop.f32.mrf.mxu0 }
 0x4e5   : > { %v1883_v0 = vadd.f32 %v2852_v62, %v1628_v63 }
 0x4e6   : > { %v2854_v60 = vpop.f32.mrf.mxu1  ;;  %v2876_v61 = vpop.f32.mrf.mxu0 }
 0x4e7   : > { %v1923_v2 = vadd.f32 %v2874_v1, %v1883_v0 }
 0x4f0   : > { %v1962_v3 = vpop.f32.mrf.mxu1 }
 0x4f1   : > { %v1963_v4 = vadd.f32 %v1962_v3, %v1923_v2 }
 0x4f2   : > { %v2937_v5 = vpop.f32.mrf.mxu1 }
 0x4f3   : > { %v1968_v6 = vmax.f32 %v1963_v4, 0.0  ;;  %v2247_v4 = vld [vmem:[%s4052_s10] sm:$0x1] }
 0x4f4   : > { %v1965_v7 = vpop.f32.mrf.mxu1 }
 0x4f5   : > { %1969 = vst.msk [vmem:[#allocation6] sm:$0x1] %vm1465_vm5, %v1968_v6 }
 0x4f6   : > { %v2938_v8 = vpop.f32.mrf.mxu1 }
 0x4fc   : > { %v1970_v9 = vld [vmem:[#allocation6] sm:$0x1] }
 0x4fd   : > { %v1971_v12 = vpack.c.bf16 %v1970_v9, %v1970_v9 }
 0x4ff   : > { %2712 = vmatmul.mubr.msk.bf16.vlgmr.msra.gmra.mxu1 %vm941_vm4, %v1971_v12  ;;  %2713 = vmatmul.mubr.msk.bf16.vlgmr.msra.gmra.mxu0 %vm941_vm4, %v1971_v12 }
 0x500   : > { %2884 = vmatpush3.bf16.msra.mxu1 %v3106_v10  ;;  %2906 = vmatpush3.bf16.msra.mxu0 %v3107_v11 }
 0x501   : > { %2885 = vmatprep.subr.bf16.mxu1 %v3108_v13  ;;  %2907 = vmatprep.subr.bf16.mxu0 %v3109_v19 }
 0x504   : > { %2886 = vmatpush3.bf16.msra.mxu1 %v3110_v20  ;;  %2908 = vmatpush3.bf16.msra.mxu0 %v3111_v21 }
 0x505   : > { %2887 = vmatprep.subr.bf16.mxu1 %v3112_v22  ;;  %2909 = vmatprep.subr.bf16.mxu0 %v3113_v23 }
 0x508   : > { %2888 = vmatpush3.bf16.msra.mxu1 %v3114_v24  ;;  %2910 = vmatpush3.bf16.msra.mxu0 %v3115_v25 }
 0x509   : > { %2889 = vmatprep.subr.bf16.mxu1 %v3116_v26  ;;  %2911 = vmatprep.subr.bf16.mxu0 %v3117_v27 }
 0x50c   : > { %2890 = vmatpush3.bf16.msra.mxu1 %v3118_v28  ;;  %2912 = vmatpush3.bf16.msra.mxu0 %v3119_v29 }
 0x50d   : > { %2891 = vmatprep.subr.bf16.mxu1 %v3120_v30  ;;  %2913 = vmatprep.subr.bf16.mxu0 %v3121_v31 }
 0x510   : > { %2892 = vmatpush3.bf16.msra.mxu1 %v3122_v32  ;;  %2914 = vmatpush3.bf16.msra.mxu0 %v3123_v33 }
 0x511   : > { %2893 = vmatprep.subr.bf16.mxu1 %v3124_v34  ;;  %2915 = vmatprep.subr.bf16.mxu0 %v3125_v35 }
 0x514   : > { %2894 = vmatpush3.bf16.msra.mxu1 %v3126_v36  ;;  %2916 = vmatpush3.bf16.msra.mxu0 %v3127_v37 }
 0x515   : > { %2895 = vmatprep.subr.bf16.mxu1 %v3128_v38  ;;  %2917 = vmatprep.subr.bf16.mxu0 %v3129_v39 }
 0x518   : > { %2896 = vmatpush3.bf16.msra.mxu1 %v3130_v40  ;;  %2918 = vmatpush3.bf16.msra.mxu0 %v3131_v41 }
 0x519   : > { %2897 = vmatprep.subr.bf16.mxu1 %v3132_v42  ;;  %2919 = vmatprep.subr.bf16.mxu0 %v3133_v43 }
 0x51c   : > { %2898 = vmatpush3.bf16.msra.mxu1 %v3134_v44  ;;  %2920 = vmatpush3.bf16.msra.mxu0 %v3135_v45 }
 0x5bf   : > { %v2127_v51 = vpop.f32.mrf.mxu1  ;;  %v2168_v52 = vpop.f32.mrf.mxu0 }
 0x5c0   : > { %v2128_v53 = vadd.f32 %v2127_v51, %v2073_v47  ;;  %v2169_v54 = vadd.f32 %v2168_v52, %v2081_v48 }
 0x5c1   : > { %v2129_v55 = vpop.f32.mrf.mxu1  ;;  %v2170_v56 = vpop.f32.mrf.mxu0 }
 0x5c2   : > { %v2130_v57 = vadd.f32 %v2129_v55, %v2077_v49  ;;  %v2171_v58 = vadd.f32 %v2170_v56, %v2085_v50  ;;  %v2175_v59 = vmax.f32 %v2128_v53, 0.0  ;;  %v2177_v17 = vmax.f32 %v2169_v54, 0.0 }
 0x5c3   : > { %v2131_v60 = vpop.f32.mrf.mxu1  ;;  %v2172_v61 = vpop.f32.mrf.mxu0 }
 0x5c4   : > { %v2176_v18 = vmax.f32 %v2130_v57, 0.0  ;;  %v2178_v62 = vmax.f32 %v2171_v58, 0.0  ;;  %v2179_v16 = vpack.c.bf16 %v2175_v59, %v2175_v59  ;;  %v2181_v1 = vpack.c.bf16 %v2177_v17, %v2177_v17 }
 0x5c5   : > { %v2132_v63 = vpop.f32.mrf.mxu1  ;;  %v2173_v15 = vpop.f32.mrf.mxu0 }
 0x5c6   : > { %v2180_v0 = vpack.c.bf16 %v2176_v18, %v2176_v18  ;;  %v2182_v14 = vpack.c.bf16 %v2178_v62, %v2178_v62 }
 0x5c8   : > { %2472 = vmatprep.mubr.bf16.mxu1 %v2180_v0  ;;  %2512 = vmatprep.mubr.bf16.mxu0 %v2182_v14 }
 0x5c9   : > { %2473 = vmatmul.mubr.bf16.vlgmr.msra.gmra.mxu1 %v2179_v16  ;;  %2513 = vmatmul.mubr.bf16.vlgmr.msra.gmra.mxu0 %v2181_v1 }
 0x689   : > { %v2899_v2 = vpop.f32.mrf.mxu1  ;;  %v2921_v3 = vpop.f32.mrf.mxu0 }
 0x68b   : > { %v2900_v5 = vpop.f32.mrf.mxu1  ;;  %v2922_v6 = vpop.f32.mrf.mxu0 }
 0x68c   : > { %v2901_v7 = vadd.f32 %v2900_v5, %v2899_v2  ;;  %v2923_v11 = vadd.f32 %v2922_v6, %v2921_v3 }
 0x68d   : > { %v2902_v8 = vpop.f32.mrf.mxu1  ;;  %v2924_v9 = vpop.f32.mrf.mxu0 }
 0x68e   : > { %v2475_v10 = vadd.f32 %v2901_v7, %v2247_v4 }
 0x68f   : > { %v2903_v12 = vpop.f32.mrf.mxu1  ;;  %v2925_v13 = vpop.f32.mrf.mxu0 }
 0x690   : > { %v2515_v19 = vadd.f32 %v2923_v11, %v2475_v10 }
 0x692   : > { %2520 = vst [vmem:[%s378_s29] sm:$0x1] %v2515_v19 }
 0x693   : > { %3149 = shalt.err (!%p3146_p3)
}
 0x694   : > { %s3150_s0 = scalar_lea.hbm %s2532_s12, 16  ;;  %s3154_s29 = scalar_lea.hbm %s4053_s11, 32 }
 0x695   : > { %p3151_p4 = scmp.ne.s32.totalorder %s2532_s12, %s3150_s0  ;;  %p3155_p9 = scmp.lt.s32.totalorder %s2532_s12, %s4053_s11 }
 0x696   : > { %p3156_p10 = scmp.lt.s32.totalorder %s3154_s29, %s3150_s0 }
 0x697   : > { %p3152_p7 = pnand %p3151_p4, %p3303_p5 }
 0x698   : > { %p3157_p11 = por %p3156_p10, %p3155_p9 }
 0x699   : > { %p3153_p8 = pneg %p3152_p7 }
 0x69b   : > { %p3158_p12 = pnand %p3157_p11, %p3153_p8 }
 0x69d   : > { %3161 = shalt.err (!%p3158_p12)
}
 0x69e   : > { %2939 = dma.vmem_to_hbm [thread:$0]  (%p3303_p5), %s2535_s13, 16, %s2532_s12, %s2522_s16  }
 0x69f PF: > { %p2945_p13 = scmp.ge.s32.totalorder %s3196_s20, 2  ;;  %s2546_s24 = sand.u32 1, %s3184_s17  }
 0x6a0   : > { %s2547_s21 = scalar_lea.sflag [#allocation8], %s2546_s24 }
 0x6a1   : > { %p2942_p0 = pnand %p2945_p13, %p3307_p6 }
 0x6a3   : > { %p2943_p1 = pneg %p2942_p0 }
 0x6a5   : > { %3179 = dma.done.wait (%p2943_p1), %s2547_s21, 16  }
 0x6a6   : > { %3181 = vsyncadd (%p2943_p1), %s2547_s21, 4294967280  ;;  %s4059_s0 = sld [smem:[#allocation10_spill]]  ;;  %p21_p2 = scmp.ge.s32.totalorder %s3290_s23, 4  }
 0x6a7   : > { %s4060_s17 = smov %s3188_s18  ;;  %s4061_s18 = smov %s3192_s19 }
 0x6a8   : > { %s4063_s20 = smov %s3290_s23  ;;  %23 = sbr.rel (!%p21_p2) target bundleno = 5 (0x5), region = 101 }
 0x6ac   : > { %s4062_s19 = smov %s4059_s0 }
 0x6ad   :  { %2551 = vsyncpa [#allocation8], 1 }
 0x6ae   :  { %2553 = vsyncpa [#allocation8 + $0x1], 1 }

</bundles_post_ra>
